<compile_context>
chip_gen: v5e
topology: v5e:2x2
jax: 0.10.0
libtpu: 0.0.40
codegen_flags: <defaults>
</compile_context>

<pallas_src>
import jax
import jax.numpy as jnp
from jax.experimental import pallas as pl
from jax.experimental.pallas import tpu as pltpu

INPUT_SIZE = 11
HIDDEN_SIZE = 128
NUM_CLASSES = 1

# Max rows of the batch processed per grid step. Multiple of 1024 so the
# lane-dense output block (TB//128, 128) has a sublane dim divisible by 8.
MAX_BLOCK_ROWS = 4096


def _mlp_kernel(x_ref, w1_ref, b1_ref, w2_ref, b2_ref, o_ref):
    # fc1 on the MXU: (TB, 11) f32 @ (11, 128) f32 -> f32 accumulate.
    # K=11 is tiny, so f32 matmul cost is negligible and keeps full accuracy.
    h = jnp.dot(x_ref[...], w1_ref[...], preferred_element_type=jnp.float32)
    # bias + ReLU in f32 (VPU).
    h = jnp.maximum(h + b1_ref[...], 0.0)
    # fc2 as a lane reduction instead of a width-1 MXU matmul:
    #   z = sum(h * w2_row, axis=-1)                     -> (TB, 1)
    z = jnp.sum(h * w2_ref[...], axis=-1, keepdims=True)
    # Relayout to the lane-dense slab FIRST, then run the scalar epilogue on
    # dense vregs (bias + sigmoid at full lane utilization).
    z = z.reshape(o_ref.shape)                            # (TB//128, 128)
    z = jax.nn.sigmoid(z + b2_ref[0])
    # Lane-dense, unmasked store.
    o_ref[...] = z.astype(o_ref.dtype)


def _pick_block_rows(batch):
    """Largest tile <= MAX_BLOCK_ROWS, but keep >= 2 balanced tiles when the
    batch allows, so the 'parallel' axis shards across both TCs on v7x."""
    half = pl.cdiv(batch, 2)
    rounded = pl.cdiv(half, 1024) * 1024
    return max(1024, min(MAX_BLOCK_ROWS, rounded))


def linear_model_forward(x, w1, b1, w2, b2, *, block_rows=None):
    """x: (B, 11) f32.  w1: (128, 11), b1: (128,), w2: (1, 128), b2: (1,)
    (PyTorch nn.Linear parameter layouts).  Returns (B, 1) f32."""
    B = x.shape[0]
    assert x.shape[1] == INPUT_SIZE
    if block_rows is None:
        block_rows = _pick_block_rows(B)
    assert block_rows % 1024 == 0, "block_rows must be a multiple of 1024"

    n_tiles = pl.cdiv(B, block_rows)
    b_pad = n_tiles * block_rows

    # Wrapper-side glue touches only the tiny parameters; x is passed through
    # untouched (no pad / cast pass over the one large operand).  The partial
    # final x block reads undefined tail rows -> garbage output rows that are
    # sliced off below (rows are independent).
    w1_t = jnp.transpose(w1).astype(jnp.float32)           # (11, 128)
    b1_r = b1.reshape(1, HIDDEN_SIZE).astype(jnp.float32)  # (1, 128)
    w2_r = w2.reshape(1, HIDDEN_SIZE).astype(jnp.float32)  # (1, 128)
    b2_r = b2.reshape(1).astype(jnp.float32)                # (1,) -> SMEM scalar

    out_slab = pl.pallas_call(
        _mlp_kernel,
        out_shape=jax.ShapeDtypeStruct((b_pad // 128, 128), jnp.float32),
        grid=(n_tiles,),
        in_specs=[
            pl.BlockSpec((block_rows, INPUT_SIZE), lambda i: (i, 0)),
            pl.BlockSpec((INPUT_SIZE, HIDDEN_SIZE), lambda i: (0, 0)),
            pl.BlockSpec((1, HIDDEN_SIZE), lambda i: (0, 0)),
            pl.BlockSpec((1, HIDDEN_SIZE), lambda i: (0, 0)),
            pl.BlockSpec(memory_space=pltpu.MemorySpace.SMEM),
        ],
        out_specs=pl.BlockSpec((block_rows // 128, 128), lambda i: (i, 0)),
        compiler_params=pltpu.CompilerParams(
            dimension_semantics=("parallel",),
            vmem_limit_bytes=32 * 1024 * 1024,
        ),
    )(x, w1_t, b1_r, w2_r, b2_r)

    # (B_pad//128, 128) slab, row-major == batch order -> (B, 1).
    return out_slab.reshape(b_pad, NUM_CLASSES)[:B]


def _init_params(key):
    """Deterministic init mimicking PyTorch Linear default (uniform +/- 1/sqrt(fan_in))."""
    k1, k2, k3, k4 = jax.random.split(key, 4)
    bound1 = 1.0 / jnp.sqrt(float(INPUT_SIZE))
    bound2 = 1.0 / jnp.sqrt(float(HIDDEN_SIZE))
    w1 = jax.random.uniform(k1, (HIDDEN_SIZE, INPUT_SIZE), jnp.float32, -bound1, bound1)
    b1 = jax.random.uniform(k2, (HIDDEN_SIZE,), jnp.float32, -bound1, bound1)
    w2 = jax.random.uniform(k3, (NUM_CLASSES, HIDDEN_SIZE), jnp.float32, -bound2, bound2)
    b2 = jax.random.uniform(k4, (NUM_CLASSES,), jnp.float32, -bound2, bound2)
    return w1, b1, w2, b2


def _reference(x, w1, b1, w2, b2):
    return jax.nn.sigmoid(jnp.maximum(x @ w1.T + b1, 0.0) @ w2.T + b2)


if __name__ == "__main__":
    key = jax.random.PRNGKey(0)
    k_x, k_x2, k_p = jax.random.split(key, 3)
    w1, b1, w2, b2 = _init_params(k_p)

    # Small batch (exercises partial final block, single grid step).
    batch = 8
    x = jax.random.normal(k_x, (batch, INPUT_SIZE), jnp.float32)
    out = jax.block_until_ready(linear_model_forward(x, w1, b1, w2, b2))
    ref = _reference(x, w1, b1, w2, b2)
    assert out.shape == (batch, NUM_CLASSES)
    assert jnp.allclose(out, ref, atol=1e-2, rtol=1e-2)

    # Non-multiple batch spanning two grid steps (exercises the tiled grid /
    # 2-tile v7x path and the garbage-tail slice).
    batch2 = 2307
    x2 = jax.random.normal(k_x2, (batch2, INPUT_SIZE), jnp.float32)
    out2 = jax.block_until_ready(linear_model_forward(x2, w1, b1, w2, b2))
    ref2 = _reference(x2, w1, b1, w2, b2)
    assert out2.shape == (batch2, NUM_CLASSES)
    assert jnp.allclose(out2, ref2, atol=1e-2, rtol=1e-2)

    print("KERNEL_OK")
</pallas_src>

<mosaic_0001>
module attributes {stable_mosaic.version = 11 : i64} {
  func.func @_mlp_kernel(%arg0: i32, %arg1: memref<1024x11xf32, #tpu.memory_space<vmem>>, %arg2: memref<11x128xf32, #tpu.memory_space<vmem>>, %arg3: memref<1x128xf32, #tpu.memory_space<vmem>>, %arg4: memref<1x128xf32, #tpu.memory_space<vmem>>, %arg5: memref<1xf32, #tpu.memory_space<smem>>, %arg6: memref<8x128xf32, #tpu.memory_space<vmem>>) attributes {dimension_semantics = [#tpu.dimension_semantics<parallel>], iteration_bounds = array<i64: 1>, scalar_prefetch = 0 : i64, scratch_operands = 0 : i64, tpu.core_type = #tpu.core_type<tc>, window_params = [{transform_indices = @transform_0, window_bounds = array<i64: 1024, 11>}, {pipeline_mode = #tpu.pipeline_mode<synchronous>, transform_indices = @transform_1, window_bounds = array<i64: 11, 128>}, {pipeline_mode = #tpu.pipeline_mode<synchronous>, transform_indices = @transform_2, window_bounds = array<i64: 1, 128>}, {pipeline_mode = #tpu.pipeline_mode<synchronous>, transform_indices = @transform_3, window_bounds = array<i64: 1, 128>}, {transform_indices = @transform_4, window_bounds = array<i64: 1>}, {transform_indices = @transform_5, window_bounds = array<i64: 8, 128>}]} {
    %c0 = arith.constant 0 : index
    %c0_0 = arith.constant 0 : index
    %0 = vector.load %arg1[%c0, %c0_0] : memref<1024x11xf32, #tpu.memory_space<vmem>>, vector<1024x11xf32>
    %c0_1 = arith.constant 0 : index
    %c0_2 = arith.constant 0 : index
    %1 = vector.load %arg2[%c0_1, %c0_2] : memref<11x128xf32, #tpu.memory_space<vmem>>, vector<11x128xf32>
    %cst = arith.constant dense<0.000000e+00> : vector<1024x128xf32>
    %2 = tpu.matmul %0, %1, %cst {dimension_numbers = #tpu.dot_dimension_numbers<[1], [0], [0], [1], [0, 0, 1, 1], [], []>} : vector<1024x11xf32>, vector<11x128xf32>, vector<1024x128xf32> -> vector<1024x128xf32>
    %c0_3 = arith.constant 0 : index
    %c0_4 = arith.constant 0 : index
    %3 = vector.load %arg3[%c0_3, %c0_4] : memref<1x128xf32, #tpu.memory_space<vmem>>, vector<1x128xf32>
    %4 = vector.broadcast %3 : vector<1x128xf32> to vector<1024x128xf32>
    %5 = arith.addf %2, %4 : vector<1024x128xf32>
    %cst_5 = arith.constant 0.000000e+00 : f32
    %6 = vector.broadcast %cst_5 : f32 to vector<1024x128xf32>
    %7 = arith.maximumf %5, %6 : vector<1024x128xf32>
    %c0_6 = arith.constant 0 : index
    %c0_7 = arith.constant 0 : index
    %8 = vector.load %arg4[%c0_6, %c0_7] : memref<1x128xf32, #tpu.memory_space<vmem>>, vector<1x128xf32>
    %9 = vector.broadcast %8 : vector<1x128xf32> to vector<1024x128xf32>
    %10 = arith.mulf %7, %9 : vector<1024x128xf32>
    %cst_8 = arith.constant dense<0.000000e+00> : vector<1024xf32>
    %11 = vector.multi_reduction <add>, %10, %cst_8 [1] : vector<1024x128xf32> to vector<1024xf32>
    %12 = vector.shape_cast %11 : vector<1024xf32> to vector<1024x1xf32>
    %13 = vector.shape_cast %12 : vector<1024x1xf32> to vector<8x128xf32>
    %c0_9 = arith.constant 0 : index
    %14 = memref.load %arg5[%c0_9] : memref<1xf32, #tpu.memory_space<smem>>
    %15 = vector.broadcast %14 : f32 to vector<8x128xf32>
    %16 = arith.addf %13, %15 : vector<8x128xf32>
    %17 = arith.negf %16 : vector<8x128xf32>
    %18 = math.exp %17 : vector<8x128xf32>
    %cst_10 = arith.constant 1.000000e+00 : f32
    %19 = vector.broadcast %cst_10 : f32 to vector<8x128xf32>
    %20 = arith.addf %19, %18 : vector<8x128xf32>
    %21 = arith.divf %19, %20 : vector<8x128xf32>
    %c0_11 = arith.constant 0 : index
    %c0_12 = arith.constant 0 : index
    %22 = vector.load %arg6[%c0_11, %c0_12] : memref<8x128xf32, #tpu.memory_space<vmem>>, vector<8x128xf32>
    tpu.vector_store %arg6[%c0_11, %c0_12], %21 {strides = array<i32>} : memref<8x128xf32, #tpu.memory_space<vmem>>, vector<8x128xf32>,
    return
  }
  func.func @transform_0(%arg0: i32) -> (i32, i32) {
    %c0_i32 = arith.constant 0 : i32
    %c0_i32_0 = arith.constant 0 : i32
    return %arg0, %c0_i32 : i32, i32
  }
  func.func @transform_1(%arg0: i32) -> (i32, i32) {
    %c0_i32 = arith.constant 0 : i32
    %c0_i32_0 = arith.constant 0 : i32
    %c0_i32_1 = arith.constant 0 : i32
    return %c0_i32, %c0_i32_0 : i32, i32
  }
  func.func @transform_2(%arg0: i32) -> (i32, i32) {
    %c0_i32 = arith.constant 0 : i32
    %c0_i32_0 = arith.constant 0 : i32
    %c0_i32_1 = arith.constant 0 : i32
    return %c0_i32, %c0_i32_0 : i32, i32
  }
  func.func @transform_3(%arg0: i32) -> (i32, i32) {
    %c0_i32 = arith.constant 0 : i32
    %c0_i32_0 = arith.constant 0 : i32
    %c0_i32_1 = arith.constant 0 : i32
    return %c0_i32, %c0_i32_0 : i32, i32
  }
  func.func @transform_4(%arg0: i32) -> i32 {
    %c0_i32 = arith.constant 0 : i32
    %c0_i32_0 = arith.constant 0 : i32
    return %c0_i32 : i32
  }
  func.func @transform_5(%arg0: i32) -> (i32, i32) {
    %c0_i32 = arith.constant 0 : i32
    %c0_i32_0 = arith.constant 0 : i32
    return %arg0, %c0_i32 : i32, i32
  }
}

</mosaic_0001>

<bundles_post_ra>
// kernel: tpu_custom_call.1
= control target key start
LH: loop header
LB: loop body
LE: loop exit
PB: predicated region body
PF: predicated region fallthrough
CT: control target
= control target key end

     0   :  { %11 = vsyncpa [#allocation4], 0  ;;  %s9411_s0 = inlined_call_operand.hbm [shape: f32[8,11], index: 0, kind: input, shape index: {}]   ;;  %s9412_s1 = inlined_call_operand.hbm [shape: f32[11,128], index: 1, kind: input, shape index: {}]   ;;  %s9413_s2 = inlined_call_operand.vmem [shape: f32[1,128], index: 2, kind: input, shape index: {}]   ;;  %s9414_s3 = inlined_call_operand.vmem [shape: f32[1,128], index: 3, kind: input, shape index: {}]   ;;  %s9415_s4 = inlined_call_operand.<no memory space> [shape: f32[1], index: 4, kind: input, shape index: {}]   ;;  %s9416_s5 = inlined_call_operand.hbm [shape: f32[8,128], index: 5, kind: output, shape index: {}]  }
   0x1   :  { %12 = vsyncpa [#allocation7], 0 }
   0x2   :  { %13 = vsyncpa [#allocation5], 0 }
   0x3   :  { %17 = vsyncadd [#allocation4], 16256  ;;  %s18_s20 = sshll.u32 %s9411_s0, 4  ;;  %s5366_s21 = smov [#allocation3]   ;;  %s19_s20 = int_to_ptr.hbm [resolvable:$true] %s18_s20 }
   0x4   :  { %s20_s22 = sshll.u32 %s5366_s21, 4  ;;  %s31_s25 = sshll.u32 %s9412_s1, 4  ;;  %s21_s22 = int_to_ptr.vmem [resolvable:$true] %s20_s22  ;;  %s32_s25 = int_to_ptr.hbm [resolvable:$true] %s31_s25 }
   0x5   :  { %s5367_s26 = smov 128   ;;  %s5368_s27 = smov 8  }
   0x6   :  { %26 = dma.hbm_to_vmem [thread:$0]  %s19_s20, 128, %s21_s22, [#allocation4], %s5367_s26, %s5367_s26, %s5368_s27  }
   0x7   :  { %s5369_s28 = smov [#allocation6]  }
   0x8   :  { %s33_s29 = sshll.u32 %s5369_s28, 4  ;;  %s34_s29 = int_to_ptr.vmem [resolvable:$true] %s33_s29 }
   0x9   :  { %39 = dma.hbm_to_vmem [thread:$0]  %s32_s25, 256, %s34_s29, [#allocation7], %s5367_s26, %s5367_s26, %s5368_s27  }
   0xa   :  { %5360 = dma.done.wait [#allocation4], 16384  }
   0xb   :  { %5361 = vsyncadd [#allocation4], 4294950912 }
   0xc   :  { %5362 = dma.done.wait [#allocation7], 256  }
   0xd   :  { %5363 = vsyncadd [#allocation7], 4294967040  ;;  %vm573_vm0 = vcmask 1042432   ;;  %v183_v0 = vld [vmem:[#allocation6 + $0x8] sm:$0x7]  ;;  %v182_v1 = vld [vmem:[#allocation6] sm:$0xff] }
   0xe   :  { %4498 = vmatpush.msk.msra.mxu0 %vm573_vm0, %v183_v0  ;;  %4755 = vmatpush.msk.msra.mxu1 %vm573_vm0, %v183_v0  ;;  %v54_v2 = vld [vmem:[#allocation3] sm:$0xff]  ;;  %vm188_vm1 = vcmask 89088   ;;  %v55_v6 = vld [vmem:[#allocation3 + $0x8] sm:$0xff]  ;;  %v56_v10 = vld [vmem:[#allocation3 + $0x10] sm:$0xff]  ;;  %s4487_s26 = sshll.u32 %s9416_s5, 4  ;;  %s4488_s26 = int_to_ptr.hbm [resolvable:$true] %s4487_s26 }
   0xf   :  { %4756 = vmatpush.msk.msra.mxu2 %vm573_vm0, %v183_v0  ;;  %4757 = vmatpush.msk.msra.mxu3 %vm573_vm0, %v183_v0  ;;  %v86_v3 = vld [vmem:[#allocation3 + $0x100] sm:$0xff]  ;;  %v87_v7 = vld [vmem:[#allocation3 + $0x108] sm:$0xff]  ;;  %v88_v11 = vld [vmem:[#allocation3 + $0x110] sm:$0xff] }
  0x10   :  { %592 = vmatpush.msra.mxu0 %v182_v1  ;;  %4758 = vmatpush.msra.mxu1 %v182_v1  ;;  %v118_v4 = vld [vmem:[#allocation3 + $0x200] sm:$0xff]  ;;  %v119_v8 = vld [vmem:[#allocation3 + $0x208] sm:$0xff]  ;;  %v152_v12 = vld [vmem:[#allocation3 + $0x310] sm:$0xff] }
  0x11   :  { %v150_v5 = vld [vmem:[#allocation3 + $0x300] sm:$0xff]  ;;  %4759 = vmatpush.msra.mxu2 %v182_v1  ;;  %4760 = vmatpush.msra.mxu3 %v182_v1  ;;  %v151_v9 = vld [vmem:[#allocation3 + $0x308] sm:$0xff]  ;;  %v120_v13 = vld [vmem:[#allocation3 + $0x210] sm:$0xff] }
  0x12   :  { %4499 = vmatmul.msk.f32.vlgmr.msra.gmra.mxu0 %vm188_vm1, %v54_v2  ;;  %4531 = vmatmul.msk.f32.vlgmr.msra.gmra.mxu1 %vm188_vm1, %v86_v3  ;;  %v89_v14 = vld [vmem:[#allocation3 + $0x118] sm:$0xff]  ;;  %v90_v18 = vld [vmem:[#allocation3 + $0x120] sm:$0xff]  ;;  %v59_v22 = vld [vmem:[#allocation3 + $0x28] sm:$0xff] }
  0x13   :  { %4563 = vmatmul.msk.f32.vlgmr.msra.gmra.mxu2 %vm188_vm1, %v118_v4  ;;  %4595 = vmatmul.msk.f32.vlgmr.msra.gmra.mxu3 %vm188_vm1, %v150_v5  ;;  %v57_v15 = vld [vmem:[#allocation3 + $0x18] sm:$0xff]  ;;  %v58_v19 = vld [vmem:[#allocation3 + $0x20] sm:$0xff]  ;;  %v91_v23 = vld [vmem:[#allocation3 + $0x128] sm:$0xff] }
  0x14   :  { %v121_v16 = vld [vmem:[#allocation3 + $0x218] sm:$0xff]  ;;  %v122_v20 = vld [vmem:[#allocation3 + $0x220] sm:$0xff]  ;;  %v123_v24 = vld [vmem:[#allocation3 + $0x228] sm:$0xff] }
  0x15   :  { %v153_v17 = vld [vmem:[#allocation3 + $0x318] sm:$0xff]  ;;  %v154_v21 = vld [vmem:[#allocation3 + $0x320] sm:$0xff]  ;;  %v155_v25 = vld [vmem:[#allocation3 + $0x328] sm:$0xff] }
  0x16   :  { %v60_v26 = vld [vmem:[#allocation3 + $0x30] sm:$0xff]  ;;  %v93_v30 = vld [vmem:[#allocation3 + $0x138] sm:$0xff]  ;;  %v62_v34 = vld [vmem:[#allocation3 + $0x40] sm:$0xff] }
  0x17   :  { %v92_v27 = vld [vmem:[#allocation3 + $0x130] sm:$0xff]  ;;  %v61_v31 = vld [vmem:[#allocation3 + $0x38] sm:$0xff]  ;;  %v94_v35 = vld [vmem:[#allocation3 + $0x140] sm:$0xff] }
  0x18   :  { %v124_v28 = vld [vmem:[#allocation3 + $0x230] sm:$0xff]  ;;  %v125_v32 = vld [vmem:[#allocation3 + $0x238] sm:$0xff]  ;;  %v126_v36 = vld [vmem:[#allocation3 + $0x240] sm:$0xff] }
  0x19   :  { %v156_v29 = vld [vmem:[#allocation3 + $0x330] sm:$0xff]  ;;  %v157_v33 = vld [vmem:[#allocation3 + $0x338] sm:$0xff]  ;;  %v158_v37 = vld [vmem:[#allocation3 + $0x340] sm:$0xff] }
  0x1a   :  { %4500 = vmatmul.msk.f32.gmra.mxu0 %vm188_vm1, %v55_v6  ;;  %4532 = vmatmul.msk.f32.gmra.mxu1 %vm188_vm1, %v87_v7  ;;  %v63_v38 = vld [vmem:[#allocation3 + $0x48] sm:$0xff]  ;;  %v96_v42 = vld [vmem:[#allocation3 + $0x150] sm:$0xff]  ;;  %v65_v46 = vld [vmem:[#allocation3 + $0x58] sm:$0xff] }
  0x1b   :  { %4564 = vmatmul.msk.f32.gmra.mxu2 %vm188_vm1, %v119_v8  ;;  %4596 = vmatmul.msk.f32.gmra.mxu3 %vm188_vm1, %v151_v9  ;;  %v95_v39 = vld [vmem:[#allocation3 + $0x148] sm:$0xff]  ;;  %v64_v43 = vld [vmem:[#allocation3 + $0x50] sm:$0xff]  ;;  %v97_v47 = vld [vmem:[#allocation3 + $0x158] sm:$0xff] }
  0x1c   :  { %v127_v40 = vld [vmem:[#allocation3 + $0x248] sm:$0xff]  ;;  %v128_v44 = vld [vmem:[#allocation3 + $0x250] sm:$0xff]  ;;  %v129_v48 = vld [vmem:[#allocation3 + $0x258] sm:$0xff] }
  0x1d   :  { %v159_v41 = vld [vmem:[#allocation3 + $0x348] sm:$0xff]  ;;  %v160_v45 = vld [vmem:[#allocation3 + $0x350] sm:$0xff]  ;;  %v161_v49 = vld [vmem:[#allocation3 + $0x358] sm:$0xff] }
  0x1e   :  { %v130_v50 = vld [vmem:[#allocation3 + $0x260] sm:$0xff]  ;;  %v131_v54 = vld [vmem:[#allocation3 + $0x268] sm:$0xff]  ;;  %v132_v57 = vld [vmem:[#allocation3 + $0x270] sm:$0xff] }
  0x1f   :  { %v66_v51 = vld [vmem:[#allocation3 + $0x60] sm:$0xff]  ;;  %v99_v55 = vld [vmem:[#allocation3 + $0x168] sm:$0xff]  ;;  %v164_v59 = vld [vmem:[#allocation3 + $0x370] sm:$0xff] }
  0x20   :  { %v98_v52 = vld [vmem:[#allocation3 + $0x160] sm:$0xff]  ;;  %v163_v56 = vld [vmem:[#allocation3 + $0x368] sm:$0xff]  ;;  %v68_v60 = vld [vmem:[#allocation3 + $0x70] sm:$0xff] }
  0x21   :  { %v162_v53 = vld [vmem:[#allocation3 + $0x360] sm:$0xff]  ;;  %v67_v58 = vld [vmem:[#allocation3 + $0x68] sm:$0xff]  ;;  %v100_v61 = vld [vmem:[#allocation3 + $0x170] sm:$0xff] }
  0x22   :  { %4501 = vmatmul.msk.f32.gmra.mxu0 %vm188_vm1, %v56_v10  ;;  %4533 = vmatmul.msk.f32.gmra.mxu1 %vm188_vm1, %v88_v11  ;;  %v5470_v62 = vld [vmem:[%s9413_s2] ss:$0 sm:$0xff]  ;;  %v69_v4 = vld [vmem:[#allocation3 + $0x78] sm:$0xff] }
  0x23   :  { %4597 = vmatmul.msk.f32.gmra.mxu3 %vm188_vm1, %v152_v12  ;;  %4565 = vmatmul.msk.f32.gmra.mxu2 %vm188_vm1, %v120_v13  ;;  %v5477_v3 = vld [vmem:[%s9414_s3] ss:$0 sm:$0xff]  ;;  %v101_v5 = vld [vmem:[#allocation3 + $0x178] sm:$0xff] }
  0x24   :  { %v133_v6 = vld [vmem:[#allocation3 + $0x278] sm:$0xff] }
  0x25   :  { %v165_v9 = vld [vmem:[#allocation3 + $0x378] sm:$0xff] }
  0x2a   :  { %4534 = vmatmul.msk.f32.gmra.mxu1 %vm188_vm1, %v89_v14  ;;  %4502 = vmatmul.msk.f32.gmra.mxu0 %vm188_vm1, %v57_v15 }
  0x2b   :  { %4566 = vmatmul.msk.f32.gmra.mxu2 %vm188_vm1, %v121_v16  ;;  %4598 = vmatmul.msk.f32.gmra.mxu3 %vm188_vm1, %v153_v17 }
  0x32   :  { %4535 = vmatmul.msk.f32.gmra.mxu1 %vm188_vm1, %v90_v18  ;;  %4503 = vmatmul.msk.f32.gmra.mxu0 %vm188_vm1, %v58_v19 }
  0x33   :  { %4567 = vmatmul.msk.f32.gmra.mxu2 %vm188_vm1, %v122_v20  ;;  %4599 = vmatmul.msk.f32.gmra.mxu3 %vm188_vm1, %v154_v21  ;;  %v102_v20 = vld [vmem:[#allocation3 + $0x180] sm:$0xff] }
  0x34   :  { %v134_v21 = vld [vmem:[#allocation3 + $0x280] sm:$0xff] }
  0x3a   :  { %4504 = vmatmul.msk.f32.gmra.mxu0 %vm188_vm1, %v59_v22  ;;  %4536 = vmatmul.msk.f32.gmra.mxu1 %vm188_vm1, %v91_v23  ;;  %v166_v22 = vld [vmem:[#allocation3 + $0x380] sm:$0xff] }
  0x3b   :  { %4568 = vmatmul.msk.f32.gmra.mxu2 %vm188_vm1, %v123_v24  ;;  %4600 = vmatmul.msk.f32.gmra.mxu3 %vm188_vm1, %v155_v25 }
  0x42   :  { %4505 = vmatmul.msk.f32.gmra.mxu0 %vm188_vm1, %v60_v26  ;;  %4537 = vmatmul.msk.f32.gmra.mxu1 %vm188_vm1, %v92_v27 }
  0x43   :  { %4569 = vmatmul.msk.f32.gmra.mxu2 %vm188_vm1, %v124_v28  ;;  %4601 = vmatmul.msk.f32.gmra.mxu3 %vm188_vm1, %v156_v29 }
  0x4a   :  { %4538 = vmatmul.msk.f32.gmra.mxu1 %vm188_vm1, %v93_v30  ;;  %4506 = vmatmul.msk.f32.gmra.mxu0 %vm188_vm1, %v61_v31 }
  0x4b   :  { %4570 = vmatmul.msk.f32.gmra.mxu2 %vm188_vm1, %v125_v32  ;;  %4602 = vmatmul.msk.f32.gmra.mxu3 %vm188_vm1, %v157_v33  ;;  %v70_v33 = vld [vmem:[#allocation3 + $0x80] sm:$0xff] }
  0x52   :  { %4507 = vmatmul.msk.f32.gmra.mxu0 %vm188_vm1, %v62_v34  ;;  %4539 = vmatmul.msk.f32.gmra.mxu1 %vm188_vm1, %v94_v35 }
  0x53   :  { %4571 = vmatmul.msk.f32.gmra.mxu2 %vm188_vm1, %v126_v36  ;;  %4603 = vmatmul.msk.f32.gmra.mxu3 %vm188_vm1, %v158_v37  ;;  %v135_v37 = vld [vmem:[#allocation3 + $0x288] sm:$0xff] }
  0x5a   :  { %4508 = vmatmul.msk.f32.gmra.mxu0 %vm188_vm1, %v63_v38  ;;  %4540 = vmatmul.msk.f32.gmra.mxu1 %vm188_vm1, %v95_v39 }
  0x5b   :  { %4572 = vmatmul.msk.f32.gmra.mxu2 %vm188_vm1, %v127_v40  ;;  %4604 = vmatmul.msk.f32.gmra.mxu3 %vm188_vm1, %v159_v41 }
  0x62   :  { %4541 = vmatmul.msk.f32.gmra.mxu1 %vm188_vm1, %v96_v42  ;;  %4509 = vmatmul.msk.f32.gmra.mxu0 %vm188_vm1, %v64_v43 }
  0x63   :  { %4573 = vmatmul.msk.f32.gmra.mxu2 %vm188_vm1, %v128_v44  ;;  %4605 = vmatmul.msk.f32.gmra.mxu3 %vm188_vm1, %v160_v45  ;;  %v71_v45 = vld [vmem:[#allocation3 + $0x88] sm:$0xff] }
  0x6a   :  { %4510 = vmatmul.msk.f32.gmra.mxu0 %vm188_vm1, %v65_v46  ;;  %4542 = vmatmul.msk.f32.gmra.mxu1 %vm188_vm1, %v97_v47  ;;  %v103_v46 = vld [vmem:[#allocation3 + $0x188] sm:$0xff] }
  0x6b   :  { %4574 = vmatmul.msk.f32.gmra.mxu2 %vm188_vm1, %v129_v48  ;;  %4606 = vmatmul.msk.f32.gmra.mxu3 %vm188_vm1, %v161_v49  ;;  %v167_v49 = vld [vmem:[#allocation3 + $0x388] sm:$0xff] }
  0x72   :  { %4511 = vmatmul.msk.f32.gmra.mxu0 %vm188_vm1, %v66_v51  ;;  %4543 = vmatmul.msk.f32.gmra.mxu1 %vm188_vm1, %v98_v52  ;;  %v136_v51 = vld [vmem:[#allocation3 + $0x290] sm:$0xff] }
  0x73   :  { %4575 = vmatmul.msk.f32.gmra.mxu2 %vm188_vm1, %v130_v50  ;;  %4607 = vmatmul.msk.f32.gmra.mxu3 %vm188_vm1, %v162_v53 }
  0x7a   :  { %4544 = vmatmul.msk.f32.gmra.mxu1 %vm188_vm1, %v99_v55  ;;  %4512 = vmatmul.msk.f32.gmra.mxu0 %vm188_vm1, %v67_v58 }
  0x7b   :  { %4576 = vmatmul.msk.f32.gmra.mxu2 %vm188_vm1, %v131_v54  ;;  %4608 = vmatmul.msk.f32.gmra.mxu3 %vm188_vm1, %v163_v56 }
  0x82   :  { %4513 = vmatmul.msk.f32.gmra.mxu0 %vm188_vm1, %v68_v60  ;;  %4545 = vmatmul.msk.f32.gmra.mxu1 %vm188_vm1, %v100_v61 }
  0x83   :  { %4577 = vmatmul.msk.f32.gmra.mxu2 %vm188_vm1, %v132_v57  ;;  %4609 = vmatmul.msk.f32.gmra.mxu3 %vm188_vm1, %v164_v59 }
  0x8a   :  { %4514 = vmatmul.msk.f32.gmra.mxu0 %vm188_vm1, %v69_v4  ;;  %4546 = vmatmul.msk.f32.gmra.mxu1 %vm188_vm1, %v101_v5  ;;  %v168_v5 = vld [vmem:[#allocation3 + $0x390] sm:$0xff] }
  0x8b   :  { %4578 = vmatmul.msk.f32.gmra.mxu2 %vm188_vm1, %v133_v6  ;;  %4610 = vmatmul.msk.f32.gmra.mxu3 %vm188_vm1, %v165_v9 }
  0x8f   :  { %v594_v63 = vpop.f32.mrf.mxu0  ;;  %v690_v0 = vpop.f32.mrf.mxu1 }
  0x90   :  { %v595_v1 = vadd.f32 %v5470_v62, %v594_v63  ;;  %v691_v2 = vadd.f32 %v5470_v62, %v690_v0 }
  0x92   :  { %v1010_v7 = vmax.f32 %v691_v2, 0.0  ;;  %v978_v8 = vmax.f32 %v595_v1, 0.0  ;;  %4547 = vmatmul.msk.f32.gmra.mxu1 %vm188_vm1, %v102_v20  ;;  %4515 = vmatmul.msk.f32.gmra.mxu0 %vm188_vm1, %v70_v33  ;;  %v104_v1 = vld [vmem:[#allocation3 + $0x190] sm:$0xff]  ;;  %v169_v20 = vld [vmem:[#allocation3 + $0x398] sm:$0xff] }
  0x93   :  { %4579 = vmatmul.msk.f32.gmra.mxu2 %vm188_vm1, %v134_v21  ;;  %4611 = vmatmul.msk.f32.gmra.mxu3 %vm188_vm1, %v166_v22  ;;  %v72_v2 = vld [vmem:[#allocation3 + $0x90] sm:$0xff] }
  0x94   :  { %v1142_v10 = vmul.f32 %v5477_v3, %v1010_v7  ;;  %v1110_v11 = vmul.f32 %v5477_v3, %v978_v8  ;;  %v137_v7 = vld [vmem:[#allocation3 + $0x298] sm:$0xff] }
  0x96   :  { %v786_v12 = vpop.f32.mrf.mxu2  ;;  %v882_v13 = vpop.f32.mrf.mxu3  ;;  %1302 = vadd.xlane.f32.xlu2 %v1142_v10  ;;  %1238 = vadd.xlane.f32.xlu0 %v1110_v11 }
  0x97   :  { %v787_v14 = vadd.f32 %v5470_v62, %v786_v12  ;;  %v883_v15 = vadd.f32 %v5470_v62, %v882_v13  ;;  %v597_v16 = vpop.f32.mrf.mxu0  ;;  %v693_v17 = vpop.f32.mrf.mxu1 }
  0x98   :  { %v598_v24 = vadd.f32 %v5470_v62, %v597_v16  ;;  %v694_v40 = vadd.f32 %v5470_v62, %v693_v17 }
  0x99   :  { %v1074_v18 = vmax.f32 %v883_v15, 0.0  ;;  %v1042_v19 = vmax.f32 %v787_v14, 0.0 }
  0x9a   :  { %v979_v32 = vmax.f32 %v598_v24, 0.0  ;;  %4548 = vmatmul.msk.f32.gmra.mxu1 %vm188_vm1, %v103_v46  ;;  %v1011_v50 = vmax.f32 %v694_v40, 0.0  ;;  %4516 = vmatmul.msk.f32.gmra.mxu0 %vm188_vm1, %v71_v45 }
  0x9b   :  { %v1174_v23 = vmul.f32 %v5477_v3, %v1042_v19  ;;  %v1206_v25 = vmul.f32 %v5477_v3, %v1074_v18  ;;  %4580 = vmatmul.msk.f32.gmra.mxu2 %vm188_vm1, %v135_v37  ;;  %4612 = vmatmul.msk.f32.gmra.mxu3 %vm188_vm1, %v167_v49  ;;  %v139_v49 = vld [vmem:[#allocation3 + $0x2a8] sm:$0xff] }
  0x9c   :  { %v1111_v41 = vmul.f32 %v5477_v3, %v979_v32  ;;  %v1143_v59 = vmul.f32 %v5477_v3, %v1011_v50  ;;  %v138_v32 = vld [vmem:[#allocation3 + $0x2a0] sm:$0xff] }
  0x9d   :  { %1366 = vadd.xlane.f32.xlu1 %v1174_v23 }
  0x9e   :  { %v789_v26 = vpop.f32.mrf.mxu2  ;;  %v885_v27 = vpop.f32.mrf.mxu3  ;;  %1430 = vadd.xlane.f32.xlu0 %v1206_v25 }
  0x9f   :  { %v790_v28 = vadd.f32 %v5470_v62, %v789_v26  ;;  %v886_v29 = vadd.f32 %v5470_v62, %v885_v27  ;;  %v600_v30 = vpop.f32.mrf.mxu0  ;;  %v696_v31 = vpop.f32.mrf.mxu1 }
  0xa0   :  { %v601_v36 = vadd.f32 %v5470_v62, %v600_v30  ;;  %v697_v52 = vadd.f32 %v5470_v62, %v696_v31  ;;  %v73_v30 = vld [vmem:[#allocation3 + $0x98] sm:$0xff] }
  0xa1   :  { %v1043_v34 = vmax.f32 %v790_v28, 0.0  ;;  %v1075_v35 = vmax.f32 %v886_v29, 0.0  ;;  %v105_v31 = vld [vmem:[#allocation3 + $0x198] sm:$0xff] }
  0xa2   :  { %v980_v42 = vmax.f32 %v601_v36, 0.0  ;;  %v1012_v60 = vmax.f32 %v697_v52, 0.0  ;;  %4549 = vmatmul.msk.f32.gmra.mxu1 %vm188_vm1, %v104_v1  ;;  %4517 = vmatmul.msk.f32.gmra.mxu0 %vm188_vm1, %v72_v2  ;;  %v170_v52 = vld [vmem:[#allocation3 + $0x3a0] sm:$0xff]  ;;  %v107_v1 = vld [vmem:[#allocation3 + $0x1a8] sm:$0xff] }
  0xa3   :  { %v1207_v38 = vmul.f32 %v5477_v3, %v1075_v35  ;;  %v1175_v39 = vmul.f32 %v5477_v3, %v1043_v34  ;;  %4581 = vmatmul.msk.f32.gmra.mxu2 %vm188_vm1, %v136_v51  ;;  %4613 = vmatmul.msk.f32.gmra.mxu3 %vm188_vm1, %v168_v5  ;;  %v75_v2 = vld [vmem:[#allocation3 + $0xa8] sm:$0xff] }
  0xa4   :  { %v1112_v54 = vmul.f32 %v5477_v3, %v980_v42  ;;  %v1144_v9 = vmul.f32 %v5477_v3, %v1012_v60 }
  0xa5   :  { %1432 = vadd.xlane.f32.xlu1 %v1207_v38  ;;  %1368 = vadd.xlane.f32.xlu2 %v1175_v39 }
  0xa6   :  { %v888_v43 = vpop.f32.mrf.mxu3  ;;  %1240 = vadd.xlane.f32.xlu0 %v1111_v41  ;;  %v792_v44 = vpop.f32.mrf.mxu2 }
  0xa7   :  { %v889_v47 = vadd.f32 %v5470_v62, %v888_v43  ;;  %v699_v48 = vpop.f32.mrf.mxu1  ;;  %v603_v57 = vpop.f32.mrf.mxu0  ;;  %v793_v58 = vadd.f32 %v5470_v62, %v792_v44 }
  0xa8   :  { %v700_v55 = vadd.f32 %v5470_v62, %v699_v48  ;;  %v604_v10 = vadd.f32 %v5470_v62, %v603_v57  ;;  %v106_v48 = vld [vmem:[#allocation3 + $0x1a0] sm:$0xff] }
  0xa9   :  { %v1076_v53 = vmax.f32 %v889_v47, 0.0  ;;  %v1044_v6 = vmax.f32 %v793_v58, 0.0  ;;  %v74_v47 = vld [vmem:[#allocation3 + $0xa0] sm:$0xff] }
  0xaa   :  { %v1013_v61 = vmax.f32 %v700_v55, 0.0  ;;  %v981_v14 = vmax.f32 %v604_v10, 0.0  ;;  %4518 = vmatmul.msk.f32.gmra.mxu0 %vm188_vm1, %v73_v30  ;;  %4550 = vmatmul.msk.f32.gmra.mxu1 %vm188_vm1, %v105_v31  ;;  %v76_v31 = vld [vmem:[#allocation3 + $0xb0] sm:$0xff] }
  0xab   :  { %v1208_v56 = vmul.f32 %v5477_v3, %v1076_v53  ;;  %4582 = vmatmul.msk.f32.gmra.mxu2 %vm188_vm1, %v137_v7  ;;  %v1176_v13 = vmul.f32 %v5477_v3, %v1044_v6  ;;  %4614 = vmatmul.msk.f32.gmra.mxu3 %vm188_vm1, %v169_v20  ;;  %v171_v6 = vld [vmem:[#allocation3 + $0x3a8] sm:$0xff] }
  0xac   :  { %v1145_v8 = vmul.f32 %v5477_v3, %v1013_v61  ;;  %v1113_v22 = vmul.f32 %v5477_v3, %v981_v14 }
  0xad   :  { %1434 = vadd.xlane.f32.xlu2 %v1208_v56  ;;  %1242 = vadd.xlane.f32.xlu1 %v1112_v54 }
  0xae   :  { %1304 = vadd.xlane.f32.xlu0 %v1143_v59  ;;  %v795_v63 = vpop.f32.mrf.mxu2  ;;  %v891_v0 = vpop.f32.mrf.mxu3 }
  0xaf   :  { %v702_v4 = vpop.f32.mrf.mxu1  ;;  %v892_v11 = vadd.f32 %v5470_v62, %v891_v0  ;;  %v606_v16 = vpop.f32.mrf.mxu0  ;;  %v796_v25 = vadd.f32 %v5470_v62, %v795_v63 }
  0xb0   :  { %v703_v12 = vadd.f32 %v5470_v62, %v702_v4  ;;  %v607_v23 = vadd.f32 %v5470_v62, %v606_v16  ;;  %v140_v4 = vld [vmem:[#allocation3 + $0x2b0] sm:$0xff] }
  0xb1   :  { %v1077_v15 = vmax.f32 %v892_v11, 0.0  ;;  %v1045_v33 = vmax.f32 %v796_v25, 0.0 }
  0xb2   :  { %v1014_v17 = vmax.f32 %v703_v12, 0.0  ;;  %v982_v27 = vmax.f32 %v607_v23, 0.0  ;;  %4519 = vmatmul.msk.f32.gmra.mxu0 %vm188_vm1, %v74_v47  ;;  %4551 = vmatmul.msk.f32.gmra.mxu1 %vm188_vm1, %v106_v48 }
  0xb3   :  { %v1209_v21 = vmul.f32 %v5477_v3, %v1077_v15  ;;  %4583 = vmatmul.msk.f32.gmra.mxu2 %vm188_vm1, %v138_v32  ;;  %v1177_v41 = vmul.f32 %v5477_v3, %v1045_v33  ;;  %4615 = vmatmul.msk.f32.gmra.mxu3 %vm188_vm1, %v170_v52  ;;  %v108_v32 = vld [vmem:[#allocation3 + $0x1b0] sm:$0xff]  ;;  %v141_v33 = vld [vmem:[#allocation3 + $0x2b8] sm:$0xff] }
  0xb4   :  { %v1146_v24 = vmul.f32 %v5477_v3, %v1014_v17  ;;  %v1114_v38 = vmul.f32 %v5477_v3, %v982_v27 }
  0xb5   :  { %1308 = vadd.xlane.f32.xlu2 %v1145_v8  ;;  %1306 = vadd.xlane.f32.xlu1 %v1144_v9 }
  0xb6   :  { %1370 = vadd.xlane.f32.xlu0 %v1176_v13  ;;  %v798_v18 = vpop.f32.mrf.mxu2  ;;  %v894_v19 = vpop.f32.mrf.mxu3 }
  0xb7   :  { %v705_v26 = vpop.f32.mrf.mxu1  ;;  %v609_v28 = vpop.f32.mrf.mxu0  ;;  %v895_v37 = vadd.f32 %v5470_v62, %v894_v19  ;;  %v799_v40 = vadd.f32 %v5470_v62, %v798_v18  ;;  %v172_v18 = vld [vmem:[#allocation3 + $0x3b0] sm:$0xff] }
  0xb8   :  { %v610_v53 = vadd.f32 %v5470_v62, %v609_v28  ;;  %v706_v54 = vadd.f32 %v5470_v62, %v705_v26 }
  0xb9   :  { %v1078_v43 = vmax.f32 %v895_v37, 0.0  ;;  %v1046_v50 = vmax.f32 %v799_v40, 0.0 }
  0xba   :  { %v983_v60 = vmax.f32 %v610_v53, 0.0  ;;  %v1015_v61 = vmax.f32 %v706_v54, 0.0  ;;  %4552 = vmatmul.msk.f32.gmra.mxu1 %vm188_vm1, %v107_v1  ;;  %4520 = vmatmul.msk.f32.gmra.mxu0 %vm188_vm1, %v75_v2  ;;  %v142_v54 = vld [vmem:[#allocation3 + $0x2c0] sm:$0xff] }
  0xbb   :  { %4584 = vmatmul.msk.f32.gmra.mxu2 %vm188_vm1, %v139_v49  ;;  %v1210_v55 = vmul.f32 %v5477_v3, %v1078_v43  ;;  %v1178_v58 = vmul.f32 %v5477_v3, %v1046_v50  ;;  %4616 = vmatmul.msk.f32.gmra.mxu3 %vm188_vm1, %v171_v6 }
  0xbc   :  { %v1115_v9 = vmul.f32 %v5477_v3, %v983_v60  ;;  %v1147_v10 = vmul.f32 %v5477_v3, %v1015_v61 }
  0xbd   :  { %1436 = vadd.xlane.f32.xlu2 %v1209_v21  ;;  %1244 = vadd.xlane.f32.xlu1 %v1113_v22 }
  0xbe   :  { %1310 = vadd.xlane.f32.xlu0 %v1146_v24  ;;  %v801_v29 = vpop.f32.mrf.mxu2  ;;  %v897_v35 = vpop.f32.mrf.mxu3 }
  0xbf   :  { %v802_v34 = vadd.f32 %v5470_v62, %v801_v29  ;;  %v898_v39 = vadd.f32 %v5470_v62, %v897_v35  ;;  %v708_v44 = vpop.f32.mrf.mxu1  ;;  %v612_v51 = vpop.f32.mrf.mxu0 }
  0xc0   :  { %v613_v57 = vadd.f32 %v5470_v62, %v612_v51  ;;  %v709_v7 = vadd.f32 %v5470_v62, %v708_v44 }
  0xc1   :  { %v1047_v36 = vmax.f32 %v802_v34, 0.0  ;;  %v1079_v45 = vmax.f32 %v898_v39, 0.0 }
  0xc2   :  { %v984_v63 = vmax.f32 %v613_v57, 0.0  ;;  %v1016_v13 = vmax.f32 %v709_v7, 0.0  ;;  %4521 = vmatmul.msk.f32.gmra.mxu0 %vm188_vm1, %v76_v31  ;;  %4553 = vmatmul.msk.f32.gmra.mxu1 %vm188_vm1, %v108_v32 }
  0xc3   :  { %v1179_v42 = vmul.f32 %v5477_v3, %v1047_v36  ;;  %v1211_v56 = vmul.f32 %v5477_v3, %v1079_v45  ;;  %4585 = vmatmul.msk.f32.gmra.mxu2 %vm188_vm1, %v140_v4  ;;  %4617 = vmatmul.msk.f32.gmra.mxu3 %vm188_vm1, %v172_v18  ;;  %v77_v45 = vld [vmem:[#allocation3 + $0xb8] sm:$0xff] }
  0xc4   :  { %v1116_v11 = vmul.f32 %v5477_v3, %v984_v63  ;;  %v1148_v21 = vmul.f32 %v5477_v3, %v1016_v13 }
  0xc5   :  { %1246 = vadd.xlane.f32.xlu2 %v1114_v38  ;;  %1372 = vadd.xlane.f32.xlu1 %v1177_v41 }
  0xc6   :  { %1376 = vadd.xlane.f32.xlu0 %v1179_v42  ;;  %v804_v46 = vpop.f32.mrf.mxu2  ;;  %v900_v59 = vpop.f32.mrf.mxu3 }
  0xc7   :  { %v711_v5 = vpop.f32.mrf.mxu1  ;;  %v805_v8 = vadd.f32 %v5470_v62, %v804_v46  ;;  %v615_v15 = vpop.f32.mrf.mxu0  ;;  %v901_v20 = vadd.f32 %v5470_v62, %v900_v59  ;;  %v109_v46 = vld [vmem:[#allocation3 + $0x1b8] sm:$0xff] }
  0xc8   :  { %v712_v12 = vadd.f32 %v5470_v62, %v711_v5  ;;  %v616_v23 = vadd.f32 %v5470_v62, %v615_v15  ;;  %v110_v5 = vld [vmem:[#allocation3 + $0x1c0] sm:$0xff] }
  0xc9   :  { %v1048_v14 = vmax.f32 %v805_v8, 0.0  ;;  %v1080_v27 = vmax.f32 %v901_v20, 0.0  ;;  %v78_v8 = vld [vmem:[#allocation3 + $0xc0] sm:$0xff] }
  0xca   :  { %v1017_v17 = vmax.f32 %v712_v12, 0.0  ;;  %v985_v28 = vmax.f32 %v616_v23, 0.0  ;;  %4522 = vmatmul.msk.f32.gmra.mxu0 %vm188_vm1, %v77_v45  ;;  %4554 = vmatmul.msk.f32.gmra.mxu1 %vm188_vm1, %v109_v46 }
  0xcb   :  { %v1180_v22 = vmul.f32 %v5477_v3, %v1048_v14  ;;  %4586 = vmatmul.msk.f32.gmra.mxu2 %vm188_vm1, %v141_v33  ;;  %v1212_v36 = vmul.f32 %v5477_v3, %v1080_v27 }
  0xcc   :  { %v1149_v24 = vmul.f32 %v5477_v3, %v1017_v17  ;;  %v1117_v37 = vmul.f32 %v5477_v3, %v985_v28 }
  0xcd   :  { %1374 = vadd.xlane.f32.xlu2 %v1178_v58  ;;  %1438 = vadd.xlane.f32.xlu1 %v1210_v55  ;;  %v173_v55 = vld [vmem:[#allocation3 + $0x3b8] sm:$0xff] }
  0xce   :  { %1440 = vadd.xlane.f32.xlu0 %v1211_v56  ;;  %v807_v0 = vpop.f32.mrf.mxu2  ;;  %v903_v16 = vpop.f32.mrf.mxu3  ;;  %4618 = vmatmul.msk.f32.gmra.mxu3 %vm188_vm1, %v173_v55 }
  0xcf   :  { %v714_v26 = vpop.f32.mrf.mxu1  ;;  %v618_v29 = vpop.f32.mrf.mxu0  ;;  %v904_v35 = vadd.f32 %v5470_v62, %v903_v16  ;;  %v808_v41 = vadd.f32 %v5470_v62, %v807_v0 }
  0xd0   :  { %v619_v49 = vadd.f32 %v5470_v62, %v618_v29  ;;  %v715_v50 = vadd.f32 %v5470_v62, %v714_v26 }
  0xd1   :  { %v1081_v42 = vmax.f32 %v904_v35, 0.0  ;;  %v1049_v47 = vmax.f32 %v808_v41, 0.0  ;;  %v175_v35 = vld [vmem:[#allocation3 + $0x3c8] sm:$0xff]  ;;  %v5611_v41 = vstv %s9415_s4 }
  0xd2   :  { %v986_v59 = vmax.f32 %v619_v49, 0.0  ;;  %v1018_v60 = vmax.f32 %v715_v50, 0.0  ;;  %4555 = vmatmul.msk.f32.gmra.mxu1 %vm188_vm1, %v110_v5  ;;  %4523 = vmatmul.msk.f32.gmra.mxu0 %vm188_vm1, %v78_v8 }
  0xd3   :  { %v1213_v51 = vmul.f32 %v5477_v3, %v1081_v42  ;;  %v1181_v56 = vmul.f32 %v5477_v3, %v1049_v47  ;;  %4587 = vmatmul.msk.f32.gmra.mxu2 %vm188_vm1, %v142_v54 }
  0xd4   :  { %v1118_v2 = vmul.f32 %v5477_v3, %v986_v59  ;;  %v1150_v4 = vmul.f32 %v5477_v3, %v1018_v60 }
  0xd5   :  { %1248 = vadd.xlane.f32.xlu2 %v1115_v9  ;;  %1312 = vadd.xlane.f32.xlu1 %v1147_v10  ;;  %v143_v9 = vld [vmem:[#allocation3 + $0x2c8] sm:$0xff]  ;;  %v174_v10 = vld [vmem:[#allocation3 + $0x3c0] sm:$0xff] }
  0xd6   :  { %1250 = vadd.xlane.f32.xlu0 %v1116_v11  ;;  %v810_v19 = vpop.f32.mrf.mxu2  ;;  %v906_v34 = vpop.f32.mrf.mxu3  ;;  %4619 = vmatmul.msk.f32.gmra.mxu3 %vm188_vm1, %v174_v10 }
  0xd7   :  { %v811_v25 = vadd.f32 %v5470_v62, %v810_v19  ;;  %v907_v39 = vadd.f32 %v5470_v62, %v906_v34  ;;  %v717_v43 = vpop.f32.mrf.mxu1  ;;  %v621_v48 = vpop.f32.mrf.mxu0 }
  0xd8   :  { %v622_v53 = vadd.f32 %v5470_v62, %v621_v48  ;;  %v718_v0 = vadd.f32 %v5470_v62, %v717_v43 }
  0xd9   :  { %v1050_v30 = vmax.f32 %v811_v25, 0.0  ;;  %v1082_v44 = vmax.f32 %v907_v39, 0.0 }
  0xda   :  { %v987_v61 = vmax.f32 %v622_v53, 0.0  ;;  %v1019_v11 = vmax.f32 %v718_v0, 0.0 }
  0xdb   :  { %v1182_v38 = vmul.f32 %v5477_v3, %v1050_v30  ;;  %v1214_v52 = vmul.f32 %v5477_v3, %v1082_v44  ;;  %4588 = vmatmul.msk.f32.gmra.mxu2 %vm188_vm1, %v143_v9 }
  0xdc   :  { %v1119_v6 = vmul.f32 %v5477_v3, %v987_v61  ;;  %v1151_v18 = vmul.f32 %v5477_v3, %v1019_v11  ;;  %v79_v61 = vld [vmem:[#allocation3 + $0xc8] sm:$0xff] }
  0xdd   :  { %1314 = vadd.xlane.f32.xlu2 %v1148_v21  ;;  %1378 = vadd.xlane.f32.xlu1 %v1180_v22 }
  0xde   :  { %1316 = vadd.xlane.f32.xlu0 %v1149_v24  ;;  %v813_v40 = vpop.f32.mrf.mxu2  ;;  %v909_v57 = vpop.f32.mrf.mxu3  ;;  %4620 = vmatmul.msk.f32.gmra.mxu3 %vm188_vm1, %v175_v35 }
  0xdf   :  { %v720_v63 = vpop.f32.mrf.mxu1  ;;  %v814_v1 = vadd.f32 %v5470_v62, %v813_v40  ;;  %v624_v13 = vpop.f32.mrf.mxu0  ;;  %v910_v17 = vadd.f32 %v5470_v62, %v909_v57  ;;  %4524 = vmatmul.msk.f32.gmra.mxu0 %vm188_vm1, %v79_v61 }
  0xe0   :  { %v721_v7 = vadd.f32 %v5470_v62, %v720_v63  ;;  %v625_v20 = vadd.f32 %v5470_v62, %v624_v13  ;;  %v111_v63 = vld [vmem:[#allocation3 + $0x1c8] sm:$0xff]  ;;  %v4184_v13 = vlaneseq }
  0xe1   :  { %v1051_v12 = vmax.f32 %v814_v1, 0.0  ;;  %v1083_v24 = vmax.f32 %v910_v17, 0.0  ;;  %4556 = vmatmul.msk.f32.gmra.mxu1 %vm188_vm1, %v111_v63 }
  0xe2   :  { %v1020_v15 = vmax.f32 %v721_v7, 0.0  ;;  %v988_v25 = vmax.f32 %v625_v20, 0.0 }
  0xe3   :  { %v1183_v19 = vmul.f32 %v5477_v3, %v1051_v12  ;;  %v1215_v31 = vmul.f32 %v5477_v3, %v1083_v24  ;;  %v144_v12 = vld [vmem:[#allocation3 + $0x2d0] sm:$0xff] }
  0xe4   :  { %v1152_v21 = vmul.f32 %v5477_v3, %v1020_v15  ;;  %v1120_v32 = vmul.f32 %v5477_v3, %v988_v25  ;;  %4589 = vmatmul.msk.f32.gmra.mxu2 %vm188_vm1, %v144_v12 }
  0xe5   :  { %1442 = vadd.xlane.f32.xlu2 %v1212_v36  ;;  %1252 = vadd.xlane.f32.xlu1 %v1117_v37 }
  0xe6   :  { %1382 = vadd.xlane.f32.xlu0 %v1182_v38  ;;  %v816_v58 = vpop.f32.mrf.mxu2  ;;  %v912_v14 = vpop.f32.mrf.mxu3 }
  0xe7   :  { %v723_v23 = vpop.f32.mrf.mxu1  ;;  %v627_v26 = vpop.f32.mrf.mxu0  ;;  %v913_v30 = vadd.f32 %v5470_v62, %v912_v14  ;;  %v817_v36 = vadd.f32 %v5470_v62, %v816_v58 }
  0xe8   :  { %v628_v43 = vadd.f32 %v5470_v62, %v627_v26  ;;  %v724_v46 = vadd.f32 %v5470_v62, %v723_v23 }
  0xe9   :  { %v1084_v38 = vmax.f32 %v913_v30, 0.0  ;;  %v1052_v40 = vmax.f32 %v817_v36, 0.0 }
  0xea   :  { %v989_v55 = vmax.f32 %v628_v43, 0.0  ;;  %v1021_v58 = vmax.f32 %v724_v46, 0.0 }
  0xeb   :  { %v1216_v49 = vmul.f32 %v5477_v3, %v1084_v38  ;;  %v1184_v54 = vmul.f32 %v5477_v3, %v1052_v40 }
  0xec   :  { %v1153_v7 = vmul.f32 %v5477_v3, %v1021_v58 }
  0xed   :  { %1380 = vadd.xlane.f32.xlu2 %v1181_v56  ;;  %1444 = vadd.xlane.f32.xlu1 %v1213_v51 }
  0xee   :  { %1446 = vadd.xlane.f32.xlu0 %v1214_v52  ;;  %v819_v16 = vpop.f32.mrf.mxu2  ;;  %v915_v29 = vpop.f32.mrf.mxu3 }
  0xef   :  { %v820_v22 = vadd.f32 %v5470_v62, %v819_v16  ;;  %v916_v34 = vadd.f32 %v5470_v62, %v915_v29  ;;  %v726_v37 = vpop.f32.mrf.mxu1  ;;  %v630_v42 = vpop.f32.mrf.mxu0 }
  0xf0   :  { %v631_v53 = vadd.f32 %v5470_v62, %v630_v42  ;;  %v727_v5 = vadd.f32 %v5470_v62, %v726_v37 }
  0xf1   :  { %v1053_v27 = vmax.f32 %v820_v22, 0.0  ;;  %v1085_v39 = vmax.f32 %v916_v34, 0.0  ;;  %v5647_v34 = vand.u32 127, %v4184_v13 }
  0xf2   :  { %v990_v59 = vmax.f32 %v631_v53, 0.0  ;;  %v1022_v24 = vmax.f32 %v727_v5, 0.0 }
  0xf3   :  { %v1185_v33 = vmul.f32 %v5477_v3, %v1053_v27  ;;  %v1217_v52 = vmul.f32 %v5477_v3, %v1085_v39 }
  0xf4   :  { %v1122_v11 = vmul.f32 %v5477_v3, %v990_v59  ;;  %v1154_v37 = vmul.f32 %v5477_v3, %v1022_v24 }
  0xf5   :  { %1254 = vadd.xlane.f32.xlu2 %v1118_v2  ;;  %1318 = vadd.xlane.f32.xlu1 %v1150_v4  ;;  %v1121_v2 = vmul.f32 %v5477_v3, %v989_v55 }
  0xf6   :  { %1256 = vadd.xlane.f32.xlu0 %v1119_v6  ;;  %v822_v28 = vpop.f32.mrf.mxu2  ;;  %v918_v45 = vpop.f32.mrf.mxu3 }
  0xf7   :  { %v729_v60 = vpop.f32.mrf.mxu1  ;;  %v823_v0 = vadd.f32 %v5470_v62, %v822_v28  ;;  %v633_v9 = vpop.f32.mrf.mxu0  ;;  %v919_v20 = vadd.f32 %v5470_v62, %v918_v45  ;;  %v5656_v45 = vadd.s32 4294967288, %v5647_v34 }
  0xf8   :  { %v730_v8 = vadd.f32 %v5470_v62, %v729_v60 }
  0xf9   :  { %v1086_v30 = vmax.f32 %v919_v20, 0.0 }
  0xfa   :  { %v1023_v25 = vmax.f32 %v730_v8, 0.0 }
  0xfc   :  { %v1155_v42 = vmul.f32 %v5477_v3, %v1023_v25 }
  0xfd   :  { %1320 = vadd.xlane.f32.xlu2 %v1151_v18  ;;  %1384 = vadd.xlane.f32.xlu1 %v1183_v19  ;;  %v1054_v18 = vmax.f32 %v823_v0, 0.0 }
  0xfe   :  { %1322 = vadd.xlane.f32.xlu0 %v1152_v21  ;;  %v825_v44 = vpop.f32.mrf.mxu2  ;;  %v921_v16 = vpop.f32.mrf.mxu3  ;;  %v634_v21 = vadd.f32 %v5470_v62, %v633_v9 }
  0xff   :  { %v5639_v27 = vadd.f32 %v5470_v62, %v825_v44  ;;  %v5644_v29 = vadd.f32 %v5470_v62, %v921_v16  ;;  %v1186_v38 = vmul.f32 %v5477_v3, %v1054_v18 }
 0x101   :  { %v1055_v39 = vmax.f32 %v5639_v27, 0.0 }
 0x105   :  { %1448 = vadd.xlane.f32.xlu2 %v1215_v31  ;;  %1258 = vadd.xlane.f32.xlu1 %v1120_v32 }
 0x106   :  { %1388 = vadd.xlane.f32.xlu0 %v1185_v33  ;;  %v828_v15 = vpop.f32.mrf.mxu2  ;;  %v991_v33 = vmax.f32 %v634_v21, 0.0  ;;  %v924_v60 = vpop.f32.mrf.mxu3 }
 0x107   :  { %v829_v28 = vadd.f32 %v5470_v62, %v828_v15  ;;  %v5686_v9 = vadd.f32 %v5470_v62, %v924_v60 }
 0x108   :  { %v1123_v55 = vmul.f32 %v5477_v3, %v991_v33 }
 0x109   :  { %v1303_v47 = vpop.xlane.xlu2 %1302  ;;  %v1239_v48 = vpop.xlane.xlu0 %1238  ;;  %v1056_v43 = vmax.f32 %v829_v28, 0.0  ;;  %v1088_v25 = vmax.f32 %v5686_v9, 0.0 }
 0x10a   :  { %v1528_v50 = vadd.f32 %v5611_v41, %v1303_v47  ;;  %v1496_v51 = vadd.f32 %v5611_v41, %v1239_v48  ;;  %v1087_v48 = vmax.f32 %v5644_v29, 0.0 }
 0x10c   :  { %v4659_v56 = vmul.f32 -1.442695, %v1528_v50  ;;  %v4627_v57 = vmul.f32 -1.442695, %v1496_v51  ;;  %v112_v50 = vld [vmem:[#allocation3 + $0x1d0] sm:$0xff] }
 0x10d   :  { %1386 = vadd.xlane.f32.xlu2 %v1184_v54  ;;  %1450 = vadd.xlane.f32.xlu1 %v1216_v49  ;;  %v80_v49 = vld [vmem:[#allocation3 + $0xd0] sm:$0xff]  ;;  %v1218_v54 = vmul.f32 %v5477_v3, %v1086_v30 }
 0x10e   :  { %4768 = vpow2.f32 %v4659_v56  ;;  %1452 = vadd.xlane.f32.xlu0 %v1217_v52  ;;  %4525 = vmatmul.msk.f32.gmra.mxu0 %vm188_vm1, %v80_v49 }
 0x10f   :  { %4770 = vpow2.f32 %v4627_v57  ;;  %4557 = vmatmul.msk.f32.gmra.mxu1 %vm188_vm1, %v112_v50 }
 0x110   :  { %v1367_v1 = vpop.xlane.xlu1 %1366 }
 0x111   :  { %v1560_v4 = vadd.f32 %v5611_v41, %v1367_v1  ;;  %v1431_v6 = vpop.xlane.xlu0 %1430  ;;  %v1188_v1 = vmul.f32 %v5477_v3, %v1056_v43  ;;  %v5835_v43 = vld [vmem:[%s9413_s2] ss:$0 sm:$0xff] }
 0x112   :  { %v1592_v10 = vadd.f32 %v5611_v41, %v1431_v6  ;;  %v145_v6 = vld [vmem:[#allocation3 + $0x2d8] sm:$0xff] }
 0x113   :  { %v4691_v14 = vmul.f32 -1.442695, %v1560_v4  ;;  %4590 = vmatmul.msk.f32.gmra.mxu2 %vm188_vm1, %v145_v6 }
 0x114   :  { %v4769_v17 = vpop.eup %4768  ;;  %v4723_v19 = vmul.f32 -1.442695, %v1592_v10 }
 0x115   :  { %v4771_v22 = vpop.eup %4770  ;;  %v5634_v23 = vadd.f32 1.0, %v4769_v17  ;;  %4772 = vpow2.f32 %v4691_v14  ;;  %1260 = vadd.xlane.f32.xlu2 %v1121_v2  ;;  %1324 = vadd.xlane.f32.xlu1 %v1153_v7  ;;  %v176_v7 = vld [vmem:[#allocation3 + $0x3d0] sm:$0xff] }
 0x116   :  { %v5636_v26 = vadd.f32 1.0, %v4771_v22  ;;  %4774 = vpow2.f32 %v4723_v19  ;;  %1262 = vadd.xlane.f32.xlu0 %v1122_v11  ;;  %4621 = vmatmul.msk.f32.gmra.mxu3 %vm188_vm1, %v176_v7  ;;  %v1187_v19 = vmul.f32 %v5477_v3, %v1055_v39 }
 0x117   :  { %4776 = vrcp.f32 %v5634_v23  ;;  %v2625_v52 = vand.u32 2147483647, %v5634_v23  ;;  %v2627_v57 = vand.u32 2147483648, %v5634_v23  ;;  %vm2621_vm2 = vweird.f32 %v5634_v23 }
 0x118   :  { %4778 = vrcp.f32 %v5636_v26  ;;  %v1433_v31 = vpop.xlane.xlu1 %1432  ;;  %v1369_v32 = vpop.xlane.xlu2 %1368  ;;  %v2147_v58 = vand.u32 2147483648, %v5636_v26  ;;  %v2145_v4 = vand.u32 2147483647, %v5636_v26  ;;  %vm2141_vm3 = vweird.f32 %v5636_v26 }
 0x119   :  { %v1593_v35 = vadd.f32 %v5611_v41, %v1433_v31  ;;  %v1241_v36 = vpop.xlane.xlu0 %1240  ;;  %v1561_v40 = vadd.f32 %v5611_v41, %v1369_v32  ;;  %vm5690_vm4 = vcmp.eq.f32.partialorder %v2625_v52, 8.507059e+37  ;;  %v2628_v11 = vor.u32 1.1754944e-38, %v2627_v57 }
 0x11a   :  { %v1497_v47 = vadd.f32 %v5611_v41, %v1241_v36  ;;  %v2148_v13 = vor.u32 1.1754944e-38, %v2147_v58  ;;  %vm5698_vm6 = vcmp.eq.f32.partialorder %v2145_v4, 8.507059e+37 }
 0x11b   :  { %v4773_v44 = vpop.eup %4772  ;;  %v4724_v46 = vmul.f32 -1.442695, %v1593_v35  ;;  %v4692_v0 = vmul.f32 -1.442695, %v1561_v40 }
 0x11c   :  { %v4775_v51 = vpop.eup %4774  ;;  %v5661_v53 = vadd.f32 1.0, %v4773_v44  ;;  %v4628_v5 = vmul.f32 -1.442695, %v1497_v47 }
 0x11d   :  { %v5667_v56 = vpop.eup %4776  ;;  %v5671_v59 = vadd.f32 1.0, %v4775_v51  ;;  %4780 = vpow2.f32 %v4724_v46  ;;  %1326 = vadd.xlane.f32.xlu2 %v1154_v37  ;;  %1390 = vadd.xlane.f32.xlu1 %v1186_v38  ;;  %v5731_v38 = vadd.s32 4294967280, %v5647_v34  ;;  %v146_v37 = vld [vmem:[#allocation3 + $0x2e0] sm:$0xff] }
 0x11e   :  { %v5673_v61 = vpop.eup %4778  ;;  %v2617_v63 = vmul.f32 %v5667_v56, %v5634_v23  ;;  %4782 = vrcp.f32 %v5661_v53  ;;  %1328 = vadd.xlane.f32.xlu0 %v1155_v42  ;;  %vm2622_vm5 = vweird.f32 %v5667_v56  ;;  %v3107_v15 = vand.u32 2147483648, %v5661_v53  ;;  %4591 = vmatmul.msk.f32.gmra.mxu2 %vm188_vm1, %v146_v37 }
 0x11f   :  { %v2137_v2 = vmul.f32 %v5673_v61, %v5636_v26  ;;  %4784 = vrcp.f32 %v5671_v59  ;;  %v3585_v18 = vand.u32 2147483647, %v5671_v59  ;;  %v3587_v22 = vand.u32 2147483648, %v5671_v59  ;;  %vm5713_vm7 = vmor %vm2621_vm2, %vm2622_vm5 }
 0x120   :  { %v2618_v8 = vsub.f32 1.0, %v2617_v63  ;;  %4786 = vpow2.f32 %v4692_v0  ;;  %vm2142_vm8 = vweird.f32 %v5673_v61  ;;  %v3105_v30 = vand.u32 2147483647, %v5661_v53  ;;  %v1435_v31 = vpop.xlane.xlu2 %1434  ;;  %v1243_v32 = vpop.xlane.xlu1 %1242 }
 0x121   :  { %v2138_v12 = vsub.f32 1.0, %v2137_v2  ;;  %4788 = vpow2.f32 %v4628_v5  ;;  %vm3101_vm9 = vweird.f32 %v5661_v53  ;;  %v3108_v23 = vor.u32 1.1754944e-38, %v3107_v15  ;;  %v1305_v39 = vpop.xlane.xlu0 %1304  ;;  %vm5740_vm12 = vmor %vm2141_vm3, %vm2142_vm8 }
 0x122   :  { %v2619_v14 = vmul.f32 %v5667_v56, %v2618_v8  ;;  %vm3581_vm10 = vweird.f32 %v5671_v59  ;;  %vm5726_vm11 = vcmp.eq.f32.partialorder %v3585_v18, 8.507059e+37  ;;  %v3588_v44 = vor.u32 1.1754944e-38, %v3587_v22 }
 0x123   :  { %v4781_v62 = vpop.eup %4780  ;;  %v2139_v16 = vmul.f32 %v5673_v61, %v2138_v12  ;;  %v1594_v46 = vadd.f32 %v5611_v41, %v1435_v31  ;;  %v1498_v47 = vadd.f32 %v5611_v41, %v1243_v32  ;;  %vm5751_vm14 = vcmp.eq.f32.partialorder %v3105_v30, 8.507059e+37 }
 0x124   :  { %v5704_v20 = vpop.eup %4782  ;;  %v2620_v21 = vadd.f32 %v5667_v56, %v2619_v14  ;;  %v5708_v24 = vadd.f32 1.0, %v4781_v62  ;;  %v1529_v57 = vadd.f32 %v5611_v41, %v1305_v39  ;;  %v177_v39 = vld [vmem:[#allocation3 + $0x3d8] sm:$0xff] }
 0x125   :  { %v2140_v28 = vadd.f32 %v5673_v61, %v2139_v16  ;;  %v3097_v3 = vmul.f32 %v5704_v20, %v5661_v53  ;;  %1454 = vadd.xlane.f32.xlu2 %v1218_v54  ;;  %1264 = vadd.xlane.f32.xlu1 %v1123_v55  ;;  %v4785_v33 = vpop.eup %4784  ;;  %vm3102_vm13 = vweird.f32 %v5704_v20  ;;  %v4629_v7 = vmul.f32 -1.442695, %v1498_v47  ;;  %v636_v47 = vpop.f32.mrf.mxu0 }
 0x126   :  { %4790 = vrcp.f32 %v5708_v24  ;;  %1394 = vadd.xlane.f32.xlu0 %v1188_v1  ;;  %v3577_v36 = vmul.f32 %v4785_v33, %v5671_v59  ;;  %v4787_v40 = vpop.eup %4786  ;;  %v2624_v42 = vsel %vm5713_vm7, %v5667_v56, %v2620_v21  ;;  %v3600_v54 = vand.u32 2147483647, %v5708_v24  ;;  %vm5778_vm2 = vmor %vm3101_vm9, %vm3102_vm13  ;;  %4622 = vmatmul.msk.f32.gmra.mxu3 %vm188_vm1, %v177_v39  ;;  %v178_v39 = vld [vmem:[#allocation3 + $0x3e0] sm:$0xff] }
 0x127   :  { %v3098_v35 = vsub.f32 1.0, %v3097_v3  ;;  %v4789_v49 = vpop.eup %4788  ;;  %v2144_v50 = vsel %vm5740_vm12, %v5673_v61, %v2140_v28  ;;  %v5756_v55 = vadd.f32 1.0, %v4787_v40  ;;  %v5763_v58 = vsel %vm5690_vm4, %v2628_v11, %v2624_v42  ;;  %v732_v28 = vpop.f32.mrf.mxu1 }
 0x128   :  { %v3578_v52 = vsub.f32 1.0, %v3577_v36  ;;  %v5758_v56 = vadd.f32 1.0, %v4789_v49  ;;  %vm3582_vm15 = vweird.f32 %v4785_v33  ;;  %v5770_v0 = vsel %vm5698_vm6, %v2148_v13, %v2144_v50  ;;  %v1309_v18 = vpop.xlane.xlu2 %1308  ;;  %v81_v36 = vld [vmem:[#allocation3 + $0xd8] sm:$0xff] }
 0x129   :  { %v3099_v51 = vmul.f32 %v5704_v20, %v3098_v35  ;;  %vm3596_vm0 = vweird.f32 %v5708_v24  ;;  %4792 = vrcp.f32 %v5756_v55  ;;  %v4725_v1 = vmul.f32 -1.442695, %v1594_v46  ;;  %vm3583_vm3 = vmor %vm3581_vm10, %vm3582_vm15  ;;  %v1371_v35 = vpop.xlane.xlu0 %1370  ;;  %4526 = vmatmul.msk.f32.gmra.mxu0 %vm188_vm1, %v81_v36 }
 0x12a   :  { %v3579_v61 = vmul.f32 %v4785_v33, %v3578_v52  ;;  %v3602_v6 = vand.u32 2147483648, %v5708_v24  ;;  %v4278_v8 = vperm.slane %v5763_v58, %v5647_v34  ;;  %vm4189_vm4 = vcmask 130112  }
 0x12b   :  { %v3100_v60 = vadd.f32 %v5704_v20, %v3099_v51  ;;  %vm5789_vm5 = vcmp.eq.f32.partialorder %v3600_v54, 8.507059e+37  ;;  %v3122_v10 = vand.u32 2147483648, %v5756_v55  ;;  %4794 = vrcp.f32 %v5758_v56 }
 0x12c   :  { %v5766_v63 = vpop.eup %4790  ;;  %v3580_v4 = vadd.f32 %v4785_v33, %v3579_v61  ;;  %v3120_v14 = vand.u32 2147483647, %v5756_v55  ;;  %v4186_v59 = vperm.slane %v5770_v0, %v5647_v34  ;;  %4796 = vpow2.f32 %v4725_v1 }
 0x12d   :  { %v3592_v5 = vmul.f32 %v5766_v63, %v5708_v24  ;;  %1392 = vadd.xlane.f32.xlu2 %v1187_v19  ;;  %v3104_v11 = vsel %vm5778_vm2, %v5704_v20, %v3100_v60  ;;  %v4660_v62 = vmul.f32 -1.442695, %v1529_v57  ;;  %vm3597_vm6 = vweird.f32 %v5766_v63  ;;  %v113_v19 = vld [vmem:[#allocation3 + $0x1d8] sm:$0xff] }
 0x12e   :  { %v3584_v12 = vsel %vm3583_vm3, %v4785_v33, %v3580_v4  ;;  %v3603_v17 = vor.u32 1.1754944e-38, %v3602_v6  ;;  %4798 = vpow2.f32 %v4629_v7  ;;  %v5809_v21 = vsel %vm5751_vm14, %v3108_v23, %v3104_v11  ;;  %4558 = vmatmul.msk.f32.gmra.mxu1 %vm188_vm1, %v113_v19  ;;  %v1307_v23 = vpop.xlane.xlu1 %1306  ;;  %vm5827_vm9 = vmor %vm3596_vm0, %vm3597_vm6  ;;  %v5864_v6 = vld [vmem:[%s9414_s3] ss:$0 sm:$0xff]  ;;  %4623 = vmatmul.msk.f32.gmra.mxu3 %vm188_vm1, %v178_v39 }
 0x12f   :  { %v3593_v13 = vsub.f32 1.0, %v3592_v5  ;;  %v3589_v15 = vsel %vm5726_vm11, %v3588_v44, %v3584_v12  ;;  %v5805_v20 = vpop.eup %4792  ;;  %vm3116_vm7 = vweird.f32 %v5756_v55  ;;  %v3123_v22 = vor.u32 1.1754944e-38, %v3122_v10 }
 0x130   :  { %v2160_v27 = vand.u32 2147483647, %v5758_v56  ;;  %v4402_v3 = vperm.slane %v3589_v15, %v5647_v34  ;;  %v3112_v31 = vmul.f32 %v5805_v20, %v5756_v55  ;;  %vm5818_vm8 = vcmp.eq.f32.partialorder %v3120_v14, 8.507059e+37 }
 0x131   :  { %v3594_v16 = vmul.f32 %v5766_v63, %v3593_v13  ;;  %v2162_v33 = vand.u32 2147483648, %v5758_v56  ;;  %v4795_v40 = vpop.eup %4794  ;;  %vm3117_vm10 = vweird.f32 %v5805_v20  ;;  %4800 = vpow2.f32 %v4660_v62  ;;  %v1311_v0 = vpop.xlane.xlu0 %1310 }
 0x132   :  { %v5838_v44 = vadd.f32 %v5835_v43, %v732_v28  ;;  %v1531_v46 = vadd.f32 %v5611_v41, %v1309_v18  ;;  %v3113_v49 = vsub.f32 1.0, %v3112_v31  ;;  %v2152_v50 = vmul.f32 %v4795_v40, %v5758_v56  ;;  %v4797_v26 = vpop.eup %4796  ;;  %vm3118_vm12 = vmor %vm3116_vm7, %vm3117_vm10 }
 0x133   :  { %v3595_v30 = vadd.f32 %v5766_v63, %v3594_v16  ;;  %v5847_v51 = vadd.f32 %v5835_v43, %v636_v47  ;;  %v1530_v57 = vadd.f32 %v5611_v41, %v1307_v23  ;;  %v1562_v60 = vadd.f32 %v5611_v41, %v1371_v35 }
 0x134   :  { %v4662_v54 = vmul.f32 -1.442695, %v1531_v46  ;;  %v4799_v61 = vpop.eup %4798  ;;  %v3114_v1 = vmul.f32 %v5805_v20, %v3113_v49  ;;  %v2153_v2 = vsub.f32 1.0, %v2152_v50  ;;  %v5857_v4 = vadd.f32 1.0, %v4797_v26 }
 0x135   :  { %v3599_v24 = vsel %vm5827_vm9, %v5766_v63, %v3595_v30  ;;  %vm2157_vm11 = vweird.f32 %v4795_v40  ;;  %v5859_v5 = vadd.f32 1.0, %v4799_v61  ;;  %v1219_v7 = vmul.f32 %v5864_v6, %v1087_v48 }
 0x136   :  { %v3604_v52 = vsel %vm5789_vm5, %v3603_v17, %v3599_v24  ;;  %4802 = vpow2.f32 %v4662_v54  ;;  %v3115_v10 = vadd.f32 %v5805_v20, %v3114_v1  ;;  %v2154_v11 = vmul.f32 %v4795_v40, %v2153_v2  ;;  %v1245_v39 = vpop.xlane.xlu1 %1244 }
 0x137   :  { %v4403_v63 = vperm.slane %v3604_v52, %v5656_v45  ;;  %4804 = vrcp.f32 %v5857_v4  ;;  %v4801_v12 = vpop.eup %4800  ;;  %v4340_v13 = vperm.slane %v5809_v21, %v5647_v34  ;;  %vm2156_vm13 = vweird.f32 %v5758_v56  ;;  %1456 = vadd.xlane.f32.xlu1 %v1219_v7 }
 0x138   :  { %4806 = vrcp.f32 %v5859_v5  ;;  %v4661_v29 = vmul.f32 -1.442695, %v1530_v57  ;;  %v3119_v48 = vsel %vm3118_vm12, %v5805_v20, %v3115_v10  ;;  %v2155_v14 = vadd.f32 %v4795_v40, %v2154_v11  ;;  %vm2158_vm15 = vmor %vm2156_vm13, %vm2157_vm11 }
 0x139   :  { %v5870_v53 = vsel %vm4189_vm4, %v4403_v63, %v4402_v3  ;;  %vm2161_vm14 = vcmp.eq.f32.partialorder %v2160_v27, 8.507059e+37  ;;  %v2163_v15 = vor.u32 1.1754944e-38, %v2162_v33  ;;  %v3124_v62 = vsel %vm5818_vm8, %v3123_v22, %v3119_v48 }
 0x13a   :  { %v1024_v16 = vmax.f32 %v5838_v44, 0.0  ;;  %v5888_v55 = vadd.s32 4294967272, %v5647_v34  ;;  %v992_v56 = vmax.f32 %v5847_v51, 0.0  ;;  %v4341_v17 = vperm.slane %v3124_v62, %v5656_v45 }
 0x13b   :  { %v2159_v18 = vsel %vm2158_vm15, %v4795_v40, %v2155_v14  ;;  %v5892_v19 = vadd.f32 1.0, %v4801_v12  ;;  %v4693_v20 = vmul.f32 -1.442695, %v1562_v60  ;;  %v3615_v28 = vand.u32 2147483647, %v5857_v4  ;;  %v1437_v60 = vpop.xlane.xlu2 %1436 }
 0x13c   :  { %v4803_v21 = vpop.eup %4802  ;;  %v2164_v27 = vsel %vm2161_vm14, %v2163_v15, %v2159_v18  ;;  %4808 = vpow2.f32 %v4661_v29  ;;  %v1220_v22 = vmul.f32 %v5864_v6, %v1088_v25  ;;  %v5899_v30 = vsel %vm4189_vm4, %v4341_v17, %v4340_v13 }
 0x13d   :  { %v4805_v3 = vpop.eup %4804  ;;  %v4188_v31 = vperm.slane %v2164_v27, %v5656_v45  ;;  %v3617_v32 = vand.u32 2147483648, %v5857_v4  ;;  %4810 = vrcp.f32 %v5892_v19  ;;  %vm3611_vm0 = vweird.f32 %v5857_v4 }
 0x13e   :  { %v4807_v33 = vpop.eup %4806  ;;  %v3607_v23 = vmul.f32 %v4805_v3, %v5857_v4  ;;  %v2175_v35 = vand.u32 2147483647, %v5859_v5  ;;  %v2177_v9 = vand.u32 2147483648, %v5859_v5  ;;  %1458 = vadd.xlane.f32.xlu0 %v1220_v22  ;;  %vm4193_vm2 = vcmask 195712  }
 0x13f   :  { %v4190_v25 = vsel %vm4189_vm4, %v4188_v31, %v4186_v59  ;;  %v2167_v36 = vmul.f32 %v4807_v33, %v5859_v5  ;;  %vm2171_vm3 = vweird.f32 %v5859_v5  ;;  %v5914_v37 = vadd.f32 1.0, %v4803_v21  ;;  %v735_v21 = vpop.f32.mrf.mxu1 }
 0x140   :  { %v3608_v40 = vsub.f32 1.0, %v3607_v23  ;;  %v2640_v42 = vand.u32 2147483647, %v5892_v19  ;;  %v2642_v46 = vand.u32 2147483648, %v5892_v19  ;;  %4812 = vpow2.f32 %v4693_v20 }
 0x141   :  { %vm5919_vm5 = vcmp.eq.f32.partialorder %v3615_v28, 8.507059e+37  ;;  %v3618_v59 = vor.u32 1.1754944e-38, %v3617_v32  ;;  %v2168_v47 = vsub.f32 1.0, %v2167_v36  ;;  %4814 = vrcp.f32 %v5914_v37 }
 0x142   :  { %v4809_v24 = vpop.eup %4808  ;;  %v3609_v49 = vmul.f32 %v4805_v3, %v3608_v40  ;;  %vm3612_vm6 = vweird.f32 %v4805_v3  ;;  %vm5924_vm7 = vcmp.eq.f32.partialorder %v2175_v35, 8.507059e+37  ;;  %v2178_v26 = vor.u32 1.1754944e-38, %v2177_v9 }
 0x143   :  { %v4811_v52 = vpop.eup %4810  ;;  %v2169_v54 = vmul.f32 %v4807_v33, %v2168_v47  ;;  %vm2172_vm8 = vweird.f32 %v4807_v33  ;;  %vm2636_vm9 = vweird.f32 %v5892_v19  ;;  %v5929_v57 = vadd.f32 1.0, %v4809_v24  ;;  %vm3613_vm11 = vmor %vm3611_vm0, %vm3612_vm6 }
 0x144   :  { %v3610_v61 = vadd.f32 %v4805_v3, %v3609_v49  ;;  %v2632_v63 = vmul.f32 %v4811_v52, %v5892_v19  ;;  %vm5932_vm10 = vcmp.eq.f32.partialorder %v2640_v42, 8.507059e+37  ;;  %v2643_v2 = vor.u32 1.1754944e-38, %v2642_v46  ;;  %vm2173_vm13 = vmor %vm2171_vm3, %vm2172_vm8 }
 0x145   :  { %v2170_v7 = vadd.f32 %v4807_v33, %v2169_v54  ;;  %vm2666_vm12 = vweird.f32 %v5914_v37  ;;  %v2670_v10 = vand.u32 2147483647, %v5914_v37  ;;  %4816 = vrcp.f32 %v5929_v57 }
 0x146   :  { %v4813_v11 = vpop.eup %4812  ;;  %v3614_v12 = vsel %vm3613_vm11, %v4805_v3, %v3610_v61  ;;  %v2633_v13 = vsub.f32 1.0, %v2632_v63  ;;  %v2672_v29 = vand.u32 2147483648, %v5914_v37  ;;  %v1595_v48 = vadd.f32 %v5611_v41, %v1437_v60 }
 0x147   :  { %v4815_v4 = vpop.eup %4814  ;;  %v3619_v14 = vsel %vm5919_vm5, %v3618_v59, %v3614_v12  ;;  %v2174_v15 = vsel %vm2173_vm13, %v4807_v33, %v2170_v7  ;;  %vm2637_vm14 = vweird.f32 %v4811_v52  ;;  %v5948_v62 = vadd.f32 1.0, %v4813_v11 }
 0x148   :  { %v4405_v17 = vperm.slane %v3619_v14, %v5731_v38  ;;  %v2179_v18 = vsel %vm5924_vm7, %v2178_v26, %v2174_v15  ;;  %v2634_v5 = vmul.f32 %v4811_v52, %v2633_v13  ;;  %v2662_v20 = vmul.f32 %v4815_v4, %v5914_v37  ;;  %vm2638_vm0 = vmor %vm2636_vm9, %vm2637_vm14  ;;  %v82_v26 = vld [vmem:[#allocation3 + $0xe0] sm:$0xff] }
 0x149   :  { %v4192_v27 = vperm.slane %v2179_v18, %v5731_v38  ;;  %v2655_v28 = vand.u32 2147483647, %v5929_v57  ;;  %4818 = vrcp.f32 %v5948_v62  ;;  %v5958_v22 = vadd.f32 %v5835_v43, %v735_v21  ;;  %4527 = vmatmul.msk.f32.gmra.mxu0 %vm188_vm1, %v82_v26 }
 0x14a   :  { %v5962_v3 = vsel %vm4193_vm2, %v4405_v17, %v5870_v53  ;;  %v2635_v31 = vadd.f32 %v4811_v52, %v2634_v5  ;;  %v2663_v32 = vsub.f32 1.0, %v2662_v20  ;;  %vm5964_vm15 = vcmp.eq.f32.partialorder %v2670_v10, 8.507059e+37  ;;  %v639_v53 = vpop.f32.mrf.mxu0 }
 0x14b   :  { %v4817_v23 = vpop.eup %4816  ;;  %v5969_v35 = vsel %vm4193_vm2, %v4192_v27, %v4190_v25  ;;  %v2673_v9 = vor.u32 1.1754944e-38, %v2672_v29  ;;  %vm2651_vm3 = vweird.f32 %v5929_v57  ;;  %v4726_v36 = vmul.f32 -1.442695, %v1595_v48  ;;  %v147_v48 = vld [vmem:[#allocation3 + $0x2e8] sm:$0xff] }
 0x14c   :  { %v2639_v40 = vsel %vm2638_vm0, %v4811_v52, %v2635_v31  ;;  %v2664_v42 = vmul.f32 %v4815_v4, %v2663_v32  ;;  %vm2667_vm5 = vweird.f32 %v4815_v4  ;;  %v2647_v46 = vmul.f32 %v4817_v23, %v5929_v57  ;;  %v114_v52 = vld [vmem:[#allocation3 + $0x1e0] sm:$0xff]  ;;  %4592 = vmatmul.msk.f32.gmra.mxu2 %vm188_vm1, %v147_v48  ;;  %v831_v31 = vpop.f32.mrf.mxu2 }
 0x14d   :  { %v2644_v25 = vsel %vm5932_vm10, %v2643_v2, %v2639_v40  ;;  %vm5978_vm6 = vcmp.eq.f32.partialorder %v2655_v28, 8.507059e+37  ;;  %v2657_v19 = vand.u32 2147483648, %v5929_v57  ;;  %4820 = vpow2.f32 %v4726_v36  ;;  %vm5987_vm7 = vmor %vm2666_vm12, %vm2667_vm5  ;;  %4559 = vmatmul.msk.f32.gmra.mxu1 %vm188_vm1, %v114_v52  ;;  %v1373_v28 = vpop.xlane.xlu1 %1372 }
 0x14e   :  { %v4279_v47 = vperm.slane %v2644_v25, %v5656_v45  ;;  %v2665_v24 = vadd.f32 %v4815_v4, %v2664_v42  ;;  %v2648_v49 = vsub.f32 1.0, %v2647_v46  ;;  %v640_v50 = vadd.f32 %v5835_v43, %v639_v53 }
 0x14f   :  { %v4819_v54 = vpop.eup %4818  ;;  %vm2652_vm8 = vweird.f32 %v4817_v23  ;;  %v3135_v61 = vand.u32 2147483647, %v5948_v62  ;;  %v1499_v63 = vadd.f32 %v5611_v41, %v1245_v39  ;;  %v1532_v1 = vadd.f32 %v5611_v41, %v1311_v0  ;;  %v1377_v0 = vpop.xlane.xlu0 %1376 }
 0x150   :  { %v4280_v37 = vsel %vm4189_vm4, %v4279_v47, %v4278_v8  ;;  %v2669_v2 = vsel %vm5987_vm7, %v4815_v4, %v2665_v24  ;;  %v2649_v7 = vmul.f32 %v4817_v23, %v2648_v49  ;;  %v3127_v10 = vmul.f32 %v4819_v54, %v5948_v62  ;;  %vm2653_vm9 = vmor %vm2651_vm3, %vm2652_vm8 }
 0x151   :  { %v2658_v11 = vor.u32 1.1754944e-38, %v2657_v19  ;;  %v3137_v12 = vand.u32 2147483648, %v5948_v62  ;;  %v993_v13 = vmax.f32 %v640_v50, 0.0  ;;  %v4630_v29 = vmul.f32 -1.442695, %v1499_v63 }
 0x152   :  { %v2674_v14 = vsel %vm5964_vm15, %v2673_v9, %v2669_v2  ;;  %v2650_v15 = vadd.f32 %v4817_v23, %v2649_v7  ;;  %v3128_v17 = vsub.f32 1.0, %v3127_v10  ;;  %v4663_v58 = vmul.f32 -1.442695, %v1532_v1 }
 0x153   :  { %v4821_v8 = vpop.eup %4820  ;;  %vm3132_vm10 = vweird.f32 %v4819_v54  ;;  %4822 = vpow2.f32 %v4630_v29  ;;  %v1124_v4 = vmul.f32 %v5864_v6, %v992_v56  ;;  %v1156_v18 = vmul.f32 %v5864_v6, %v1024_v16  ;;  %v1247_v56 = vpop.xlane.xlu2 %1246 }
 0x154   :  { %v2654_v5 = vsel %vm2653_vm9, %v4817_v23, %v2650_v15  ;;  %v3129_v20 = vmul.f32 %v4819_v54, %v3128_v17  ;;  %v6016_v21 = vadd.f32 1.0, %v4821_v8  ;;  %4824 = vpow2.f32 %v4663_v58  ;;  %v738_v23 = vpop.f32.mrf.mxu1  ;;  %v83_v15 = vld [vmem:[#allocation3 + $0xe8] sm:$0xff]  ;;  %v642_v8 = vpop.f32.mrf.mxu0 }
 0x155   :  { %v4283_v27 = vperm.slane %v2674_v14, %v5888_v55  ;;  %v2659_v57 = vsel %vm5978_vm6, %v2658_v11, %v2654_v5  ;;  %vm4197_vm11 = vcmask 261312   ;;  %1266 = vadd.xlane.f32.xlu2 %v1124_v4  ;;  %1330 = vadd.xlane.f32.xlu1 %v1156_v18  ;;  %v1125_v51 = vmul.f32 %v5864_v6, %v993_v13  ;;  %v115_v17 = vld [vmem:[#allocation3 + $0x1e8] sm:$0xff] }
 0x156   :  { %v4281_v44 = vperm.slane %v2659_v57, %v5731_v38  ;;  %v3130_v16 = vadd.f32 %v4819_v54, %v3129_v20  ;;  %vm3131_vm12 = vweird.f32 %v5948_v62  ;;  %4826 = vrcp.f32 %v6016_v21  ;;  %4528 = vmatmul.msk.f32.gmra.mxu0 %vm188_vm1, %v83_v15  ;;  %4560 = vmatmul.msk.f32.gmra.mxu1 %vm188_vm1, %v115_v17 }
 0x157   :  { %vm3133_vm13 = vmor %vm3131_vm12, %vm3132_vm10  ;;  %vm3136_vm14 = vcmp.eq.f32.partialorder %v3135_v61, 8.507059e+37  ;;  %v3138_v32 = vor.u32 1.1754944e-38, %v3137_v12  ;;  %v1025_v33 = vmax.f32 %v5958_v22, 0.0  ;;  %1268 = vadd.xlane.f32.xlu0 %v1125_v51  ;;  %v1500_v53 = vadd.f32 %v5611_v41, %v1247_v56 }
 0x158   :  { %v4282_v9 = vsel %vm4193_vm2, %v4281_v44, %v4280_v37  ;;  %v3134_v36 = vsel %vm3133_vm13, %v4819_v54, %v3130_v16  ;;  %v1563_v39 = vadd.f32 %v5611_v41, %v1373_v28  ;;  %v832_v46 = vadd.f32 %v5835_v43, %v831_v31  ;;  %v6051_v37 = vpop.f32.mrf.mxu3  ;;  %v148_v31 = vld [vmem:[#allocation3 + $0x2f0] sm:$0xff] }
 0x159   :  { %v4823_v40 = vpop.eup %4822  ;;  %v3139_v62 = vsel %vm3136_vm14, %v3138_v32, %v3134_v36  ;;  %v6031_v42 = vsel %vm4197_vm11, %v4283_v27, %v4282_v9  ;;  %v739_v19 = vadd.f32 %v5835_v43, %v738_v23  ;;  %v3630_v47 = vand.u32 2147483647, %v6016_v21  ;;  %v179_v32 = vld [vmem:[#allocation3 + $0x3e8] sm:$0xff]  ;;  %v834_v36 = vpop.f32.mrf.mxu2  ;;  %4593 = vmatmul.msk.f32.gmra.mxu2 %vm188_vm1, %v148_v31 }
 0x15a   :  { %v4825_v25 = vpop.eup %4824  ;;  %v4343_v22 = vperm.slane %v3139_v62, %v5731_v38  ;;  %v6035_v59 = vadd.f32 1.0, %v4823_v40  ;;  %v4631_v49 = vmul.f32 -1.442695, %v1500_v53  ;;  %v1157_v50 = vmul.f32 %v5864_v6, %v1025_v33  ;;  %4624 = vmatmul.msk.f32.gmra.mxu3 %vm188_vm1, %v179_v32 }
 0x15b   :  { %v6039_v24 = vadd.f32 1.0, %v4825_v25  ;;  %v4694_v54 = vmul.f32 -1.442695, %v1563_v39  ;;  %v1565_v60 = vadd.f32 %v5611_v41, %v1377_v0  ;;  %v3632_v63 = vand.u32 2147483648, %v6016_v21  ;;  %v1375_v11 = vpop.xlane.xlu2 %1374 }
 0x15c   :  { %v4827_v26 = vpop.eup %4826  ;;  %v6044_v52 = vsel %vm4193_vm2, %v4343_v22, %v5899_v30  ;;  %4828 = vrcp.f32 %v6035_v59  ;;  %v1057_v1 = vmax.f32 %v832_v46, 0.0  ;;  %v1026_v2 = vmax.f32 %v739_v19, 0.0 }
 0x15d   :  { %v3622_v61 = vmul.f32 %v4827_v26, %v6016_v21  ;;  %4830 = vrcp.f32 %v6039_v24  ;;  %1332 = vadd.xlane.f32.xlu2 %v1157_v50  ;;  %v2190_v30 = vand.u32 2147483647, %v6035_v59  ;;  %v6055_v10 = vadd.s32 4294967264, %v5647_v34 }
 0x15e   :  { %4832 = vpow2.f32 %v4631_v49  ;;  %vm3626_vm15 = vweird.f32 %v6016_v21  ;;  %vm6058_vm0 = vcmp.eq.f32.partialorder %v3630_v47, 8.507059e+37  ;;  %v4696_v13 = vmul.f32 -1.442695, %v1565_v60  ;;  %v1439_v47 = vpop.xlane.xlu1 %1438 }
 0x15f   :  { %v3623_v7 = vsub.f32 1.0, %v3622_v61  ;;  %4834 = vpow2.f32 %v4694_v54  ;;  %vm3627_vm3 = vweird.f32 %v4827_v26  ;;  %v3633_v48 = vor.u32 1.1754944e-38, %v3632_v63 }
 0x160   :  { %v1189_v14 = vmul.f32 %v5864_v6, %v1057_v1  ;;  %vm2186_vm5 = vweird.f32 %v6035_v59  ;;  %4836 = vpow2.f32 %v4696_v13  ;;  %v1158_v4 = vmul.f32 %v5864_v6, %v1026_v2  ;;  %vm6080_vm7 = vmor %vm3626_vm15, %vm3627_vm3  ;;  %v930_v19 = vpop.f32.mrf.mxu3 }
 0x161   :  { %v3624_v29 = vmul.f32 %v4827_v26, %v3623_v7  ;;  %v1564_v18 = vadd.f32 %v5611_v41, %v1375_v11  ;;  %vm6072_vm6 = vcmp.eq.f32.partialorder %v2190_v30, 8.507059e+37  ;;  %v2192_v51 = vand.u32 2147483648, %v6035_v59 }
 0x162   :  { %v6063_v58 = vpop.eup %4828  ;;  %1396 = vadd.xlane.f32.xlu1 %v1189_v14  ;;  %vm2681_vm8 = vweird.f32 %v6039_v24  ;;  %v2685_v44 = vand.u32 2147483647, %v6039_v24  ;;  %v2687_v16 = vand.u32 2147483648, %v6039_v24  ;;  %1334 = vadd.xlane.f32.xlu0 %v1158_v4  ;;  %vm4201_vm9 = vcmask 326912  }
 0x163   :  { %v4831_v5 = vpop.eup %4830  ;;  %v3625_v20 = vadd.f32 %v4827_v26, %v3624_v29  ;;  %v2182_v27 = vmul.f32 %v6063_v58, %v6035_v59  ;;  %v6091_v9 = vadd.f32 %v5835_v43, %v642_v8  ;;  %v4695_v53 = vmul.f32 -1.442695, %v1564_v18 }
 0x164   :  { %v2677_v28 = vmul.f32 %v4831_v5, %v6039_v24  ;;  %v4833_v33 = vpop.eup %4832  ;;  %vm2187_vm10 = vweird.f32 %v6063_v58  ;;  %vm2682_vm12 = vweird.f32 %v4831_v5  ;;  %v2193_v61 = vor.u32 1.1754944e-38, %v2192_v51 }
 0x165   :  { %v3629_v23 = vsel %vm6080_vm7, %v4827_v26, %v3625_v20  ;;  %v2183_v21 = vsub.f32 1.0, %v2182_v27  ;;  %v4835_v39 = vpop.eup %4834  ;;  %v6098_v46 = vadd.f32 1.0, %v4833_v33  ;;  %4838 = vpow2.f32 %v4695_v53  ;;  %vm2188_vm13 = vmor %vm2186_vm5, %vm2187_vm10  ;;  %v116_v20 = vld [vmem:[#allocation3 + $0x1f0] sm:$0xff] }
 0x166   :  { %v3634_v40 = vsel %vm6058_vm0, %v3633_v48, %v3629_v23  ;;  %v2678_v62 = vsub.f32 1.0, %v2677_v28  ;;  %v6102_v22 = vadd.f32 1.0, %v4835_v39  ;;  %v4837_v49 = vpop.eup %4836  ;;  %v835_v26 = vadd.f32 %v5835_v43, %v834_v36  ;;  %vm2683_vm14 = vmor %vm2681_vm8, %vm2682_vm12  ;;  %v1441_v48 = vpop.xlane.xlu0 %1440  ;;  %4561 = vmatmul.msk.f32.gmra.mxu1 %vm188_vm1, %v116_v20  ;;  %v84_v23 = vld [vmem:[#allocation3 + $0xf0] sm:$0xff] }
 0x167   :  { %v4407_v0 = vperm.slane %v3634_v40, %v5888_v55  ;;  %v2184_v25 = vmul.f32 %v6063_v58, %v2183_v21  ;;  %4840 = vrcp.f32 %v6098_v46  ;;  %v6117_v1 = vadd.s32 4294967256, %v5647_v34  ;;  %v149_v21 = vld [vmem:[#allocation3 + $0x2f8] sm:$0xff]  ;;  %4529 = vmatmul.msk.f32.gmra.mxu0 %vm188_vm1, %v84_v23 }
 0x168   :  { %v2679_v50 = vmul.f32 %v4831_v5, %v2678_v62  ;;  %4842 = vrcp.f32 %v6102_v22  ;;  %v6120_v2 = vadd.f32 %v5835_v43, %v930_v19  ;;  %vm2686_vm15 = vcmp.eq.f32.partialorder %v2685_v44, 8.507059e+37  ;;  %4594 = vmatmul.msk.f32.gmra.mxu2 %vm188_vm1, %v149_v21 }
 0x169   :  { %v6108_v54 = vsel %vm4197_vm11, %v4407_v0, %v5962_v3  ;;  %v2185_v60 = vadd.f32 %v6063_v58, %v2184_v25  ;;  %v1596_v3 = vadd.f32 %v5611_v41, %v1439_v47  ;;  %v2688_v30 = vor.u32 1.1754944e-38, %v2687_v16 }
 0x16a   :  { %v2680_v63 = vadd.f32 %v4831_v5, %v2679_v50  ;;  %v6126_v11 = vadd.f32 1.0, %v4837_v49  ;;  %v994_v13 = vmax.f32 %v6091_v9, 0.0  ;;  %v1058_v29 = vmax.f32 %v835_v26, 0.0 }
 0x16b   :  { %v2189_v7 = vsel %vm2188_vm13, %v6063_v58, %v2185_v60  ;;  %v4839_v14 = vpop.eup %4838  ;;  %v2205_v58 = vand.u32 2147483647, %v6098_v46  ;;  %v2207_v4 = vand.u32 2147483648, %v6098_v46  ;;  %v1090_v18 = vmax.f32 %v6120_v2, 0.0 }
 0x16c   :  { %v2194_v59 = vsel %vm6072_vm6, %v2193_v61, %v2189_v7  ;;  %v2684_v12 = vsel %vm2683_vm14, %v4831_v5, %v2680_v63  ;;  %4844 = vrcp.f32 %v6126_v11  ;;  %v4727_v5 = vmul.f32 -1.442695, %v1596_v3  ;;  %v645_v7 = vpop.f32.mrf.mxu0 }
 0x16d   :  { %v4196_v15 = vperm.slane %v2194_v59, %v5888_v55  ;;  %v2689_v17 = vsel %vm2686_vm15, %v2688_v30, %v2684_v12  ;;  %v4841_v24 = vpop.eup %4840  ;;  %v6142_v56 = vadd.f32 1.0, %v4839_v14  ;;  %v1597_v28 = vadd.f32 %v5611_v41, %v1441_v48  ;;  %v741_v48 = vpop.f32.mrf.mxu1 }
 0x16e   :  { %v4285_v8 = vperm.slane %v2689_v17, %v6055_v10  ;;  %v4843_v27 = vpop.eup %4842  ;;  %v2197_v51 = vmul.f32 %v4841_v24, %v6098_v46  ;;  %vm2201_vm0 = vweird.f32 %v6098_v46  ;;  %v3150_v31 = vand.u32 2147483647, %v6102_v22 }
 0x16f   :  { %v6139_v57 = vsel %vm4197_vm11, %v4196_v15, %v5969_v35  ;;  %v3142_v16 = vmul.f32 %v4843_v27, %v6102_v22  ;;  %vm6153_vm3 = vcmp.eq.f32.partialorder %v2205_v58, 8.507059e+37  ;;  %v3152_v33 = vand.u32 2147483648, %v6102_v22  ;;  %v1249_v58 = vpop.xlane.xlu2 %1248 }
 0x170   :  { %v6148_v44 = vsel %vm4201_vm9, %v4285_v8, %v6031_v42  ;;  %v2198_v35 = vsub.f32 1.0, %v2197_v51  ;;  %4846 = vrcp.f32 %v6142_v56  ;;  %v2208_v9 = vor.u32 1.1754944e-38, %v2207_v4  ;;  %v1313_v51 = vpop.xlane.xlu1 %1312 }
 0x171   :  { %v3143_v42 = vsub.f32 1.0, %v3142_v16  ;;  %vm3146_vm5 = vweird.f32 %v6102_v22  ;;  %4848 = vpow2.f32 %v4727_v5  ;;  %vm2202_vm6 = vweird.f32 %v4841_v24 }
 0x172   :  { %v6162_v36 = vpop.eup %4844  ;;  %v2199_v53 = vmul.f32 %v4841_v24, %v2198_v35  ;;  %v4728_v39 = vmul.f32 -1.442695, %v1597_v28  ;;  %v1190_v40 = vmul.f32 %v5864_v6, %v1058_v29  ;;  %vm3147_vm7 = vweird.f32 %v4843_v27  ;;  %vm2203_vm10 = vmor %vm2201_vm0, %vm2202_vm6 }
 0x173   :  { %v3144_v62 = vmul.f32 %v4843_v27, %v3143_v42  ;;  %vm6165_vm8 = vcmp.eq.f32.partialorder %v3150_v31, 8.507059e+37  ;;  %v3172_v25 = vmul.f32 %v6162_v36, %v6126_v11  ;;  %v3153_v47 = vor.u32 1.1754944e-38, %v3152_v33  ;;  %vm3148_vm13 = vmor %vm3146_vm5, %vm3147_vm7  ;;  %v837_v31 = vpop.f32.mrf.mxu2  ;;  %v1251_v42 = vpop.xlane.xlu0 %1250 }
 0x174   :  { %v2200_v19 = vadd.f32 %v4841_v24, %v2199_v53  ;;  %4850 = vpow2.f32 %v4728_v39  ;;  %1398 = vadd.xlane.f32.xlu2 %v1190_v40  ;;  %v1126_v49 = vmul.f32 %v5864_v6, %v994_v13  ;;  %vm3176_vm12 = vweird.f32 %v6126_v11 }
 0x175   :  { %v3145_v50 = vadd.f32 %v4843_v27, %v3144_v62  ;;  %v3173_v26 = vsub.f32 1.0, %v3172_v25  ;;  %v3180_v60 = vand.u32 2147483647, %v6126_v11  ;;  %v3182_v2 = vand.u32 2147483648, %v6126_v11 }
 0x176   :  { %v4847_v61 = vpop.eup %4846  ;;  %v2204_v63 = vsel %vm2203_vm10, %v4841_v24, %v2200_v19  ;;  %v3165_v3 = vand.u32 2147483647, %v6142_v56  ;;  %1270 = vadd.xlane.f32.xlu1 %v1126_v49  ;;  %v1222_v46 = vmul.f32 %v5864_v6, %v1090_v18  ;;  %v3167_v15 = vand.u32 2147483648, %v6142_v56 }
 0x177   :  { %v4849_v30 = vpop.eup %4848  ;;  %v2209_v59 = vsel %vm6153_vm3, %v2208_v9, %v2204_v63  ;;  %v3149_v12 = vsel %vm3148_vm13, %v4843_v27, %v3145_v50  ;;  %v3174_v13 = vmul.f32 %v6162_v36, %v3173_v26  ;;  %v3157_v29 = vmul.f32 %v4847_v61, %v6142_v56 }
 0x178   :  { %v4200_v22 = vperm.slane %v2209_v59, %v6055_v10  ;;  %v3154_v14 = vsel %vm6165_vm8, %v3153_v47, %v3149_v12  ;;  %v6190_v17 = vadd.f32 1.0, %v4849_v30  ;;  %1462 = vadd.xlane.f32.xlu0 %v1222_v46  ;;  %vm3177_vm14 = vweird.f32 %v6162_v36  ;;  %v117_v30 = vld [vmem:[#allocation3 + $0x1f8] sm:$0xff]  ;;  %v180_v59 = vld [vmem:[#allocation3 + $0x3f0] sm:$0xff] }
 0x179   :  { %v4345_v24 = vperm.slane %v3154_v14, %v5888_v55  ;;  %v3158_v8 = vsub.f32 1.0, %v3157_v29  ;;  %v646_v4 = vadd.f32 %v5835_v43, %v645_v7  ;;  %v3175_v20 = vadd.f32 %v6162_v36, %v3174_v13  ;;  %vm6216_vm3 = vmor %vm3176_vm12, %vm3177_vm14  ;;  %v1379_v14 = vpop.xlane.xlu1 %1378  ;;  %4562 = vmatmul.msk.f32.gmra.mxu1 %vm188_vm1, %v117_v30  ;;  %4625 = vmatmul.msk.f32.gmra.mxu3 %vm188_vm1, %v180_v59 }
 0x17a   :  { %v4851_v18 = vpop.eup %4850  ;;  %v6197_v5 = vsel %vm4201_vm9, %v4200_v22, %v6139_v57  ;;  %4852 = vrcp.f32 %v6190_v17  ;;  %v742_v27 = vadd.f32 %v5835_v43, %v741_v48  ;;  %vm3162_vm15 = vweird.f32 %v4847_v61  ;;  %v1315_v22 = vpop.xlane.xlu2 %1314 }
 0x17b   :  { %v4346_v28 = vsel %vm4197_vm11, %v4345_v24, %v6044_v52  ;;  %v3159_v16 = vmul.f32 %v4847_v61, %v3158_v8  ;;  %v1501_v35 = vadd.f32 %v5611_v41, %v1249_v58  ;;  %vm6205_vm0 = vcmp.eq.f32.partialorder %v3180_v60, 8.507059e+37  ;;  %v744_v8 = vpop.f32.mrf.mxu1 }
 0x17c   :  { %v3183_v57 = vor.u32 1.1754944e-38, %v3182_v2  ;;  %v6209_v33 = vadd.f32 1.0, %v4851_v18  ;;  %v838_v23 = vadd.f32 %v5835_v43, %v837_v31  ;;  %vm3161_vm5 = vweird.f32 %v6142_v56 }
 0x17d   :  { %v3160_v21 = vadd.f32 %v4847_v61, %v3159_v16  ;;  %vm3166_vm6 = vcmp.eq.f32.partialorder %v3165_v3, 8.507059e+37  ;;  %v3168_v9 = vor.u32 1.1754944e-38, %v3167_v15  ;;  %v3179_v53 = vsel %vm6216_vm3, %v6162_v36, %v3175_v20  ;;  %vm3163_vm7 = vmor %vm3161_vm5, %vm3162_vm15 }
 0x17e   :  { %4854 = vrcp.f32 %v6209_v33  ;;  %v995_v39 = vmax.f32 %v646_v4, 0.0  ;;  %v1027_v40 = vmax.f32 %v742_v27, 0.0  ;;  %v3645_v62 = vand.u32 2147483647, %v6190_v17  ;;  %v933_v4 = vpop.f32.mrf.mxu3 }
 0x17f   :  { %v3164_v11 = vsel %vm3163_vm7, %v4847_v61, %v3160_v21  ;;  %v4632_v0 = vmul.f32 -1.442695, %v1501_v35  ;;  %v1533_v25 = vadd.f32 %v5611_v41, %v1313_v51  ;;  %v3647_v47 = vand.u32 2147483648, %v6190_v17  ;;  %v1317_v35 = vpop.xlane.xlu0 %1316 }
 0x180   :  { %v4853_v19 = vpop.eup %4852  ;;  %v3169_v56 = vsel %vm3166_vm6, %v3168_v9, %v3164_v11  ;;  %vm9448_vm8 = vcmask 392512   ;;  %v1059_v49 = vmax.f32 %v838_v23, 0.0  ;;  %v3184_v36 = vsel %vm6205_vm0, %v3183_v57, %v3179_v53 }
 0x181   :  { %v4347_v50 = vperm.slane %v3169_v56, %v6055_v10  ;;  %v3637_v26 = vmul.f32 %v4853_v19, %v6190_v17  ;;  %4856 = vpow2.f32 %v4632_v0  ;;  %v4664_v60 = vmul.f32 -1.442695, %v1533_v25 }
 0x182   :  { %v1502_v61 = vadd.f32 %v5611_v41, %v1251_v42  ;;  %v1127_v63 = vmul.f32 %v5864_v6, %v995_v39  ;;  %v1159_v2 = vmul.f32 %v5864_v6, %v1027_v40  ;;  %vm3641_vm10 = vweird.f32 %v6190_v17  ;;  %v840_v40 = vpop.f32.mrf.mxu2 }
 0x183   :  { %v4348_v3 = vsel %vm4201_vm9, %v4347_v50, %v4346_v28  ;;  %v3638_v7 = vsub.f32 1.0, %v3637_v26  ;;  %vm6237_vm12 = vcmp.eq.f32.partialorder %v3645_v62, 8.507059e+37  ;;  %v4349_v13 = vperm.slane %v3184_v36, %v6117_v1 }
 0x184   :  { %v4855_v12 = vpop.eup %4854  ;;  %4858 = vpow2.f32 %v4664_v60  ;;  %v4633_v29 = vmul.f32 -1.442695, %v1502_v61  ;;  %1272 = vadd.xlane.f32.xlu2 %v1127_v63  ;;  %1336 = vadd.xlane.f32.xlu1 %v1159_v2  ;;  %v1191_v48 = vmul.f32 %v5864_v6, %v1059_v49  ;;  %vm3642_vm13 = vweird.f32 %v4853_v19 }
 0x185   :  { %v3639_v15 = vmul.f32 %v4853_v19, %v3638_v7  ;;  %v3648_v58 = vor.u32 1.1754944e-38, %v3647_v47  ;;  %v3652_v24 = vmul.f32 %v4855_v12, %v6209_v33  ;;  %vm3656_vm14 = vweird.f32 %v6209_v33  ;;  %vm3643_vm15 = vmor %vm3641_vm10, %vm3642_vm13 }
 0x186   :  { %v3660_v18 = vand.u32 2147483647, %v6209_v33  ;;  %v3662_v20 = vand.u32 2147483648, %v6209_v33  ;;  %4860 = vpow2.f32 %v4633_v29  ;;  %1400 = vadd.xlane.f32.xlu0 %v1191_v48  ;;  %v1534_v16 = vadd.f32 %v5611_v41, %v1315_v22  ;;  %v85_v48 = vld [vmem:[#allocation3 + $0xf8] sm:$0xff] }
 0x187   :  { %v4857_v27 = vpop.eup %4856  ;;  %v3640_v51 = vadd.f32 %v4853_v19, %v3639_v15  ;;  %v3653_v28 = vsub.f32 1.0, %v3652_v24  ;;  %v1566_v31 = vadd.f32 %v5611_v41, %v1379_v14  ;;  %v745_v57 = vadd.f32 %v5835_v43, %v744_v8  ;;  %4530 = vmatmul.msk.f32.gmra.mxu0 %vm188_vm1, %v85_v48 }
 0x188   :  { %v6254_v32 = vadd.f32 1.0, %v4857_v27  ;;  %v934_v23 = vadd.f32 %v5835_v43, %v933_v4  ;;  %v6259_v52 = vsel %vm9448_vm8, %v4349_v13, %v4348_v3  ;;  %vm3657_vm0 = vweird.f32 %v4855_v12 }
 0x189   :  { %v3644_v21 = vsel %vm3643_vm15, %v4853_v19, %v3640_v51  ;;  %v3654_v9 = vmul.f32 %v4855_v12, %v3653_v28  ;;  %v4665_v42 = vmul.f32 -1.442695, %v1534_v16  ;;  %vm6263_vm3 = vcmp.eq.f32.partialorder %v3660_v18, 8.507059e+37  ;;  %v648_v19 = vpop.f32.mrf.mxu0  ;;  %vm3658_vm5 = vmor %vm3656_vm14, %vm3657_vm0 }
 0x18a   :  { %v4859_v53 = vpop.eup %4858  ;;  %v3649_v39 = vsel %vm6237_vm12, %v3648_v58, %v3644_v21  ;;  %4862 = vrcp.f32 %v6254_v32  ;;  %v1535_v11 = vadd.f32 %v5611_v41, %v1317_v35  ;;  %v4697_v56 = vmul.f32 -1.442695, %v1566_v31  ;;  %v843_v16 = vpop.f32.mrf.mxu2 }
 0x18b   :  { %v4409_v62 = vperm.slane %v3649_v39, %v6055_v10  ;;  %v3655_v0 = vadd.f32 %v4855_v12, %v3654_v9  ;;  %v6270_v25 = vadd.f32 1.0, %v4859_v53  ;;  %v3663_v49 = vor.u32 1.1754944e-38, %v3662_v20  ;;  %v936_v53 = vpop.f32.mrf.mxu3 }
 0x18c   :  { %v4861_v47 = vpop.eup %4860  ;;  %v1028_v36 = vmax.f32 %v745_v57, 0.0  ;;  %v1091_v50 = vmax.f32 %v934_v23, 0.0  ;;  %4864 = vpow2.f32 %v4665_v42  ;;  %v6278_v61 = vadd.f32 %v5835_v43, %v840_v40  ;;  %v6325_v40 = vld [vmem:[%s9413_s2] ss:$0 sm:$0xff] }
 0x18d   :  { %v4410_v26 = vsel %vm4201_vm9, %v4409_v62, %v6108_v54  ;;  %v3659_v60 = vsel %vm3658_vm5, %v4855_v12, %v3655_v0  ;;  %4866 = vrcp.f32 %v6270_v25  ;;  %v2220_v2 = vand.u32 2147483647, %v6254_v32  ;;  %v6336_v0 = vld [vmem:[%s9414_s3] ss:$0 sm:$0xff] }
 0x18e   :  { %v3664_v63 = vsel %vm6263_vm3, %v3663_v49, %v3659_v60  ;;  %v2222_v33 = vand.u32 2147483648, %v6254_v32  ;;  %v649_v3 = vadd.f32 %v5835_v43, %v648_v19  ;;  %v6286_v46 = vadd.f32 1.0, %v4861_v47 }
 0x18f   :  { %v4411_v7 = vperm.slane %v3664_v63, %v6117_v1  ;;  %4868 = vpow2.f32 %v4697_v56  ;;  %v4666_v54 = vmul.f32 -1.442695, %v1535_v11  ;;  %v2700_v59 = vand.u32 2147483647, %v6270_v25 }
 0x190   :  { %v4863_v30 = vpop.eup %4862  ;;  %v6290_v12 = vadd.s32 4294967248, %v5647_v34  ;;  %v1160_v13 = vmul.f32 %v5864_v6, %v1028_v36  ;;  %v1223_v29 = vmul.f32 %v5864_v6, %v1091_v50  ;;  %4870 = vrcp.f32 %v6286_v46  ;;  %v181_v6 = vld [vmem:[#allocation3 + $0x3f8] sm:$0xff]  ;;  %v1443_v50 = vpop.xlane.xlu2 %1442 }
 0x191   :  { %v6295_v22 = vsel %vm9448_vm8, %v4411_v7, %v4410_v26  ;;  %v2212_v43 = vmul.f32 %v4863_v30, %v6254_v32  ;;  %v1060_v14 = vmax.f32 %v6278_v61, 0.0  ;;  %vm2216_vm6 = vweird.f32 %v6254_v32  ;;  %4626 = vmatmul.msk.f32.gmra.mxu3 %vm188_vm1, %v181_v6 }
 0x192   :  { %v4865_v15 = vpop.eup %4864  ;;  %v2702_v58 = vand.u32 2147483648, %v6270_v25  ;;  %v996_v24 = vmax.f32 %v649_v3, 0.0  ;;  %4872 = vpow2.f32 %v4666_v54  ;;  %1338 = vadd.xlane.f32.xlu2 %v1160_v13  ;;  %1464 = vadd.xlane.f32.xlu1 %v1223_v29  ;;  %vm6303_vm7 = vcmp.eq.f32.partialorder %v2220_v2, 8.507059e+37 }
 0x193   :  { %v4867_v8 = vpop.eup %4866  ;;  %v2213_v4 = vsub.f32 1.0, %v2212_v43  ;;  %v2223_v20 = vor.u32 1.1754944e-38, %v2222_v33  ;;  %v6307_v27 = vadd.f32 1.0, %v4865_v15  ;;  %vm2217_vm10 = vweird.f32 %v4863_v30  ;;  %v939_v61 = vpop.f32.mrf.mxu3 }
 0x194   :  { %v2692_v51 = vmul.f32 %v4867_v8, %v6270_v25  ;;  %vm2696_vm12 = vweird.f32 %v6270_v25  ;;  %vm6312_vm13 = vcmp.eq.f32.partialorder %v2700_v59, 8.507059e+37  ;;  %v2235_v57 = vand.u32 2147483647, %v6286_v46  ;;  %vm2218_vm14 = vmor %vm2216_vm6, %vm2217_vm10 }
 0x195   :  { %v4869_v31 = vpop.eup %4868  ;;  %v2214_v35 = vmul.f32 %v4863_v30, %v2213_v4  ;;  %v2237_v23 = vand.u32 2147483648, %v6286_v46  ;;  %4874 = vrcp.f32 %v6307_v27  ;;  %v2703_v9 = vor.u32 1.1754944e-38, %v2702_v58  ;;  %v1253_v58 = vpop.xlane.xlu1 %1252 }
 0x196   :  { %v2693_v21 = vsub.f32 1.0, %v2692_v51  ;;  %vm2231_vm1 = vweird.f32 %v6286_v46  ;;  %v6320_v42 = vadd.f32 1.0, %v4869_v31  ;;  %v4871_v39 = vpop.eup %4870  ;;  %v6328_v11 = vadd.f32 %v6325_v40, %v843_v16 }
 0x197   :  { %v2215_v17 = vadd.f32 %v4863_v30, %v2214_v35  ;;  %v6331_v62 = vadd.f32 %v6325_v40, %v936_v53  ;;  %v1128_v19 = vmul.f32 %v6336_v0, %v996_v24  ;;  %vm2697_vm15 = vweird.f32 %v4867_v8 }
 0x198   :  { %v4873_v56 = vpop.eup %4872  ;;  %v2694_v47 = vmul.f32 %v4867_v8, %v2693_v21  ;;  %v2227_v49 = vmul.f32 %v4871_v39, %v6286_v46  ;;  %v2715_v36 = vand.u32 2147483647, %v6307_v27  ;;  %vm9417_vm0 = vcmask 458112   ;;  %vm2698_vm6 = vmor %vm2696_vm12, %vm2697_vm15  ;;  %v1383_v21 = vpop.xlane.xlu0 %1382 }
 0x199   :  { %v2219_v26 = vsel %vm2218_vm14, %v4863_v30, %v2215_v17  ;;  %vm6344_vm3 = vcmp.eq.f32.partialorder %v2235_v57, 8.507059e+37  ;;  %v2238_v63 = vor.u32 1.1754944e-38, %v2237_v23  ;;  %4876 = vrcp.f32 %v6320_v42  ;;  %1274 = vadd.xlane.f32.xlu0 %v1128_v19 }
 0x19a   :  { %v2224_v32 = vsel %vm6303_vm7, %v2223_v20, %v2219_v26  ;;  %v2695_v2 = vadd.f32 %v4867_v8, %v2694_v47  ;;  %v2228_v33 = vsub.f32 1.0, %v2227_v49  ;;  %vm2711_vm5 = vweird.f32 %v6307_v27 }
 0x19b   :  { %v2717_v3 = vand.u32 2147483648, %v6307_v27  ;;  %v4875_v7 = vpop.eup %4874  ;;  %v4204_v54 = vperm.slane %v2224_v32, %v6117_v1  ;;  %v6357_v30 = vadd.f32 1.0, %v4873_v56  ;;  %v1061_v59 = vmax.f32 %v6328_v11, 0.0 }
 0x19c   :  { %v1598_v13 = vadd.f32 %v5611_v41, %v1443_v50  ;;  %v2699_v29 = vsel %vm2698_vm6, %v4867_v8, %v2695_v2  ;;  %v2229_v48 = vmul.f32 %v4871_v39, %v2228_v33  ;;  %vm2232_vm7 = vweird.f32 %v4871_v39 }
 0x19d   :  { %v2707_v43 = vmul.f32 %v4875_v7, %v6307_v27  ;;  %vm6362_vm10 = vcmp.eq.f32.partialorder %v2715_v36, 8.507059e+37  ;;  %v4206_v25 = vsel %vm9448_vm8, %v4204_v54, %v6197_v5  ;;  %v2704_v24 = vsel %vm6312_vm13, %v2703_v9, %v2699_v29  ;;  %vm2233_vm12 = vmor %vm2231_vm1, %vm2232_vm7  ;;  %v651_v54 = vpop.f32.mrf.mxu0 }
 0x19e   :  { %v3195_v6 = vand.u32 2147483647, %v6320_v42  ;;  %4878 = vrcp.f32 %v6357_v30  ;;  %v4287_v8 = vperm.slane %v2704_v24, %v6117_v1  ;;  %v2230_v4 = vadd.f32 %v4871_v39, %v2229_v48 }
 0x19f   :  { %v2708_v18 = vsub.f32 1.0, %v2707_v43  ;;  %v1092_v20 = vmax.f32 %v6331_v62, 0.0  ;;  %v4877_v51 = vpop.eup %4876  ;;  %vm2712_vm14 = vweird.f32 %v4875_v7  ;;  %v2718_v16 = vor.u32 1.1754944e-38, %v2717_v3 }
 0x1a0   :  { %v4729_v5 = vmul.f32 -1.442695, %v1598_v13  ;;  %v1503_v28 = vadd.f32 %v5611_v41, %v1253_v58  ;;  %v4288_v31 = vsel %vm9448_vm8, %v4287_v8, %v6148_v44  ;;  %v2234_v35 = vsel %vm2233_vm12, %v4871_v39, %v2230_v4  ;;  %vm2713_vm1 = vmor %vm2711_vm5, %vm2712_vm14  ;;  %v1445_v4 = vpop.xlane.xlu1 %1444 }
 0x1a1   :  { %v2709_v57 = vmul.f32 %v4875_v7, %v2708_v18  ;;  %v3187_v23 = vmul.f32 %v4877_v51, %v6320_v42  ;;  %v2239_v9 = vsel %vm6344_vm3, %v2238_v63, %v2234_v35  ;;  %vm3191_vm13 = vweird.f32 %v6320_v42 }
 0x1a2   :  { %vm6383_vm15 = vcmp.eq.f32.partialorder %v3195_v6, 8.507059e+37  ;;  %v3197_v53 = vand.u32 2147483648, %v6320_v42  ;;  %v4208_v17 = vperm.slane %v2239_v9, %v6290_v12  ;;  %4880 = vpow2.f32 %v4729_v5 }
 0x1a3   :  { %v2710_v11 = vadd.f32 %v4875_v7, %v2709_v57  ;;  %v3188_v44 = vsub.f32 1.0, %v3187_v23  ;;  %vm3192_vm6 = vweird.f32 %v4877_v51  ;;  %v4634_v62 = vmul.f32 -1.442695, %v1503_v28 }
 0x1a4   :  { %v4879_v39 = vpop.eup %4878  ;;  %v1568_v19 = vadd.f32 %v5611_v41, %v1383_v21  ;;  %v1193_v56 = vmul.f32 %v6336_v0, %v1061_v59  ;;  %v6395_v47 = vsel %vm9417_vm0, %v4208_v17, %v4206_v25  ;;  %v3198_v60 = vor.u32 1.1754944e-38, %v3197_v53  ;;  %vm3193_vm3 = vmor %vm3191_vm13, %vm3192_vm6  ;;  %v1381_v59 = vpop.xlane.xlu2 %1380 }
 0x1a5   :  { %v2714_v49 = vsel %vm2713_vm1, %v4875_v7, %v2710_v11  ;;  %v3189_v36 = vmul.f32 %v4877_v51, %v3188_v44  ;;  %v2722_v50 = vmul.f32 %v4879_v39, %v6357_v30  ;;  %4882 = vpow2.f32 %v4634_v62  ;;  %v1447_v21 = vpop.xlane.xlu0 %1446 }
 0x1a6   :  { %v2719_v26 = vsel %vm6362_vm10, %v2718_v16, %v2714_v49  ;;  %v4699_v27 = vmul.f32 -1.442695, %v1568_v19  ;;  %1404 = vadd.xlane.f32.xlu2 %v1193_v56  ;;  %v1192_v33 = vmul.f32 %v6336_v0, %v1060_v14  ;;  %vm2727_vm5 = vweird.f32 %v4879_v39 }
 0x1a7   :  { %v4289_v63 = vperm.slane %v2719_v26, %v6290_v12  ;;  %v3190_v32 = vadd.f32 %v4877_v51, %v3189_v36  ;;  %v2723_v2 = vsub.f32 1.0, %v2722_v50  ;;  %v2730_v3 = vand.u32 2147483647, %v6357_v30 }
 0x1a8   :  { %v2732_v7 = vand.u32 2147483648, %v6357_v30  ;;  %4884 = vpow2.f32 %v4699_v27  ;;  %v4881_v13 = vpop.eup %4880  ;;  %1402 = vadd.xlane.f32.xlu1 %v1192_v33  ;;  %v1224_v14 = vmul.f32 %v6336_v0, %v1092_v20  ;;  %v6414_v15 = vadd.s32 4294967240, %v5647_v34 }
 0x1a9   :  { %v4290_v29 = vsel %vm9417_vm0, %v4289_v63, %v4288_v31  ;;  %v3194_v48 = vsel %vm3193_vm3, %v4877_v51, %v3190_v32  ;;  %v2724_v43 = vmul.f32 %v4879_v39, %v2723_v2  ;;  %vm2726_vm7 = vweird.f32 %v6357_v30  ;;  %v747_v51 = vpop.f32.mrf.mxu1 }
 0x1aa   :  { %v3199_v42 = vsel %vm6383_vm15, %v3198_v60, %v3194_v48  ;;  %9509 = vst [vmem:[#allocation12_spill] sm:$0xff] %v6414_v15  ;;  %v6417_v58 = vadd.f32 1.0, %v4881_v13  ;;  %v652_v6 = vadd.f32 %v6325_v40, %v651_v54  ;;  %1466 = vadd.xlane.f32.xlu0 %v1224_v14  ;;  %v1567_v8 = vadd.f32 %v5611_v41, %v1381_v59  ;;  %vm2728_vm10 = vmor %vm2726_vm7, %vm2727_vm5 }
 0x1ab   :  { %v4351_v25 = vperm.slane %v3199_v42, %v6290_v12  ;;  %v2725_v24 = vadd.f32 %v4879_v39, %v2724_v43  ;;  %v4883_v18 = vpop.eup %4882  ;;  %vm2731_vm12 = vcmp.eq.f32.partialorder %v2730_v3, 8.507059e+37  ;;  %v2733_v20 = vor.u32 1.1754944e-38, %v2732_v7 }
 0x1ac   :  { %4886 = vrcp.f32 %v6417_v58  ;;  %v940_v30 = vadd.f32 %v6325_v40, %v939_v61  ;;  %v6429_v28 = vadd.f32 1.0, %v4883_v18  ;;  %v4698_v31 = vmul.f32 -1.442695, %v1567_v8  ;;  %v1255_v33 = vpop.xlane.xlu2 %1254 }
 0x1ad   :  { %v6427_v16 = vsel %vm9417_vm0, %v4351_v25, %v6259_v52  ;;  %v2729_v5 = vsel %vm2728_vm10, %v4879_v39, %v2725_v24  ;;  %vm9419_vm14 = vcmask 523712   ;;  %v1599_v23 = vadd.f32 %v5611_v41, %v1445_v4  ;;  %v654_v4 = vpop.f32.mrf.mxu0 }
 0x1ae   :  { %v4885_v35 = vpop.eup %4884  ;;  %v2734_v57 = vsel %vm2731_vm12, %v2733_v20, %v2729_v5  ;;  %4888 = vrcp.f32 %v6429_v28  ;;  %v997_v46 = vmax.f32 %v652_v6, 0.0  ;;  %v748_v53 = vadd.f32 %v6325_v40, %v747_v51 }
 0x1af   :  { %v4291_v9 = vperm.slane %v2734_v57, %v6414_v15  ;;  %v6435_v17 = vadd.f32 1.0, %v4885_v35  ;;  %v1093_v52 = vmax.f32 %v940_v30, 0.0  ;;  %4890 = vpow2.f32 %v4698_v31 }
 0x1b0   :  { %v4730_v11 = vmul.f32 -1.442695, %v1599_v23  ;;  %v1600_v39 = vadd.f32 %v5611_v41, %v1447_v21  ;;  %v3675_v19 = vand.u32 2147483647, %v6417_v58  ;;  %v3677_v49 = vand.u32 2147483648, %v6417_v58 }
 0x1b1   :  { %v6438_v44 = vsel %vm9419_vm14, %v4291_v9, %v4290_v29  ;;  %4892 = vrcp.f32 %v6435_v17  ;;  %v1029_v36 = vmax.f32 %v748_v53, 0.0  ;;  %v1225_v26 = vmul.f32 %v6336_v0, %v1093_v52  ;;  %v750_v30 = vpop.f32.mrf.mxu1  ;;  %v846_v53 = vpop.f32.mrf.mxu2 }
 0x1b2   :  { %v4887_v62 = vpop.eup %4886  ;;  %4894 = vpow2.f32 %v4730_v11  ;;  %v4731_v50 = vmul.f32 -1.442695, %v1600_v39  ;;  %v1129_v60 = vmul.f32 %v6336_v0, %v997_v46  ;;  %vm3671_vm13 = vweird.f32 %v6417_v58 }
 0x1b3   :  { %v3667_v56 = vmul.f32 %v4887_v62, %v6417_v58  ;;  %v2250_v32 = vand.u32 2147483647, %v6429_v28  ;;  %v6450_v2 = vadd.s32 4294967232, %v5647_v34  ;;  %vm6452_vm15 = vcmp.eq.f32.partialorder %v3675_v19, 8.507059e+37  ;;  %1468 = vadd.xlane.f32.xlu2 %v1225_v26 }
 0x1b4   :  { %v4889_v27 = vpop.eup %4888  ;;  %v2252_v59 = vand.u32 2147483648, %v6429_v28  ;;  %4896 = vpow2.f32 %v4731_v50  ;;  %1276 = vadd.xlane.f32.xlu1 %v1129_v60  ;;  %vm3672_vm1 = vweird.f32 %v4887_v62  ;;  %v3678_v29 = vor.u32 1.1754944e-38, %v3677_v49 }
 0x1b5   :  { %v3668_v63 = vsub.f32 1.0, %v3667_v56  ;;  %9510 = vst [vmem:[#allocation13_spill] sm:$0xff] %v6450_v2  ;;  %v4891_v3 = vpop.eup %4890  ;;  %v2242_v54 = vmul.f32 %v4889_v27, %v6429_v28  ;;  %vm2246_vm6 = vweird.f32 %v6429_v28  ;;  %v1161_v14 = vmul.f32 %v6336_v0, %v1029_v36  ;;  %vm3673_vm5 = vmor %vm3671_vm13, %vm3672_vm1 }
 0x1b6   :  { %v6458_v48 = vadd.f32 1.0, %v4891_v3  ;;  %v1504_v42 = vadd.f32 %v5611_v41, %v1255_v33  ;;  %vm6465_vm3 = vcmp.eq.f32.partialorder %v2250_v32, 8.507059e+37  ;;  %vm2247_vm7 = vweird.f32 %v4889_v27  ;;  %v1319_v32 = vpop.xlane.xlu1 %1318 }
 0x1b7   :  { %v3669_v13 = vmul.f32 %v4887_v62, %v3668_v63  ;;  %v6460_v43 = vpop.eup %4892  ;;  %v2243_v61 = vsub.f32 1.0, %v2242_v54  ;;  %v2253_v20 = vor.u32 1.1754944e-38, %v2252_v59  ;;  %v3225_v51 = vand.u32 2147483647, %v6435_v17  ;;  %1340 = vadd.xlane.f32.xlu0 %v1161_v14  ;;  %vm2248_vm10 = vmor %vm2246_vm6, %vm2247_vm7 }
 0x1b8   :  { %v4895_v25 = vpop.eup %4894  ;;  %v3217_v8 = vmul.f32 %v6460_v43, %v6435_v17  ;;  %4898 = vrcp.f32 %v6458_v48  ;;  %v4635_v57 = vmul.f32 -1.442695, %v1504_v42  ;;  %v3227_v58 = vand.u32 2147483648, %v6435_v17 }
 0x1b9   :  { %v3670_v24 = vadd.f32 %v4887_v62, %v3669_v13  ;;  %v2244_v18 = vmul.f32 %v4889_v27, %v2243_v61  ;;  %v6475_v35 = vadd.f32 1.0, %v4895_v25  ;;  %v655_v46 = vadd.f32 %v6325_v40, %v654_v4  ;;  %v1257_v13 = vpop.xlane.xlu0 %1256 }
 0x1ba   :  { %v3218_v31 = vsub.f32 1.0, %v3217_v8  ;;  %v4897_v23 = vpop.eup %4896  ;;  %v751_v11 = vadd.f32 %v6325_v40, %v750_v30  ;;  %v6488_v39 = vadd.f32 %v6325_v40, %v846_v53  ;;  %v3210_v19 = vand.u32 2147483647, %v6458_v48 }
 0x1bb   :  { %v3674_v5 = vsel %vm3673_vm5, %v4887_v62, %v3670_v24  ;;  %v2245_v9 = vadd.f32 %v4889_v27, %v2244_v18  ;;  %4900 = vrcp.f32 %v6475_v35  ;;  %v3212_v56 = vand.u32 2147483648, %v6458_v48 }
 0x1bc   :  { %v3679_v21 = vsel %vm6452_vm15, %v3678_v29, %v3674_v5  ;;  %v6492_v49 = vadd.f32 1.0, %v4897_v23  ;;  %v3219_v26 = vmul.f32 %v6460_v43, %v3218_v31  ;;  %4902 = vpow2.f32 %v4635_v57 }
 0x1bd   :  { %v4413_v52 = vperm.slane %v3679_v21, %v6290_v12  ;;  %v2249_v62 = vsel %vm2248_vm10, %v4889_v27, %v2245_v9  ;;  %vm3221_vm12 = vweird.f32 %v6435_v17  ;;  %v3228_v27 = vor.u32 1.1754944e-38, %v3227_v58 }
 0x1be   :  { %v4899_v36 = vpop.eup %4898  ;;  %v2254_v28 = vsel %vm6465_vm3, %v2253_v20, %v2249_v62  ;;  %vm6504_vm13 = vcmp.eq.f32.partialorder %v3225_v51, 8.507059e+37  ;;  %4904 = vrcp.f32 %v6492_v49  ;;  %v1030_v3 = vmax.f32 %v751_v11, 0.0 }
 0x1bf   :  { %v6496_v50 = vsel %vm9417_vm0, %v4413_v52, %v6295_v22  ;;  %v4212_v60 = vperm.slane %v2254_v28, %v6414_v15  ;;  %v3202_v63 = vmul.f32 %v4899_v36, %v6458_v48  ;;  %v998_v22 = vmax.f32 %v655_v46, 0.0 }
 0x1c0   :  { %v1062_v7 = vmax.f32 %v6488_v39, 0.0  ;;  %vm3222_vm15 = vweird.f32 %v6460_v43  ;;  %vm3206_vm1 = vweird.f32 %v6458_v48  ;;  %v3220_v61 = vadd.f32 %v6460_v43, %v3219_v26 }
 0x1c1   :  { %v6512_v54 = vsel %vm9419_vm14, %v4212_v60, %v6395_v47  ;;  %v3203_v59 = vsub.f32 1.0, %v3202_v63  ;;  %v4901_v29 = vpop.eup %4900  ;;  %vm6517_vm6 = vcmp.eq.f32.partialorder %v3210_v19, 8.507059e+37  ;;  %v3213_v42 = vor.u32 1.1754944e-38, %v3212_v56  ;;  %vm6531_vm10 = vmor %vm3221_vm12, %vm3222_vm15  ;;  %v753_v60 = vpop.f32.mrf.mxu1 }
 0x1c2   :  { %v1536_v25 = vadd.f32 %v5611_v41, %v1319_v32  ;;  %vm3207_vm3 = vweird.f32 %v4899_v36  ;;  %v3682_v47 = vmul.f32 %v4901_v29, %v6475_v35  ;;  %vm3686_vm5 = vweird.f32 %v6475_v35  ;;  %v4903_v6 = vpop.eup %4902  ;;  %v942_v63 = vpop.f32.mrf.mxu3 }
 0x1c3   :  { %v3204_v24 = vmul.f32 %v4899_v36, %v3203_v59  ;;  %vm9418_vm7 = vcmask 589312   ;;  %v3690_v8 = vand.u32 2147483647, %v6475_v35  ;;  %v3692_v4 = vand.u32 2147483648, %v6475_v35  ;;  %vm3208_vm0 = vmor %vm3206_vm1, %vm3207_vm3  ;;  %v1321_v35 = vpop.xlane.xlu2 %1320 }
 0x1c4   :  { %v4667_v18 = vmul.f32 -1.442695, %v1536_v25  ;;  %v1505_v20 = vadd.f32 %v5611_v41, %v1257_v13  ;;  %v3683_v5 = vsub.f32 1.0, %v3682_v47  ;;  %v6535_v31 = vadd.f32 1.0, %v4903_v6  ;;  %v4905_v23 = vpop.eup %4904  ;;  %v657_v6 = vpop.f32.mrf.mxu0 }
 0x1c5   :  { %v3205_v30 = vadd.f32 %v4899_v36, %v3204_v24  ;;  %v1130_v57 = vmul.f32 %v6336_v0, %v998_v22  ;;  %v3224_v21 = vsel %vm6531_vm10, %v6460_v43, %v3220_v61  ;;  %v1162_v9 = vmul.f32 %v6336_v0, %v1030_v3  ;;  %v1385_v22 = vpop.xlane.xlu1 %1384 }
 0x1c6   :  { %4906 = vpow2.f32 %v4667_v18  ;;  %v4636_v17 = vmul.f32 -1.442695, %v1505_v20  ;;  %v3684_v46 = vmul.f32 %v4901_v29, %v3683_v5  ;;  %vm3687_vm12 = vweird.f32 %v4901_v29 }
 0x1c7   :  { %v3209_v58 = vsel %vm3208_vm0, %v4899_v36, %v3205_v30  ;;  %v3697_v53 = vmul.f32 %v4905_v23, %v6492_v49  ;;  %1278 = vadd.xlane.f32.xlu2 %v1130_v57  ;;  %vm6548_vm15 = vcmp.eq.f32.partialorder %v3690_v8, 8.507059e+37  ;;  %v3707_v48 = vand.u32 2147483648, %v6492_v49  ;;  %1342 = vadd.xlane.f32.xlu1 %v1162_v9  ;;  %vm6559_vm0 = vmor %vm3686_vm5, %vm3687_vm12 }
 0x1c8   :  { %v3214_v52 = vsel %vm6517_vm6, %v3213_v42, %v3209_v58  ;;  %4908 = vrcp.f32 %v6535_v31  ;;  %v3229_v43 = vsel %vm6504_vm13, %v3228_v27, %v3224_v21  ;;  %v3685_v19 = vadd.f32 %v4901_v29, %v3684_v46 }
 0x1c9   :  { %v4353_v62 = vperm.slane %v3214_v52, %v6414_v15  ;;  %v3698_v56 = vsub.f32 1.0, %v3697_v53  ;;  %v3693_v28 = vor.u32 1.1754944e-38, %v3692_v4  ;;  %vm3701_vm1 = vweird.f32 %v6492_v49 }
 0x1ca   :  { %v3705_v26 = vand.u32 2147483647, %v6492_v49  ;;  %4910 = vpow2.f32 %v4636_v17  ;;  %v3689_v32 = vsel %vm6559_vm0, %v4901_v29, %v3685_v19  ;;  %vm3702_vm13 = vweird.f32 %v4905_v23 }
 0x1cb   :  { %v4354_v27 = vsel %vm9419_vm14, %v4353_v62, %v6427_v16  ;;  %v3699_v33 = vmul.f32 %v4905_v23, %v3698_v56  ;;  %v4355_v59 = vperm.slane %v3229_v43, %v6450_v2  ;;  %v3694_v13 = vsel %vm6548_vm15, %v3693_v28, %v3689_v32  ;;  %vm3703_vm6 = vmor %vm3701_vm1, %vm3702_vm13 }
 0x1cc   :  { %v4907_v3 = vpop.eup %4906  ;;  %v3708_v61 = vor.u32 1.1754944e-38, %v3707_v48  ;;  %v1194_v14 = vmul.f32 %v6336_v0, %v1062_v7  ;;  %v4415_v16 = vperm.slane %v3694_v13, %v6414_v15  ;;  %v754_v29 = vadd.f32 %v6325_v40, %v753_v60  ;;  %v1323_v48 = vpop.xlane.xlu0 %1322 }
 0x1cd   :  { %v3700_v42 = vadd.f32 %v4905_v23, %v3699_v33  ;;  %v6576_v25 = vadd.f32 1.0, %v4907_v3  ;;  %v943_v47 = vadd.f32 %v6325_v40, %v942_v63  ;;  %v1537_v8 = vadd.f32 %v5611_v41, %v1321_v35 }
 0x1ce   :  { %v4909_v24 = vpop.eup %4908  ;;  %1406 = vadd.xlane.f32.xlu0 %v1194_v14  ;;  %v1569_v39 = vadd.f32 %v5611_v41, %v1385_v22  ;;  %v6585_v7 = vsel %vm9418_vm7, %v4355_v59, %v4354_v27  ;;  %v4416_v4 = vsel %vm9419_vm14, %v4415_v16, %v6496_v50  ;;  %vm3706_vm3 = vcmp.eq.f32.partialorder %v3705_v26, 8.507059e+37 }
 0x1cf   :  { %v3704_v18 = vsel %vm3703_vm6, %v4905_v23, %v3700_v42  ;;  %v2257_v20 = vmul.f32 %v4909_v24, %v6535_v31  ;;  %v2265_v30 = vand.u32 2147483647, %v6535_v31  ;;  %v2267_v5 = vand.u32 2147483648, %v6535_v31  ;;  %v6597_v23 = vpop.f32.mrf.mxu2 }
 0x1d0   :  { %v4911_v49 = vpop.eup %4910  ;;  %v3709_v51 = vsel %vm3706_vm3, %v3708_v61, %v3704_v18  ;;  %4912 = vrcp.f32 %v6576_v25  ;;  %v658_v9 = vadd.f32 %v6325_v40, %v657_v6  ;;  %v1031_v50 = vmax.f32 %v754_v29, 0.0 }
 0x1d1   :  { %v4417_v57 = vperm.slane %v3709_v51, %v6450_v2  ;;  %v2258_v21 = vsub.f32 1.0, %v2257_v20  ;;  %v6594_v17 = vadd.f32 1.0, %v4911_v49  ;;  %v1094_v58 = vmax.f32 %v943_v47, 0.0 }
 0x1d2   :  { %v4668_v46 = vmul.f32 -1.442695, %v1537_v8  ;;  %v4700_v53 = vmul.f32 -1.442695, %v1569_v39  ;;  %vm2262_vm5 = vweird.f32 %v4909_v24  ;;  %vm2261_vm10 = vweird.f32 %v6535_v31 }
 0x1d3   :  { %v6600_v52 = vsel %vm9418_vm7, %v4417_v57, %v4416_v4  ;;  %v2259_v11 = vmul.f32 %v4909_v24, %v2258_v21  ;;  %4914 = vrcp.f32 %v6594_v17  ;;  %v999_v62 = vmax.f32 %v658_v9, 0.0  ;;  %vm2263_vm12 = vmor %vm2261_vm10, %vm2262_vm5 }
 0x1d4   :  { %9525 = vst [vmem:[#allocation14_spill] sm:$0xff] %v6600_v52  ;;  %4916 = vpow2.f32 %v4668_v46  ;;  %v2268_v56 = vor.u32 1.1754944e-38, %v2267_v5  ;;  %v1538_v36 = vadd.f32 %v5611_v41, %v1323_v48  ;;  %v1163_v28 = vmul.f32 %v6336_v0, %v1031_v50 }
 0x1d5   :  { %v2260_v43 = vadd.f32 %v4909_v24, %v2259_v11  ;;  %4918 = vpow2.f32 %v4700_v53  ;;  %vm2266_vm15 = vcmp.eq.f32.partialorder %v2265_v30, 8.507059e+37  ;;  %v1226_v63 = vmul.f32 %v6336_v0, %v1094_v58  ;;  %v945_v11 = vpop.f32.mrf.mxu3 }
 0x1d6   :  { %v4913_v19 = vpop.eup %4912  ;;  %v2747_v32 = vand.u32 2147483648, %v6576_v25  ;;  %v4669_v33 = vmul.f32 -1.442695, %v1538_v36  ;;  %1344 = vadd.xlane.f32.xlu2 %v1163_v28  ;;  %v1131_v3 = vmul.f32 %v6336_v0, %v999_v62  ;;  %v2745_v13 = vand.u32 2147483647, %v6576_v25 }
 0x1d7   :  { %v2264_v26 = vsel %vm2263_vm12, %v4909_v24, %v2260_v43  ;;  %v2737_v60 = vmul.f32 %v4913_v19, %v6576_v25  ;;  %1470 = vadd.xlane.f32.xlu1 %v1226_v63  ;;  %vm2742_vm0 = vweird.f32 %v4913_v19  ;;  %v1259_v24 = vpop.xlane.xlu1 %1258  ;;  %vm2741_vm1 = vweird.f32 %v6576_v25  ;;  %v852_v39 = vpop.f32.mrf.mxu2 }
 0x1d8   :  { %v2269_v27 = vsel %vm2266_vm15, %v2268_v56, %v2264_v26  ;;  %4920 = vpow2.f32 %v4669_v33  ;;  %1280 = vadd.xlane.f32.xlu0 %v1131_v3  ;;  %v2748_v47 = vor.u32 1.1754944e-38, %v2747_v32  ;;  %v2280_v18 = vand.u32 2147483647, %v6594_v17  ;;  %vm2743_vm13 = vmor %vm2741_vm1, %vm2742_vm0  ;;  %v6644_v63 = vpop.xlane.xlu2 %1448 }
 0x1d9   :  { %v4915_v31 = vpop.eup %4914  ;;  %v4216_v35 = vperm.slane %v2269_v27, %v6450_v2  ;;  %v2738_v22 = vsub.f32 1.0, %v2737_v60  ;;  %v2282_v20 = vand.u32 2147483648, %v6594_v17  ;;  %v1506_v49 = vadd.f32 %v5611_v41, %v1259_v24 }
 0x1da   :  { %v4917_v59 = vpop.eup %4916  ;;  %v2272_v61 = vmul.f32 %v4915_v31, %v6594_v17  ;;  %vm2277_vm6 = vweird.f32 %v4915_v31  ;;  %vm2746_vm3 = vcmp.eq.f32.partialorder %v2745_v13, 8.507059e+37  ;;  %v6626_v51 = vadd.s32 4294967224, %v5647_v34 }
 0x1db   :  { %v4919_v14 = vpop.eup %4918  ;;  %v4218_v16 = vsel %vm9418_vm7, %v4216_v35, %v6512_v54  ;;  %v2739_v42 = vmul.f32 %v4913_v19, %v2738_v22  ;;  %v6615_v29 = vadd.f32 1.0, %v4917_v59  ;;  %v853_v30 = vadd.f32 %v6325_v40, %v852_v39 }
 0x1dc   :  { %v2273_v6 = vsub.f32 1.0, %v2272_v61  ;;  %v6618_v8 = vadd.f32 1.0, %v4919_v14  ;;  %9526 = vst [vmem:[#allocation15_spill] sm:$0xff] %v6626_v51  ;;  %vm2276_vm5 = vweird.f32 %v6594_v17  ;;  %v850_v9 = vadd.f32 %v6325_v40, %v6597_v23 }
 0x1dd   :  { %v2740_v4 = vadd.f32 %v4913_v19, %v2739_v42  ;;  %4922 = vrcp.f32 %v6615_v29  ;;  %vm2278_vm10 = vmor %vm2276_vm5, %vm2277_vm6  ;;  %v2283_v58 = vor.u32 1.1754944e-38, %v2282_v20  ;;  %vm9447_vm12 = vcmask 654912   ;;  %v660_v20 = vpop.f32.mrf.mxu0 }
 0x1de   :  { %v2274_v54 = vmul.f32 %v4915_v31, %v2273_v6  ;;  %4924 = vrcp.f32 %v6618_v8  ;;  %v4921_v5 = vpop.eup %4920  ;;  %vm2281_vm15 = vcmp.eq.f32.partialorder %v2280_v18, 8.507059e+37  ;;  %v4637_v48 = vmul.f32 -1.442695, %v1506_v49  ;;  %v6663_v6 = vpop.xlane.xlu0 %1388 }
 0x1df   :  { %v2744_v25 = vsel %vm2743_vm13, %v4913_v19, %v2740_v4  ;;  %v6633_v46 = vadd.f32 1.0, %v4921_v5  ;;  %v1064_v17 = vmax.f32 %v853_v30, 0.0  ;;  %v1063_v36 = vmax.f32 %v850_v9, 0.0  ;;  %v948_v30 = vpop.f32.mrf.mxu3 }
 0x1e0   :  { %v2749_v57 = vsel %vm2746_vm3, %v2748_v47, %v2744_v25  ;;  %v2275_v21 = vadd.f32 %v4915_v31, %v2274_v54  ;;  %v6642_v60 = vadd.f32 %v6325_v40, %v945_v11  ;;  %v2760_v32 = vand.u32 2147483647, %v6615_v29 }
 0x1e1   :  { %v4293_v50 = vperm.slane %v2749_v57, %v6450_v2  ;;  %4926 = vrcp.f32 %v6633_v46  ;;  %v2762_v33 = vand.u32 2147483648, %v6615_v29  ;;  %v3240_v35 = vand.u32 2147483647, %v6618_v8 }
 0x1e2   :  { %v2279_v53 = vsel %vm2278_vm10, %v4915_v31, %v2275_v21  ;;  %4928 = vpow2.f32 %v4637_v48  ;;  %v3242_v22 = vand.u32 2147483648, %v6618_v8  ;;  %v1196_v3 = vmul.f32 %v6336_v0, %v1064_v17 }
 0x1e3   :  { %v4923_v43 = vpop.eup %4922  ;;  %v4294_v62 = vsel %vm9418_vm7, %v4293_v50, %v6438_v44  ;;  %v2284_v19 = vsel %vm2281_vm15, %v2283_v58, %v2279_v53  ;;  %v1195_v13 = vmul.f32 %v6336_v0, %v1063_v36  ;;  %vm2756_vm1 = vweird.f32 %v6615_v29  ;;  %v6683_v36 = vpop.xlane.xlu1 %1450 }
 0x1e4   :  { %v4925_v23 = vpop.eup %4924  ;;  %v4220_v56 = vperm.slane %v2284_v19, %v6626_v51  ;;  %v2752_v28 = vmul.f32 %v4923_v43, %v6615_v29  ;;  %vm2757_vm0 = vweird.f32 %v4923_v43  ;;  %1410 = vadd.xlane.f32.xlu2 %v1196_v3  ;;  %vm6657_vm6 = vcmp.eq.f32.partialorder %v2760_v32, 8.507059e+37 }
 0x1e5   :  { %v3232_v26 = vmul.f32 %v4925_v23, %v6618_v8  ;;  %vm3237_vm13 = vweird.f32 %v4925_v23  ;;  %vm3236_vm3 = vweird.f32 %v6618_v8  ;;  %1408 = vadd.xlane.f32.xlu1 %v1195_v13  ;;  %vm2758_vm5 = vmor %vm2756_vm1, %vm2757_vm0  ;;  %v2763_v29 = vor.u32 1.1754944e-38, %v2762_v33 }
 0x1e6   :  { %v6647_v44 = vsel %vm9447_vm12, %v4220_v56, %v4218_v16  ;;  %v2753_v27 = vsub.f32 1.0, %v2752_v28  ;;  %v1095_v16 = vmax.f32 %v6642_v60, 0.0  ;;  %vm3241_vm10 = vcmp.eq.f32.partialorder %v3240_v35, 8.507059e+37  ;;  %vm3238_vm15 = vmor %vm3236_vm3, %vm3237_vm13  ;;  %v756_v56 = vpop.f32.mrf.mxu1 }
 0x1e7   :  { %v3233_v31 = vsub.f32 1.0, %v3232_v26  ;;  %v4927_v61 = vpop.eup %4926  ;;  %v3243_v18 = vor.u32 1.1754944e-38, %v3242_v22  ;;  %v2775_v25 = vand.u32 2147483647, %v6633_v46  ;;  %v2777_v21 = vand.u32 2147483648, %v6633_v46  ;;  %v6694_v22 = vpop.xlane.xlu0 %1452 }
 0x1e8   :  { %v2754_v59 = vmul.f32 %v4923_v43, %v2753_v27  ;;  %v2767_v47 = vmul.f32 %v4927_v61, %v6633_v46  ;;  %v4929_v39 = vpop.eup %4928  ;;  %vm2772_vm7 = vweird.f32 %v4927_v61  ;;  %v6677_v11 = vadd.s32 4294967216, %v5647_v34 }
 0x1e9   :  { %v3234_v14 = vmul.f32 %v4925_v23, %v3233_v31  ;;  %v6668_v8 = vadd.f32 1.0, %v4929_v39  ;;  %v949_v48 = vadd.f32 %v6325_v40, %v948_v30  ;;  %vm2771_vm0 = vweird.f32 %v6633_v46 }
 0x1ea   :  { %v2755_v42 = vadd.f32 %v4923_v43, %v2754_v59  ;;  %v2768_v49 = vsub.f32 1.0, %v2767_v47  ;;  %9529 = vst [vmem:[#allocation16_spill] sm:$0xff] %v6677_v11  ;;  %vm2773_vm1 = vmor %vm2771_vm0, %vm2772_vm7  ;;  %v2778_v26 = vor.u32 1.1754944e-38, %v2777_v21  ;;  %vm2776_vm13 = vcmp.eq.f32.partialorder %v2775_v25, 8.507059e+37  ;;  %v663_v59 = vpop.f32.mrf.mxu0 }
 0x1eb   :  { %v3235_v4 = vadd.f32 %v4925_v23, %v3234_v14  ;;  %4930 = vrcp.f32 %v6668_v8  ;;  %v1227_v27 = vmul.f32 %v6336_v0, %v1095_v16  ;;  %v757_v46 = vadd.f32 %v6325_v40, %v756_v56 }
 0x1ec   :  { %v2759_v54 = vsel %vm2758_vm5, %v4923_v43, %v2755_v42  ;;  %v2769_v58 = vmul.f32 %v4927_v61, %v2768_v49  ;;  %v1387_v43 = vpop.xlane.xlu2 %1386  ;;  %v1096_v32 = vmax.f32 %v949_v48, 0.0  ;;  %v2297_v24 = vand.u32 2147483648, %v6668_v8 }
 0x1ed   :  { %v2764_v5 = vsel %vm6657_vm6, %v2763_v29, %v2759_v54  ;;  %v3239_v57 = vsel %vm3238_vm15, %v4925_v23, %v3235_v4  ;;  %v661_v23 = vadd.f32 %v6325_v40, %v660_v20  ;;  %vm9428_vm6 = vcmask 720512   ;;  %1472 = vadd.xlane.f32.xlu0 %v1227_v27  ;;  %v1325_v20 = vpop.xlane.xlu1 %1324  ;;  %v855_v27 = vpop.f32.mrf.mxu2 }
 0x1ee   :  { %v4295_v9 = vperm.slane %v2764_v5, %v6626_v51  ;;  %v3244_v50 = vsel %vm3241_vm10, %v3243_v18, %v3239_v57  ;;  %v2770_v17 = vadd.f32 %v4927_v61, %v2769_v58  ;;  %v1032_v16 = vmax.f32 %v757_v46, 0.0  ;;  %v759_v30 = vpop.f32.mrf.mxu1 }
 0x1ef   :  { %v4357_v53 = vperm.slane %v3244_v50, %v6626_v51  ;;  %v1000_v35 = vmax.f32 %v661_v23, 0.0  ;;  %v1228_v42 = vmul.f32 %v6336_v0, %v1096_v32  ;;  %v664_v39 = vadd.f32 %v6325_v40, %v663_v59  ;;  %v1263_v48 = vpop.xlane.xlu0 %1262 }
 0x1f0   :  { %v4296_v19 = vsel %vm9447_vm12, %v4295_v9, %v4294_v62  ;;  %v2774_v60 = vsel %vm2773_vm1, %v4927_v61, %v2770_v17  ;;  %v2295_v4 = vand.u32 2147483647, %v6668_v8  ;;  %vm2291_vm3 = vweird.f32 %v6668_v8 }
 0x1f1   :  { %v6687_v28 = vsel %vm9447_vm12, %v4357_v53, %v6585_v7  ;;  %v2779_v62 = vsel %vm2776_vm13, %v2778_v26, %v2774_v60  ;;  %v4931_v33 = vpop.eup %4930  ;;  %v1570_v7 = vadd.f32 %v5611_v41, %v1387_v43  ;;  %v1132_v47 = vmul.f32 %v6336_v0, %v1000_v35  ;;  %1474 = vadd.xlane.f32.xlu2 %v1228_v42 }
 0x1f2   :  { %v4297_v31 = vperm.slane %v2779_v62, %v6677_v11  ;;  %v2287_v3 = vmul.f32 %v4931_v33, %v6668_v8  ;;  %vm2292_vm7 = vweird.f32 %v4931_v33  ;;  %v1001_v49 = vmax.f32 %v664_v39, 0.0 }
 0x1f3   :  { %v4701_v61 = vmul.f32 -1.442695, %v1570_v7  ;;  %1282 = vadd.xlane.f32.xlu1 %v1132_v47  ;;  %vm2293_vm5 = vmor %vm2291_vm3, %vm2292_vm7  ;;  %v2298_v25 = vor.u32 1.1754944e-38, %v2297_v24  ;;  %v1164_v5 = vmul.f32 %v6336_v0, %v1032_v16  ;;  %vm2296_vm10 = vcmp.eq.f32.partialorder %v2295_v4, 8.507059e+37 }
 0x1f4   :  { %v6698_v13 = vsel %vm9428_vm6, %v4297_v31, %v4296_v19  ;;  %v2288_v14 = vsub.f32 1.0, %v2287_v3  ;;  %v1261_v18 = vpop.xlane.xlu2 %1260  ;;  %v1539_v9 = vadd.f32 %v5611_v41, %v1325_v20  ;;  %v760_v19 = vadd.f32 %v6325_v40, %v759_v30 }
 0x1f5   :  { %4932 = vpow2.f32 %v4701_v61  ;;  %v1507_v57 = vadd.f32 %v5611_v41, %v1261_v18  ;;  %1346 = vadd.xlane.f32.xlu0 %v1164_v5  ;;  %v1133_v17 = vmul.f32 %v6336_v0, %v1001_v49  ;;  %v1508_v26 = vadd.f32 %v5611_v41, %v1263_v48  ;;  %v858_v5 = vpop.f32.mrf.mxu2 }
 0x1f6   :  { %v2289_v29 = vmul.f32 %v4931_v33, %v2288_v14  ;;  %v4670_v23 = vmul.f32 -1.442695, %v1539_v9  ;;  %v1033_v60 = vmax.f32 %v760_v19, 0.0  ;;  %v856_v62 = vadd.f32 %v6325_v40, %v855_v27  ;;  %v762_v18 = vpop.f32.mrf.mxu1 }
 0x1f7   :  { %v4638_v53 = vmul.f32 -1.442695, %v1507_v57  ;;  %v4639_v46 = vmul.f32 -1.442695, %v1508_v26  ;;  %v1601_v31 = vadd.f32 %v5611_v41, %v6644_v63  ;;  %v6729_v63 = vld [vmem:[%s9414_s3] ss:$0 sm:$0xff]  ;;  %v1571_v39 = vadd.f32 %v5611_v41, %v6663_v6  ;;  %v951_v57 = vpop.f32.mrf.mxu3 }
 0x1f8   :  { %v2290_v54 = vadd.f32 %v4931_v33, %v2289_v29  ;;  %v1065_v3 = vmax.f32 %v856_v62, 0.0  ;;  %v1602_v4 = vadd.f32 %v5611_v41, %v6683_v36  ;;  %vm9436_vm7 = vcmask 786112  }
 0x1f9   :  { %4934 = vpow2.f32 %v4638_v53  ;;  %1284 = vadd.xlane.f32.xlu2 %v1133_v17  ;;  %v4732_v40 = vmul.f32 -1.442695, %v1601_v31 }
 0x1fa   :  { %v2294_v21 = vsel %vm2293_vm5, %v4931_v33, %v2290_v54  ;;  %v6753_v48 = vmul.f32 -1.442695, %v1602_v4 }
 0x1fb   :  { %v4933_v50 = vpop.eup %4932  ;;  %v2299_v58 = vsel %vm2296_vm10, %v2298_v25, %v2294_v21  ;;  %v6740_v25 = vadd.s32 4294967208, %v5647_v34  ;;  %v6743_v21 = vmul.f32 -1.442695, %v1571_v39 }
 0x1fc   :  { %v4224_v43 = vperm.slane %v2299_v58, %v6677_v11  ;;  %v2082_v8 = vadd.f32 1.0, %v4933_v50  ;;  %v6749_v50 = vld [vmem:[%s9413_s2] ss:$0 sm:$0xff] }
 0x1fd   :  { %9530 = vst [vmem:[#allocation17_spill] sm:$0xff] %v6740_v25  ;;  %v763_v58 = vadd.f32 %v6749_v50, %v762_v18  ;;  %v952_v26 = vadd.f32 %v6749_v50, %v951_v57 }
 0x1fe   :  { %v6714_v56 = vsel %vm9428_vm6, %v4224_v43, %v6647_v44  ;;  %4936 = vrcp.f32 %v2082_v8  ;;  %v1165_v44 = vmul.f32 %v6336_v0, %v1033_v60  ;;  %v3257_v14 = vand.u32 2147483648, %v2082_v8  ;;  %v666_v60 = vpop.f32.mrf.mxu0 }
 0x1ff   :  { %4938 = vpow2.f32 %v4670_v23  ;;  %v4935_v32 = vpop.eup %4934  ;;  %v3255_v24 = vand.u32 2147483647, %v2082_v8  ;;  %v1197_v0 = vmul.f32 %v6729_v63, %v1065_v3  ;;  %vm3251_vm0 = vweird.f32 %v2082_v8 }
 0x200   :  { %v6720_v35 = vadd.f32 1.0, %v4935_v32  ;;  %4940 = vpow2.f32 %v4639_v46  ;;  %1348 = vadd.xlane.f32.xlu1 %v1165_v44  ;;  %v3258_v54 = vor.u32 1.1754944e-38, %v3257_v14  ;;  %v6760_v23 = vadd.f32 %v6749_v50, %v858_v5  ;;  %v1327_v32 = vpop.xlane.xlu2 %1326 }
 0x201   :  { %1412 = vadd.xlane.f32.xlu0 %v1197_v0  ;;  %vm3256_vm13 = vcmp.eq.f32.partialorder %v3255_v24, 8.507059e+37  ;;  %v1097_v14 = vmax.f32 %v952_v26, 0.0 }
 0x202   :  { %4942 = vrcp.f32 %v6720_v35  ;;  %v2310_v9 = vand.u32 2147483647, %v6720_v35  ;;  %v2312_v17 = vand.u32 2147483648, %v6720_v35  ;;  %vm2306_vm5 = vweird.f32 %v6720_v35 }
 0x204   :  { %v4937_v33 = vpop.eup %4936  ;;  %vm6771_vm10 = vcmp.eq.f32.partialorder %v2310_v9, 8.507059e+37  ;;  %v1229_v9 = vmul.f32 %v6729_v63, %v1097_v14 }
 0x205   :  { %v3247_v7 = vmul.f32 %v4937_v33, %v2082_v8  ;;  %v4939_v59 = vpop.eup %4938  ;;  %vm3252_vm15 = vweird.f32 %v4937_v33  ;;  %v6756_v8 = vpop.xlane.xlu1 %1390 }
 0x206   :  { %v6724_v16 = vadd.f32 1.0, %v4939_v59  ;;  %v4941_v47 = vpop.eup %4940  ;;  %vm3253_vm1 = vmor %vm3251_vm0, %vm3252_vm15 }
 0x207   :  { %v3248_v61 = vsub.f32 1.0, %v3247_v7  ;;  %v6737_v49 = vadd.f32 1.0, %v4941_v47  ;;  %v1034_v7 = vmax.f32 %v763_v58, 0.0  ;;  %v1066_v47 = vmax.f32 %v6760_v23, 0.0 }
 0x208   :  { %4944 = vrcp.f32 %v6724_v16  ;;  %v4943_v20 = vpop.eup %4942  ;;  %v2790_v44 = vand.u32 2147483647, %v6724_v16  ;;  %vm2786_vm0 = vweird.f32 %v6724_v16  ;;  %1476 = vadd.xlane.f32.xlu1 %v1229_v9 }
 0x209   :  { %v3249_v42 = vmul.f32 %v4937_v33, %v3248_v61  ;;  %4946 = vpow2.f32 %v4732_v40  ;;  %v2302_v6 = vmul.f32 %v4943_v20, %v6720_v35  ;;  %vm2307_vm3 = vweird.f32 %v4943_v20 }
 0x20a   :  { %4948 = vrcp.f32 %v6737_v49  ;;  %v667_v61 = vadd.f32 %v6749_v50, %v666_v60  ;;  %vm2308_vm15 = vmor %vm2306_vm5, %vm2307_vm3  ;;  %v2313_v40 = vor.u32 1.1754944e-38, %v2312_v17  ;;  %v1540_v35 = vadd.f32 %v5611_v41, %v1327_v32 }
 0x20b   :  { %v3250_v29 = vadd.f32 %v4937_v33, %v3249_v42  ;;  %v2303_v43 = vsub.f32 1.0, %v2302_v6  ;;  %v2327_v17 = vand.u32 2147483648, %v6737_v49 }
 0x20c   :  { %v4671_v18 = vmul.f32 -1.442695, %v1540_v35  ;;  %v1002_v5 = vmax.f32 %v667_v61, 0.0  ;;  %v1198_v61 = vmul.f32 %v6729_v63, %v1066_v47 }
 0x20d   :  { %v3254_v30 = vsel %vm3253_vm1, %v4937_v33, %v3250_v29  ;;  %v2304_v62 = vmul.f32 %v4943_v20, %v2303_v43  ;;  %v2325_v43 = vand.u32 2147483647, %v6737_v49  ;;  %v1265_v23 = vpop.xlane.xlu1 %1264 }
 0x20e   :  { %v3259_v36 = vsel %vm3256_vm13, %v3258_v54, %v3254_v30  ;;  %v4945_v19 = vpop.eup %4944  ;;  %vm6783_vm13 = vcmp.eq.f32.partialorder %v2790_v44, 8.507059e+37  ;;  %4950 = vpow2.f32 %v4671_v18  ;;  %v1509_v31 = vadd.f32 %v5611_v41, %v1265_v23 }
 0x20f   :  { %v4359_v53 = vperm.slane %v3259_v36, %v6677_v11  ;;  %v2782_v46 = vmul.f32 %v4945_v19, %v6724_v16  ;;  %v6768_v33 = vpop.eup %4946  ;;  %v2305_v3 = vadd.f32 %v4943_v20, %v2304_v62  ;;  %vm2787_vm1 = vweird.f32 %v4945_v19 }
 0x210   :  { %v4949_v42 = vpop.eup %4948  ;;  %vm2788_vm3 = vmor %vm2786_vm0, %vm2787_vm1  ;;  %v1166_v36 = vmul.f32 %v6729_v63, %v1034_v7  ;;  %4952 = vpow2.f32 %v6743_v21  ;;  %v1603_v44 = vadd.f32 %v5611_v41, %v6694_v22  ;;  %v2328_v7 = vor.u32 1.1754944e-38, %v2327_v17  ;;  %1414 = vadd.xlane.f32.xlu1 %v1198_v61 }
 0x211   :  { %v6765_v27 = vsel %vm9428_vm6, %v4359_v53, %v6687_v28  ;;  %v2783_v59 = vsub.f32 1.0, %v2782_v46  ;;  %v2792_v28 = vand.u32 2147483648, %v6724_v16  ;;  %v2309_v24 = vsel %vm2308_vm15, %v4943_v20, %v2305_v3  ;;  %v861_v20 = vpop.f32.mrf.mxu2 }
 0x212   :  { %9531 = vst [vmem:[#allocation18_spill] sm:$0xff] %v6765_v27  ;;  %v2314_v39 = vsel %vm6771_vm10, %v2313_v40, %v2309_v24  ;;  %v2317_v4 = vmul.f32 %v4949_v42, %v6737_v49  ;;  %vm2322_vm5 = vweird.f32 %v4949_v42  ;;  %1350 = vadd.xlane.f32.xlu2 %v1166_v36  ;;  %v862_v60 = vadd.f32 %v6749_v50, %v861_v20 }
 0x213   :  { %v2784_v0 = vmul.f32 %v4945_v19, %v2783_v59  ;;  %v4228_v54 = vperm.slane %v2314_v39, %v6740_v25  ;;  %v2793_v6 = vor.u32 1.1754944e-38, %v2792_v28  ;;  %vm2321_vm10 = vweird.f32 %v6737_v49  ;;  %v954_v49 = vpop.f32.mrf.mxu3 }
 0x214   :  { %v2318_v57 = vsub.f32 1.0, %v2317_v4  ;;  %v1067_v32 = vmax.f32 %v862_v60, 0.0  ;;  %4954 = vpow2.f32 %v6753_v48  ;;  %vm2323_vm15 = vmor %vm2321_vm10, %vm2322_vm5  ;;  %v4951_v3 = vpop.eup %4950  ;;  %vm2326_vm0 = vcmp.eq.f32.partialorder %v2325_v43, 8.507059e+37  ;;  %v1329_v4 = vpop.xlane.xlu0 %1328 }
 0x215   :  { %v2785_v30 = vadd.f32 %v4945_v19, %v2784_v0  ;;  %v4230_v58 = vsel %vm9436_vm7, %v4228_v54, %v6714_v56  ;;  %v6803_v56 = vadd.s32 4294967200, %v5647_v34  ;;  %vm9435_vm1 = vcmask 851712   ;;  %v1455_v43 = vpop.xlane.xlu2 %1454 }
 0x216   :  { %v2319_v16 = vmul.f32 %v4949_v42, %v2318_v57  ;;  %v1199_v28 = vmul.f32 %v6729_v63, %v1067_v32  ;;  %v2052_v40 = vadd.f32 1.0, %v4951_v3  ;;  %v955_v22 = vadd.f32 %v6749_v50, %v954_v49  ;;  %v4953_v35 = vpop.eup %4952  ;;  %v765_v49 = vpop.f32.mrf.mxu1 }
 0x217   :  { %v2789_v53 = vsel %vm2788_vm3, %v4945_v19, %v2785_v30  ;;  %9536 = vst [vmem:[#allocation19_spill] sm:$0xff] %v6803_v56  ;;  %v1134_v19 = vmul.f32 %v6729_v63, %v1002_v5  ;;  %v4640_v14 = vmul.f32 -1.442695, %v1509_v31  ;;  %v4734_v24 = vmul.f32 -1.442695, %v1603_v44  ;;  %v669_v44 = vpop.f32.mrf.mxu0 }
 0x218   :  { %v2794_v26 = vsel %vm6783_vm13, %v2793_v6, %v2789_v53  ;;  %v2320_v46 = vadd.f32 %v4949_v42, %v2319_v16  ;;  %4956 = vrcp.f32 %v2052_v40  ;;  %v6824_v39 = vadd.f32 1.0, %v6768_v33 }
 0x219   :  { %v4299_v62 = vperm.slane %v2794_v26, %v6740_v25  ;;  %1286 = vadd.xlane.f32.xlu0 %v1134_v19  ;;  %v1098_v47 = vmax.f32 %v955_v22, 0.0  ;;  %v6826_v29 = vadd.f32 1.0, %v4953_v35  ;;  %4958 = vpow2.f32 %v4640_v14 }
 0x21a   :  { %v2324_v59 = vsel %vm2323_vm15, %v4949_v42, %v2320_v46  ;;  %1416 = vadd.xlane.f32.xlu2 %v1199_v28  ;;  %v4955_v42 = vpop.eup %4954  ;;  %4960 = vpow2.f32 %v4734_v24  ;;  %v2807_v57 = vand.u32 2147483648, %v2052_v40  ;;  %v1572_v36 = vadd.f32 %v5611_v41, %v6756_v8 }
 0x21b   :  { %v6813_v21 = vsel %vm9436_vm7, %v4299_v62, %v6698_v13  ;;  %v2329_v48 = vsel %vm2326_vm0, %v2328_v7, %v2324_v59  ;;  %4962 = vrcp.f32 %v6824_v39  ;;  %v1230_v54 = vmul.f32 %v6729_v63, %v1098_v47  ;;  %v957_v17 = vpop.f32.mrf.mxu3 }
 0x21c   :  { %v4232_v13 = vperm.slane %v2329_v48, %v6803_v56  ;;  %4964 = vrcp.f32 %v6826_v29  ;;  %v6831_v30 = vadd.f32 1.0, %v4955_v42  ;;  %v2805_v53 = vand.u32 2147483647, %v2052_v40  ;;  %v1395_v62 = vpop.xlane.xlu0 %1394 }
 0x21d   :  { %vm2801_vm3 = vweird.f32 %v2052_v40  ;;  %v1541_v8 = vadd.f32 %v5611_v41, %v1329_v4  ;;  %v2808_v19 = vor.u32 1.1754944e-38, %v2807_v57  ;;  %v4703_v46 = vmul.f32 -1.442695, %v1572_v36 }
 0x21e   :  { %v6821_v0 = vsel %vm9435_vm1, %v4232_v13, %v4230_v58  ;;  %v4957_v18 = vpop.eup %4956  ;;  %4966 = vrcp.f32 %v6831_v30  ;;  %v958_v32 = vadd.f32 %v6749_v50, %v957_v17  ;;  %vm2806_vm10 = vcmp.eq.f32.partialorder %v2805_v53, 8.507059e+37 }
 0x21f   :  { %v2797_v6 = vmul.f32 %v4957_v18, %v2052_v40  ;;  %v4959_v5 = vpop.eup %4958  ;;  %vm2802_vm13 = vweird.f32 %v4957_v18  ;;  %v4672_v48 = vmul.f32 -1.442695, %v1541_v8  ;;  %v1604_v40 = vadd.f32 %v5611_v41, %v1455_v43 }
 0x220   :  { %v4961_v20 = vpop.eup %4960  ;;  %v6835_v9 = vadd.f32 1.0, %v4959_v5  ;;  %vm2803_vm5 = vmor %vm2801_vm3, %vm2802_vm13  ;;  %v670_v13 = vadd.f32 %v6749_v50, %v669_v44  ;;  %v1099_v14 = vmax.f32 %v958_v32, 0.0  ;;  %v6864_v42 = vadd.f32 %v6749_v50, %v6051_v37  ;;  %v6883_v44 = vpop.xlane.xlu1 %1456 }
 0x221   :  { %1478 = vadd.xlane.f32.xlu0 %v1230_v54  ;;  %v2798_v33 = vsub.f32 1.0, %v2797_v6  ;;  %v6838_v23 = vpop.eup %4962  ;;  %v6843_v16 = vadd.f32 1.0, %v4961_v20  ;;  %v1574_v4 = vadd.f32 %v5611_v41, %v1395_v62  ;;  %v4735_v6 = vmul.f32 -1.442695, %v1604_v40 }
 0x222   :  { %4968 = vrcp.f32 %v6835_v9  ;;  %v6841_v26 = vpop.eup %4964  ;;  %v3712_v7 = vmul.f32 %v6838_v23, %v6824_v39  ;;  %v2342_v20 = vand.u32 2147483648, %v6835_v9  ;;  %v1003_v57 = vmax.f32 %v670_v13, 0.0 }
 0x223   :  { %v2799_v58 = vmul.f32 %v4957_v18, %v2798_v33  ;;  %v3262_v3 = vmul.f32 %v6841_v26, %v6826_v29  ;;  %4970 = vrcp.f32 %v6843_v16  ;;  %v1393_v33 = vpop.xlane.xlu2 %1392  ;;  %v1231_v36 = vmul.f32 %v6729_v63, %v1099_v14 }
 0x224   :  { %v6851_v28 = vpop.eup %4966  ;;  %4972 = vpow2.f32 %v4703_v46  ;;  %v3713_v47 = vsub.f32 1.0, %v3712_v7  ;;  %v2340_v43 = vand.u32 2147483647, %v6835_v9  ;;  %v6876_v17 = vpop.xlane.xlu0 %1458  ;;  %vm3716_vm0 = vweird.f32 %v6824_v39 }
 0x225   :  { %v2800_v60 = vadd.f32 %v4957_v18, %v2799_v58  ;;  %v3263_v54 = vsub.f32 1.0, %v3262_v3  ;;  %4974 = vpow2.f32 %v4672_v48  ;;  %v3720_v58 = vand.u32 2147483647, %v6824_v39  ;;  %1480 = vadd.xlane.f32.xlu2 %v1231_v36  ;;  %v768_v48 = vpop.f32.mrf.mxu1 }
 0x226   :  { %v3714_v8 = vmul.f32 %v6838_v23, %v3713_v47  ;;  %v3722_v62 = vand.u32 2147483648, %v6824_v39  ;;  %4976 = vpow2.f32 %v4735_v6  ;;  %vm2336_vm13 = vweird.f32 %v6835_v9 }
 0x227   :  { %v2804_v31 = vsel %vm2803_vm5, %v4957_v18, %v2800_v60  ;;  %v766_v18 = vadd.f32 %v6749_v50, %v765_v49  ;;  %v3264_v32 = vmul.f32 %v6841_v26, %v3263_v54  ;;  %v1135_v49 = vmul.f32 %v6729_v63, %v1003_v57 }
 0x228   :  { %v2809_v59 = vsel %vm2806_vm10, %v2808_v19, %v2804_v31  ;;  %v4969_v22 = vpop.eup %4968  ;;  %v4705_v19 = vmul.f32 -1.442695, %v1574_v4  ;;  %v6892_v14 = vadd.s32 4294967192, %v5647_v34  ;;  %vm2341_vm5 = vcmp.eq.f32.partialorder %v2340_v43, 8.507059e+37 }
 0x229   :  { %v4301_v61 = vperm.slane %v2809_v59, %v6803_v56  ;;  %v2332_v24 = vmul.f32 %v4969_v22, %v6835_v9  ;;  %v6872_v37 = vpop.eup %4970  ;;  %vm2337_vm15 = vweird.f32 %v4969_v22  ;;  %v1035_v46 = vmax.f32 %v766_v18, 0.0  ;;  %1288 = vadd.xlane.f32.xlu1 %v1135_v49 }
 0x22a   :  { %v4973_v60 = vpop.eup %4972  ;;  %v3742_v3 = vmul.f32 %v6872_v37, %v6843_v16  ;;  %vm2338_vm3 = vmor %vm2336_vm13, %vm2337_vm15  ;;  %v2343_v59 = vor.u32 1.1754944e-38, %v2342_v20  ;;  %4978 = vpow2.f32 %v4705_v19  ;;  %v1573_v47 = vadd.f32 %v5611_v41, %v1393_v33 }
 0x22b   :  { %v6859_v35 = vsel %vm9435_vm1, %v4301_v61, %v6813_v21  ;;  %v2333_v5 = vsub.f32 1.0, %v2332_v24  ;;  %v3727_v21 = vmul.f32 %v6851_v28, %v6831_v30  ;;  %v672_v61 = vpop.f32.mrf.mxu0  ;;  %v4975_v40 = vpop.eup %4974  ;;  %v6889_v13 = vadd.f32 1.0, %v4973_v60 }
 0x22c   :  { %9537 = vst [vmem:[#allocation20_spill] sm:$0xff] %v6859_v35  ;;  %v1167_v4 = vmul.f32 %v6729_v63, %v1035_v46  ;;  %vm3717_vm10 = vweird.f32 %v6838_v23  ;;  %v673_v54 = vadd.f32 %v6749_v50, %v672_v61  ;;  %v769_v6 = vadd.f32 %v6749_v50, %v768_v48  ;;  %v4977_v57 = vpop.eup %4976  ;;  %v6914_v43 = vpop.xlane.xlu2 %1266 }
 0x22d   :  { %v2334_v53 = vmul.f32 %v4969_v22, %v2333_v5  ;;  %v3728_v7 = vsub.f32 1.0, %v3727_v21  ;;  %v864_v5 = vpop.f32.mrf.mxu2  ;;  %vm6900_vm15 = vcmp.eq.f32.partialorder %v3720_v58, 8.507059e+37  ;;  %v3743_v20 = vsub.f32 1.0, %v3742_v3 }
 0x22e   :  { %v6905_v33 = vadd.f32 1.0, %v4975_v40  ;;  %vm9420_vm13 = vcmask 917312   ;;  %1352 = vadd.xlane.f32.xlu0 %v1167_v4  ;;  %v3715_v36 = vadd.f32 %v6838_v23, %v3714_v8  ;;  %v3723_v60 = vor.u32 1.1754944e-38, %v3722_v62  ;;  %v6928_v62 = vpop.xlane.xlu0 %1268 }
 0x22f   :  { %v2335_v31 = vadd.f32 %v4969_v22, %v2334_v53  ;;  %v3265_v53 = vadd.f32 %v6841_v26, %v3264_v32  ;;  %v3729_v19 = vmul.f32 %v6851_v28, %v3728_v7  ;;  %4980 = vrcp.f32 %v6889_v13 }
 0x230   :  { %v4704_v46 = vmul.f32 -1.442695, %v1573_v47  ;;  %vm3266_vm14 = vweird.f32 %v6826_v29  ;;  %v1036_v32 = vmax.f32 %v769_v6, 0.0  ;;  %v4979_v7 = vpop.eup %4978  ;;  %v3744_v39 = vmul.f32 %v6872_v37, %v3743_v20  ;;  %v771_v47 = vpop.f32.mrf.mxu1 }
 0x231   :  { %v2339_v9 = vsel %vm2338_vm3, %v4969_v22, %v2335_v31  ;;  %v3272_v22 = vand.u32 2147483648, %v6826_v29  ;;  %vm3267_vm3 = vweird.f32 %v6841_v26  ;;  %v865_v31 = vadd.f32 %v6749_v50, %v864_v5 }
 0x232   :  { %v2344_v24 = vsel %vm2341_vm5, %v2343_v59, %v2339_v9  ;;  %vm6922_vm5 = vmor %vm3716_vm0, %vm3717_vm10  ;;  %v3270_v59 = vand.u32 2147483647, %v6826_v29  ;;  %4982 = vrcp.f32 %v6905_v33  ;;  %v6937_v49 = vadd.f32 1.0, %v4977_v57 }
 0x233   :  { %v4236_v18 = vperm.slane %v2344_v24, %v6892_v14  ;;  %v3719_v61 = vsel %vm6922_vm5, %v6838_v23, %v3715_v36  ;;  %v3273_v40 = vor.u32 1.1754944e-38, %v3272_v22  ;;  %v3730_v9 = vadd.f32 %v6851_v28, %v3729_v19  ;;  %v6949_v24 = vpop.xlane.xlu1 %1330  ;;  %v960_v19 = vpop.f32.mrf.mxu3 }
 0x234   :  { %vm3732_vm0 = vweird.f32 %v6851_v28  ;;  %v3737_v29 = vand.u32 2147483648, %v6831_v30  ;;  %4984 = vpow2.f32 %v4704_v46  ;;  %v6951_v4 = vadd.f32 1.0, %v4979_v7  ;;  %v6994_v7 = vpop.xlane.xlu2 %1332 }
 0x235   :  { %v6912_v58 = vsel %vm9420_vm13, %v4236_v18, %v6821_v0  ;;  %v1004_v0 = vmax.f32 %v673_v54, 0.0  ;;  %vm6930_vm13 = vmor %vm3266_vm14, %vm3267_vm3  ;;  %vm3731_vm14 = vweird.f32 %v6831_v30  ;;  %v1068_v23 = vmax.f32 %v865_v31, 0.0  ;;  %v6955_v54 = vpop.eup %4980 }
 0x236   :  { %9540 = vst [vmem:[#allocation21_spill] sm:$0xff] %v6912_v58  ;;  %v3269_v48 = vsel %vm6930_vm13, %v6841_v26, %v3265_v53  ;;  %v1168_v26 = vmul.f32 %v6729_v63, %v1036_v32  ;;  %v3735_v6 = vand.u32 2147483647, %v6831_v30  ;;  %v3745_v5 = vadd.f32 %v6872_v37, %v3744_v39  ;;  %vm6969_vm3 = vmor %vm3731_vm14, %vm3732_vm0  ;;  %v867_v53 = vpop.f32.mrf.mxu2  ;;  %v675_v39 = vpop.f32.mrf.mxu0 }
 0x237   :  { %v1136_v18 = vmul.f32 %v6729_v63, %v1004_v0  ;;  %vm3747_vm10 = vweird.f32 %v6872_v37  ;;  %4986 = vrcp.f32 %v6937_v49  ;;  %v6963_v22 = vsel %vm6900_vm15, %v3723_v60, %v3719_v61 }
 0x238   :  { %9545 = vst [vmem:[#allocation22_spill] sm:$0xff] %v6963_v22  ;;  %vm3271_vm13 = vcmp.eq.f32.partialorder %v3270_v59, 8.507059e+37  ;;  %v3752_v57 = vand.u32 2147483648, %v6843_v16  ;;  %1354 = vadd.xlane.f32.xlu1 %v1168_v26  ;;  %v772_v36 = vadd.f32 %v6749_v50, %v771_v47  ;;  %v6975_v21 = vpop.eup %4982  ;;  %v3734_v30 = vsel %vm6969_vm3, %v6851_v28, %v3730_v9 }
 0x239   :  { %1290 = vadd.xlane.f32.xlu2 %v1136_v18  ;;  %v6977_v60 = vsel %vm3271_vm13, %v3273_v40, %v3269_v48  ;;  %vm3746_vm15 = vweird.f32 %v6843_v16  ;;  %v3750_v46 = vand.u32 2147483647, %v6843_v16  ;;  %v3738_v8 = vor.u32 1.1754944e-38, %v3737_v29  ;;  %v1335_v29 = vpop.xlane.xlu0 %1334 }
 0x23a   :  { %9548 = vst [vmem:[#allocation23_spill] sm:$0xff] %v6977_v60  ;;  %vm6986_vm5 = vmor %vm3746_vm15, %vm3747_vm10  ;;  %v3277_v32 = vmul.f32 %v6955_v54, %v6889_v13  ;;  %4988 = vrcp.f32 %v6951_v4  ;;  %v1200_v31 = vmul.f32 %v6729_v63, %v1068_v23  ;;  %v4985_v28 = vpop.eup %4984  ;;  %vm3736_vm14 = vcmp.eq.f32.partialorder %v3735_v6, 8.507059e+37 }
 0x23b   :  { %v3749_v16 = vsel %vm6986_vm5, %v6872_v37, %v3745_v5  ;;  %v961_v59 = vadd.f32 %v6749_v50, %v960_v19  ;;  %v7001_v61 = vsel %vm3736_vm14, %v3738_v8, %v3734_v30  ;;  %v3753_v48 = vor.u32 1.1754944e-38, %v3752_v57  ;;  %v7020_v30 = vpop.xlane.xlu1 %1396 }
 0x23c   :  { %9551 = vst [vmem:[#allocation24_spill] sm:$0xff] %v7001_v61  ;;  %v2812_v40 = vmul.f32 %v6975_v21, %v6905_v33  ;;  %v1037_v9 = vmax.f32 %v772_v36, 0.0  ;;  %1418 = vadd.xlane.f32.xlu0 %v1200_v31  ;;  %vm3751_vm0 = vcmp.eq.f32.partialorder %v3750_v46, 8.507059e+37  ;;  %v3287_v18 = vand.u32 2147483648, %v6889_v13 }
 0x23d   :  { %v7005_v47 = vpop.eup %4986  ;;  %v7012_v26 = vsel %vm3751_vm0, %v3753_v48, %v3749_v16  ;;  %v3278_v6 = vsub.f32 1.0, %v3277_v32  ;;  %v7014_v5 = vadd.f32 1.0, %v4985_v28  ;;  %v676_v20 = vadd.f32 %v6749_v50, %v675_v39 }
 0x23e   :  { %9552 = vst [vmem:[#allocation25_spill] sm:$0xff] %v7012_v26  ;;  %v3285_v36 = vand.u32 2147483647, %v6889_v13  ;;  %v1100_v19 = vmax.f32 %v961_v59, 0.0  ;;  %v1544_v8 = vadd.f32 %v5611_v41, %v1335_v29  ;;  %v2813_v0 = vsub.f32 1.0, %v2812_v40 }
 0x23f   :  { %v3757_v32 = vmul.f32 %v7005_v47, %v6937_v49  ;;  %v1605_v31 = vadd.f32 %v5611_v41, %v6883_v44  ;;  %v1169_v28 = vmul.f32 %v6729_v63, %v1037_v9  ;;  %vm3281_vm10 = vweird.f32 %v6889_v13  ;;  %v870_v44 = vpop.f32.mrf.mxu2 }
 0x240   :  { %v7023_v46 = vpop.eup %4988  ;;  %v3288_v59 = vor.u32 1.1754944e-38, %v3287_v18  ;;  %v7034_v39 = vadd.s32 4294967184, %v5647_v34  ;;  %v3279_v48 = vmul.f32 %v6955_v54, %v3278_v6  ;;  %4990 = vrcp.f32 %v7014_v5 }
 0x241   :  { %v868_v40 = vadd.f32 %v6749_v50, %v867_v53  ;;  %v1005_v29 = vmax.f32 %v676_v20, 0.0  ;;  %1356 = vadd.xlane.f32.xlu2 %v1169_v28  ;;  %vm2816_vm13 = vweird.f32 %v6905_v33  ;;  %v3307_v9 = vmul.f32 %v7023_v46, %v6951_v4  ;;  %v1399_v20 = vpop.xlane.xlu2 %1398 }
 0x242   :  { %9553 = vst [vmem:[#allocation26_spill] sm:$0xff] %v7034_v39  ;;  %v4675_v16 = vmul.f32 -1.442695, %v1544_v8  ;;  %v1232_v18 = vmul.f32 %v6729_v63, %v1100_v19  ;;  %vm7043_vm3 = vcmp.eq.f32.partialorder %v3285_v36, 8.507059e+37  ;;  %v2814_v6 = vmul.f32 %v6975_v21, %v2813_v0 }
 0x243   :  { %v3758_v37 = vsub.f32 1.0, %v3757_v32  ;;  %v4736_v23 = vmul.f32 -1.442695, %v1605_v31  ;;  %v1606_v53 = vadd.f32 %v5611_v41, %v6876_v17  ;;  %vm3282_vm15 = vweird.f32 %v6955_v54 }
 0x244   :  { %v2820_v28 = vand.u32 2147483647, %v6905_v33  ;;  %v2822_v8 = vand.u32 2147483648, %v6905_v33  ;;  %1482 = vadd.xlane.f32.xlu1 %v1232_v18  ;;  %v871_v36 = vadd.f32 %v6749_v50, %v870_v44  ;;  %v3280_v19 = vadd.f32 %v6955_v54, %v3279_v48  ;;  %vm7066_vm14 = vmor %vm3281_vm10, %vm3282_vm15 }
 0x245   :  { %v1069_v3 = vmax.f32 %v868_v40, 0.0  ;;  %4992 = vpow2.f32 %v4675_v16  ;;  %v1137_v0 = vmul.f32 %v6729_v63, %v1005_v29  ;;  %vm2817_vm5 = vweird.f32 %v6975_v21 }
 0x246   :  { %v3308_v32 = vsub.f32 1.0, %v3307_v9  ;;  %v1070_v17 = vmax.f32 %v871_v36, 0.0  ;;  %v1576_v31 = vadd.f32 %v5611_v41, %v1399_v20  ;;  %v7058_v58 = vpop.eup %4990  ;;  %v2815_v2 = vadd.f32 %v6975_v21, %v2814_v6  ;;  %v1271_v9 = vpop.xlane.xlu1 %1270  ;;  %vm7085_vm10 = vmor %vm2816_vm13, %vm2817_vm5 }
 0x247   :  { %v3759_v18 = vmul.f32 %v7005_v47, %v3758_v37  ;;  %4994 = vpow2.f32 %v4736_v23  ;;  %v4737_v44 = vmul.f32 -1.442695, %v1606_v53  ;;  %1292 = vadd.xlane.f32.xlu0 %v1137_v0  ;;  %vm7070_vm0 = vcmp.eq.f32.partialorder %v2820_v28, 8.507059e+37  ;;  %v1463_v53 = vpop.xlane.xlu0 %1462  ;;  %v873_v60 = vpop.f32.mrf.mxu2 }
 0x248   :  { %v3765_v40 = vand.u32 2147483647, %v6937_v49  ;;  %v4707_v29 = vmul.f32 -1.442695, %v1576_v31  ;;  %v1202_v23 = vmul.f32 %v6729_v63, %v1070_v17  ;;  %v3284_v37 = vsel %vm7066_vm14, %v6955_v54, %v3280_v19 }
 0x249   :  { %v2823_v6 = vor.u32 1.1754944e-38, %v2822_v8  ;;  %v3767_v13 = vand.u32 2147483648, %v6937_v49  ;;  %v1201_v20 = vmul.f32 %v6729_v63, %v1069_v3  ;;  %vm3762_vm15 = vweird.f32 %v7005_v47 }
 0x24a   :  { %v3309_v36 = vmul.f32 %v7023_v46, %v3308_v32  ;;  %v3292_v54 = vmul.f32 %v7058_v58, %v7014_v5  ;;  %4996 = vpow2.f32 %v4707_v29  ;;  %1422 = vadd.xlane.f32.xlu2 %v1202_v23  ;;  %v2819_v3 = vsel %vm7085_vm10, %v6975_v21, %v2815_v2 }
 0x24b   :  { %v4993_v8 = vpop.eup %4992  ;;  %v3760_v33 = vadd.f32 %v7005_v47, %v3759_v18  ;;  %4998 = vpow2.f32 %v4737_v44  ;;  %v1512_v19 = vadd.f32 %v5611_v41, %v1271_v9  ;;  %v7100_v0 = vsel %vm7043_vm3, %v3288_v59, %v3284_v37 }
 0x24c   :  { %9562 = vst [vmem:[#allocation27_spill] sm:$0xff] %v7100_v0  ;;  %vm3761_vm13 = vweird.f32 %v6937_v49  ;;  %vm7103_vm5 = vcmp.eq.f32.partialorder %v3765_v40, 8.507059e+37  ;;  %v1608_v17 = vadd.f32 %v5611_v41, %v1463_v53  ;;  %1420 = vadd.xlane.f32.xlu1 %v1201_v20  ;;  %v3768_v2 = vor.u32 1.1754944e-38, %v3767_v13 }
 0x24d   :  { %v4995_v31 = vpop.eup %4994  ;;  %v3315_v21 = vand.u32 2147483647, %v6951_v4  ;;  %v3317_v18 = vand.u32 2147483648, %v6951_v4  ;;  %v7110_v44 = vadd.f32 1.0, %v4993_v8  ;;  %v7114_v57 = vsel %vm7070_vm0, %v2823_v6, %v2819_v3  ;;  %vm7118_vm3 = vmor %vm3761_vm13, %vm3762_vm15  ;;  %v963_v6 = vpop.f32.mrf.mxu3 }
 0x24e   :  { %9565 = vst [vmem:[#allocation28_spill] sm:$0xff] %v7114_v57  ;;  %v3310_v59 = vadd.f32 %v7023_v46, %v3309_v36  ;;  %vm3312_vm14 = vweird.f32 %v7023_v46  ;;  %v3293_v16 = vsub.f32 1.0, %v3292_v54  ;;  %v3764_v48 = vsel %vm7118_vm3, %v7005_v47, %v3760_v33 }
 0x24f   :  { %v1510_v29 = vadd.f32 %v5611_v41, %v6914_v43  ;;  %v4643_v9 = vmul.f32 -1.442695, %v1512_v19  ;;  %vm3311_vm0 = vweird.f32 %v6951_v4  ;;  %v7132_v37 = vadd.f32 1.0, %v4995_v31 }
 0x250   :  { %v4997_v23 = vpop.eup %4996  ;;  %5000 = vrcp.f32 %v7110_v44  ;;  %v4739_v13 = vmul.f32 -1.442695, %v1608_v17  ;;  %vm7137_vm10 = vmor %vm3311_vm0, %vm3312_vm14  ;;  %vm7141_vm15 = vcmp.eq.f32.partialorder %v3315_v21, 8.507059e+37  ;;  %v3318_v47 = vor.u32 1.1754944e-38, %v3317_v18 }
 0x251   :  { %v4999_v53 = vpop.eup %4998  ;;  %vm3296_vm13 = vweird.f32 %v7014_v5  ;;  %v7148_v4 = vsel %vm7103_vm5, %v3768_v2, %v3764_v48  ;;  %v3314_v36 = vsel %vm7137_vm10, %v7023_v46, %v3310_v59  ;;  %v3294_v54 = vmul.f32 %v7058_v58, %v3293_v16 }
 0x252   :  { %9572 = vst [vmem:[#allocation29_spill] sm:$0xff] %v7148_v4  ;;  %v964_v8 = vadd.f32 %v6749_v50, %v963_v6  ;;  %v3302_v3 = vand.u32 2147483648, %v7014_v5  ;;  %v4641_v33 = vmul.f32 -1.442695, %v1510_v29  ;;  %v7156_v19 = vadd.f32 1.0, %v4997_v23 }
 0x253   :  { %5002 = vpow2.f32 %v4643_v9  ;;  %v3782_v32 = vand.u32 2147483648, %v7132_v37  ;;  %v7160_v31 = vadd.f32 1.0, %v4999_v53  ;;  %v7166_v2 = vsel %vm7141_vm15, %v3318_v47, %v3314_v36  ;;  %v678_v36 = vpop.f32.mrf.mxu0 }
 0x254   :  { %5004 = vpow2.f32 %v4739_v13  ;;  %9573 = vst [vmem:[#allocation30_spill] sm:$0xff] %v7166_v2  ;;  %v1542_v21 = vadd.f32 %v5611_v41, %v6949_v24  ;;  %v7174_v49 = vadd.f32 %v7058_v58, %v3294_v54  ;;  %vm3297_vm5 = vweird.f32 %v7058_v58  ;;  %v774_v54 = vpop.f32.mrf.mxu1 }
 0x255   :  { %5006 = vrcp.f32 %v7156_v19  ;;  %v1101_v59 = vmax.f32 %v964_v8, 0.0  ;;  %v7178_v16 = vor.u32 1.1754944e-38, %v3302_v3  ;;  %v7185_v9 = vor.u32 1.1754944e-38, %v3782_v32  ;;  %vm7193_vm3 = vmor %vm3296_vm13, %vm3297_vm5  ;;  %v966_v29 = vpop.f32.mrf.mxu3 }
 0x256   :  { %v7171_v18 = vpop.eup %5000  ;;  %5008 = vrcp.f32 %v7132_v37  ;;  %v7189_v23 = vadd.s32 4294967176, %v5647_v34  ;;  %v7199_v43 = vmul.f32 -1.442695, %v1542_v21  ;;  %v1273_v21 = vpop.xlane.xlu2 %1272  ;;  %v2867_v46 = vand.u32 2147483648, %v7110_v44 }
 0x257   :  { %5010 = vpow2.f32 %v4641_v33  ;;  %v2857_v24 = vmul.f32 %v7171_v18, %v7110_v44  ;;  %9574 = vst [vmem:[#allocation31_spill] sm:$0xff] %v7185_v9  ;;  %v7207_v33 = vadd.f32 %v5611_v41, %v6928_v62  ;;  %v1233_v53 = vmul.f32 %v6729_v63, %v1101_v59 }
 0x258   :  { %5012 = vrcp.f32 %v7160_v31  ;;  %9575 = vst [vmem:[#allocation32_spill] sm:$0xff] %v7189_v23  ;;  %v3347_v20 = vand.u32 2147483648, %v7156_v19  ;;  %v679_v59 = vadd.f32 %v6749_v50, %v678_v36  ;;  %vm2861_vm14 = vweird.f32 %v7110_v44 }
 0x259   :  { %v5003_v6 = vpop.eup %5002  ;;  %v2858_v47 = vsub.f32 1.0, %v2857_v24  ;;  %1484 = vadd.xlane.f32.xlu0 %v1233_v53  ;;  %v967_v17 = vadd.f32 %v6749_v50, %v966_v29  ;;  %v1513_v2 = vadd.f32 %v5611_v41, %v1273_v21  ;;  %vm2862_vm0 = vweird.f32 %v7171_v18  ;;  %v1401_v29 = vpop.xlane.xlu0 %1400 }
 0x25a   :  { %v5005_v8 = vpop.eup %5004  ;;  %v7209_v32 = vadd.f32 1.0, %v5003_v6  ;;  %v7226_v6 = vadd.f32 %v6749_v50, %v774_v54  ;;  %v2868_v53 = vor.u32 1.1754944e-38, %v2867_v46  ;;  %vm3341_vm10 = vweird.f32 %v7156_v19  ;;  %vm7250_vm13 = vmor %vm2861_vm14, %vm2862_vm0 }
 0x25b   :  { %v7212_v48 = vpop.eup %5006  ;;  %v2859_v24 = vmul.f32 %v7171_v18, %v2858_v47  ;;  %v7217_v40 = vadd.f32 1.0, %v5005_v8  ;;  %v1337_v47 = vpop.xlane.xlu1 %1336  ;;  %v2865_v8 = vand.u32 2147483647, %v7110_v44  ;;  %v3345_v54 = vand.u32 2147483647, %v7156_v19 }
 0x25c   :  { %v7219_v3 = vpop.eup %5008  ;;  %v3337_v62 = vmul.f32 %v7212_v48, %v7156_v19  ;;  %5014 = vrcp.f32 %v7209_v32  ;;  %v7243_v39 = vor.u32 1.1754944e-38, %v3347_v20  ;;  %vm3342_vm15 = vweird.f32 %v7212_v48 }
 0x25d   :  { %v7228_v28 = vpop.eup %5010  ;;  %v7237_v23 = vadd.f32 %v7171_v18, %v2859_v24  ;;  %5016 = vrcp.f32 %v7217_v40  ;;  %v1006_v4 = vmax.f32 %v679_v59, 0.0  ;;  %v1038_v24 = vmax.f32 %v7226_v6, 0.0  ;;  %vm7298_vm1 = vmor %vm3341_vm10, %vm3342_vm15 }
 0x25e   :  { %v7234_v9 = vpop.eup %5012  ;;  %v3338_v36 = vsub.f32 1.0, %v3337_v62  ;;  %vm7254_vm5 = vcmp.eq.f32.partialorder %v2865_v8, 8.507059e+37  ;;  %vm2381_vm6 = vweird.f32 %v7209_v32  ;;  %v2385_v20 = vand.u32 2147483647, %v7209_v32  ;;  %v681_v62 = vpop.f32.mrf.mxu0 }
 0x25f   :  { %v4644_v26 = vmul.f32 -1.442695, %v1513_v2  ;;  %v2864_v44 = vsel %vm7250_vm13, %v7171_v18, %v7237_v23  ;;  %v2387_v59 = vand.u32 2147483648, %v7209_v32  ;;  %v1545_v6 = vadd.f32 %v5611_v41, %v1337_v47  ;;  %v777_v18 = vpop.f32.mrf.mxu1 }
 0x260   :  { %v3339_v21 = vmul.f32 %v7212_v48, %v3338_v36  ;;  %v1102_v36 = vmax.f32 %v967_v17, 0.0  ;;  %v1577_v8 = vadd.f32 %v5611_v41, %v1401_v29  ;;  %vm7270_vm14 = vcmp.eq.f32.partialorder %v3345_v54, 8.507059e+37  ;;  %v7283_v54 = vld [vmem:[%s9414_s3] ss:$0 sm:$0xff] }
 0x261   :  { %5018 = vpow2.f32 %v4644_v26  ;;  %vm3821_vm0 = vweird.f32 %v7217_v40  ;;  %v4676_v47 = vmul.f32 -1.442695, %v1545_v6  ;;  %vm7286_vm13 = vcmp.eq.f32.partialorder %v2385_v20, 8.507059e+37 }
 0x262   :  { %v7260_v57 = vpop.eup %5014  ;;  %v3340_v35 = vadd.f32 %v7212_v48, %v3339_v21  ;;  %v1234_v2 = vmul.f32 %v6729_v63, %v1102_v36  ;;  %v4708_v29 = vmul.f32 -1.442695, %v1577_v8  ;;  %v1138_v21 = vmul.f32 %v7283_v54, %v1006_v4  ;;  %v1339_v8 = vpop.xlane.xlu2 %1338 }
 0x263   :  { %v2377_v17 = vmul.f32 %v7260_v57, %v7209_v32  ;;  %v7277_v23 = vpop.eup %5016  ;;  %v3825_v36 = vand.u32 2147483647, %v7217_v40  ;;  %v3827_v6 = vand.u32 2147483648, %v7217_v40  ;;  %vm2382_vm7 = vweird.f32 %v7260_v57  ;;  %v1465_v61 = vpop.xlane.xlu1 %1464 }
 0x264   :  { %v3817_v63 = vmul.f32 %v7277_v23, %v7217_v40  ;;  %1486 = vadd.xlane.f32.xlu2 %v1234_v2  ;;  %5020 = vpow2.f32 %v4676_v47  ;;  %1294 = vadd.xlane.f32.xlu1 %v1138_v21  ;;  %v682_v20 = vadd.f32 %v6749_v50, %v681_v62  ;;  %v3344_v2 = vsel %vm7298_vm1, %v7212_v48, %v3340_v35  ;;  %vm7323_vm1 = vmor %vm2381_vm6, %vm2382_vm7 }
 0x265   :  { %v2378_v11 = vsub.f32 1.0, %v2377_v17  ;;  %v778_v17 = vadd.f32 %v6749_v50, %v777_v18  ;;  %5022 = vpow2.f32 %v4708_v29  ;;  %v1170_v27 = vmul.f32 %v7283_v54, %v1038_v24  ;;  %v1275_v18 = vpop.xlane.xlu0 %1274 }
 0x266   :  { %v3818_v19 = vsub.f32 1.0, %v3817_v63  ;;  %v1007_v0 = vmax.f32 %v682_v20, 0.0  ;;  %v1546_v47 = vadd.f32 %v5611_v41, %v1339_v8  ;;  %vm3822_vm10 = vweird.f32 %v7277_v23 }
 0x267   :  { %v2379_v56 = vmul.f32 %v7260_v57, %v2378_v11  ;;  %v1039_v25 = vmax.f32 %v778_v17, 0.0  ;;  %v5019_v21 = vpop.eup %5018  ;;  %v1609_v35 = vadd.f32 %v5611_v41, %v1465_v61  ;;  %v7317_v11 = vsel %vm7254_vm5, %v2868_v53, %v2864_v44  ;;  %1358 = vadd.xlane.f32.xlu0 %v1170_v27  ;;  %vm7344_vm6 = vmor %vm3821_vm0, %vm3822_vm10 }
 0x268   :  { %v3819_v50 = vmul.f32 %v7277_v23, %v3818_v19  ;;  %v7327_v24 = vadd.f32 1.0, %v5019_v21  ;;  %v1139_v29 = vmul.f32 %v7283_v54, %v1007_v0  ;;  %v2388_v53 = vor.u32 1.1754944e-38, %v2387_v59  ;;  %v780_v21 = vpop.f32.mrf.mxu1 }
 0x269   :  { %v2380_v62 = vadd.f32 %v7260_v57, %v2379_v56  ;;  %v4677_v56 = vmul.f32 -1.442695, %v1546_v47  ;;  %v1171_v32 = vmul.f32 %v7283_v54, %v1039_v25  ;;  %v7338_v63 = vsel %vm7270_vm14, %v7243_v39, %v3344_v2  ;;  %v7352_v25 = vld [vmem:[%s9413_s2] ss:$0 sm:$0xff]  ;;  %s5370_s2 = smov [#allocation8]  }
 0x26a   :  { %v3820_v46 = vadd.f32 %v7277_v23, %v3819_v50  ;;  %v5021_v44 = vpop.eup %5020  ;;  %v3828_v0 = vor.u32 1.1754944e-38, %v3827_v6  ;;  %5024 = vrcp.f32 %v7327_v24  ;;  %v874_v15 = vadd.f32 %v7352_v25, %v873_v60  ;;  %s4485_s23 = sshll.u32 %s5370_s2, 4  ;;  %s4486_s23 = int_to_ptr.vmem [resolvable:$true] %s4485_s23 }
 0x26b   :  { %v2384_v61 = vsel %vm7323_vm1, %v7260_v57, %v2380_v62  ;;  %v5023_v39 = vpop.eup %5022  ;;  %v7358_v40 = vadd.f32 1.0, %v5021_v44  ;;  %v4740_v59 = vmul.f32 -1.442695, %v1609_v35  ;;  %v1514_v8 = vadd.f32 %v5611_v41, %v1275_v18  ;;  %v1405_v44 = vpop.xlane.xlu2 %1404 }
 0x26c   :  { %v3824_v57 = vsel %vm7344_vm6, %v7277_v23, %v3820_v46  ;;  %1296 = vadd.xlane.f32.xlu2 %v1139_v29  ;;  %v7363_v6 = vsel %vm7286_vm13, %v2388_v53, %v2384_v61  ;;  %vm3826_vm7 = vcmp.eq.f32.partialorder %v3825_v36, 8.507059e+37  ;;  %v7365_v4 = vadd.f32 1.0, %v5023_v39  ;;  %1360 = vadd.xlane.f32.xlu1 %v1171_v32  ;;  %v969_v32 = vpop.f32.mrf.mxu3 }
 0x26d   :  { %5026 = vpow2.f32 %v4677_v56  ;;  %v7367_v60 = vsel %vm3826_vm7, %v3828_v0, %v3824_v57  ;;  %v2400_v20 = vand.u32 2147483647, %v7327_v24  ;;  %v2402_v23 = vand.u32 2147483648, %v7327_v24  ;;  %v876_v56 = vpop.f32.mrf.mxu2 }
 0x26e   :  { %5028 = vrcp.f32 %v7358_v40  ;;  %v7374_v17 = vmul.f32 %v7219_v3, %v7132_v37  ;;  %v2882_v2 = vand.u32 2147483648, %v7358_v40  ;;  %v1071_v19 = vmax.f32 %v874_v15, 0.0 }
 0x26f   :  { %5030 = vrcp.f32 %v7365_v4  ;;  %v4645_v47 = vmul.f32 -1.442695, %v1514_v8  ;;  %vm2396_vm15 = vweird.f32 %v7327_v24  ;;  %v2880_v48 = vand.u32 2147483647, %v7358_v40 }
 0x270   :  { %5032 = vpow2.f32 %v4740_v59  ;;  %v5025_v62 = vpop.eup %5024  ;;  %vm7389_vm5 = vcmp.eq.f32.partialorder %v2400_v20, 8.507059e+37  ;;  %v2403_v61 = vor.u32 1.1754944e-38, %v2402_v23  ;;  %v3360_v53 = vand.u32 2147483647, %v7365_v4  ;;  %v684_v23 = vpop.f32.mrf.mxu0 }
 0x271   :  { %v2392_v18 = vmul.f32 %v5025_v62, %v7327_v24  ;;  %v3362_v46 = vand.u32 2147483648, %v7365_v4  ;;  %vm2876_vm14 = vweird.f32 %v7358_v40  ;;  %5034 = vpow2.f32 %v4645_v47 }
 0x272   :  { %v7397_v0 = vadd.f32 %v7352_v25, %v780_v21  ;;  %v7400_v15 = vadd.f32 %v7352_v25, %v876_v56  ;;  %v2883_v59 = vor.u32 1.1754944e-38, %v2882_v2  ;;  %vm3356_vm0 = vweird.f32 %v7365_v4 }
 0x273   :  { %v5027_v27 = vpop.eup %5026  ;;  %v2393_v57 = vsub.f32 1.0, %v2392_v18  ;;  %v1203_v20 = vmul.f32 %v7283_v54, %v1071_v19  ;;  %vm2397_vm13 = vweird.f32 %v5025_v62  ;;  %vm7407_vm10 = vcmp.eq.f32.partialorder %v2880_v48, 8.507059e+37 }
 0x274   :  { %v5029_v39 = vpop.eup %5028  ;;  %v7403_v8 = vadd.f32 1.0, %v5027_v27  ;;  %v7412_v56 = vadd.f32 %v7352_v25, %v969_v32  ;;  %v1579_v2 = vadd.f32 %v5611_v41, %v1405_v44  ;;  %vm7416_vm1 = vcmp.eq.f32.partialorder %v3360_v53, 8.507059e+37  ;;  %vm2398_vm7 = vmor %vm2396_vm15, %vm2397_vm13 }
 0x275   :  { %v5031_v35 = vpop.eup %5030  ;;  %v2872_v47 = vmul.f32 %v5029_v39, %v7358_v40  ;;  %v2394_v36 = vmul.f32 %v5025_v62, %v2393_v57  ;;  %v3363_v26 = vor.u32 1.1754944e-38, %v3362_v46  ;;  %1424 = vadd.xlane.f32.xlu0 %v1203_v20  ;;  %v7424_v51 = vadd.f32 %v7352_v25, %v684_v23 }
 0x276   :  { %v5033_v18 = vpop.eup %5032  ;;  %v3352_v27 = vmul.f32 %v5031_v35, %v7365_v4  ;;  %5036 = vrcp.f32 %v7403_v8  ;;  %vm2877_vm6 = vweird.f32 %v5029_v39  ;;  %v2895_v20 = vand.u32 2147483647, %v7403_v8 }
 0x277   :  { %v2873_v48 = vsub.f32 1.0, %v2872_v47  ;;  %v2395_v44 = vadd.f32 %v5025_v62, %v2394_v36  ;;  %v7426_v22 = vadd.f32 1.0, %v5033_v18  ;;  %v5035_v53 = vpop.eup %5034  ;;  %v1103_v47 = vmax.f32 %v7412_v56, 0.0  ;;  %vm2878_vm15 = vmor %vm2876_vm14, %vm2877_vm6 }
 0x278   :  { %v3353_v57 = vsub.f32 1.0, %v3352_v27  ;;  %v4710_v50 = vmul.f32 -1.442695, %v1579_v2  ;;  %vm3357_vm12 = vweird.f32 %v5031_v35  ;;  %vm2891_vm8 = vweird.f32 %v7403_v8 }
 0x279   :  { %v2874_v46 = vmul.f32 %v5029_v39, %v2873_v48  ;;  %v2399_v32 = vsel %vm2398_vm7, %v5025_v62, %v2395_v44  ;;  %5038 = vrcp.f32 %v7426_v22  ;;  %v2897_v24 = vand.u32 2147483648, %v7403_v8  ;;  %v1467_v44 = vpop.xlane.xlu0 %1466 }
 0x27a   :  { %v3354_v52 = vmul.f32 %v5031_v35, %v3353_v57  ;;  %v2404_v36 = vsel %vm7389_vm5, %v2403_v61, %v2399_v32  ;;  %v7442_v56 = vadd.f32 1.0, %v5035_v53  ;;  %5040 = vpow2.f32 %v4710_v50  ;;  %vm3358_vm5 = vmor %vm3356_vm0, %vm3357_vm12  ;;  %v1403_v32 = vpop.xlane.xlu1 %1402 }
 0x27b   :  { %v2875_v23 = vadd.f32 %v5029_v39, %v2874_v46  ;;  %v4248_v27 = vperm.slane %v2404_v36, %v5656_v45  ;;  %vm7447_vm13 = vcmp.eq.f32.partialorder %v2895_v20, 8.507059e+37  ;;  %v1008_v48 = vmax.f32 %v7424_v51, 0.0 }
 0x27c   :  { %v5037_v18 = vpop.eup %5036  ;;  %v3355_v62 = vadd.f32 %v5031_v35, %v3354_v52  ;;  %v9600_v40 = vperm.slane %v7363_v6, %v5647_v34  ;;  %v3840_v4 = vand.u32 2147483647, %v7426_v22  ;;  %5042 = vrcp.f32 %v7442_v56 }
 0x27d   :  { %v2879_v2 = vsel %vm2878_vm15, %v5029_v39, %v2875_v23  ;;  %v2887_v29 = vmul.f32 %v5037_v18, %v7403_v8  ;;  %v2898_v20 = vor.u32 1.1754944e-38, %v2897_v24  ;;  %vm3836_vm12 = vweird.f32 %v7426_v22 }
 0x27e   :  { %v7456_v52 = vsel %vm4189_vm4, %v4248_v27, %v9600_v40  ;;  %v2884_v50 = vsel %vm7407_vm10, %v2883_v59, %v2879_v2  ;;  %v3359_v39 = vsel %vm3358_vm5, %v5031_v35, %v3355_v62  ;;  %v3842_v35 = vand.u32 2147483648, %v7426_v22 }
 0x27f   :  { %v4310_v57 = vperm.slane %v2884_v50, %v5656_v45  ;;  %v3364_v53 = vsel %vm7416_vm1, %v3363_v26, %v3359_v39  ;;  %v2888_v51 = vsub.f32 1.0, %v2887_v29  ;;  %v5039_v6 = vpop.eup %5038  ;;  %v9601_v59 = vperm.slane %v7317_v11, %v5647_v34  ;;  %v879_v39 = vpop.f32.mrf.mxu2 }
 0x280   :  { %v4372_v46 = vperm.slane %v3364_v53, %v5656_v45  ;;  %vm2892_vm14 = vweird.f32 %v5037_v18  ;;  %v3832_v26 = vmul.f32 %v5039_v6, %v7426_v22  ;;  %v5041_v19 = vpop.eup %5040  ;;  %v9602_v23 = vperm.slane %v7338_v63, %v5647_v34 }
 0x281   :  { %v4311_v21 = vsel %vm4189_vm4, %v4310_v57, %v9601_v59  ;;  %v2889_v36 = vmul.f32 %v5037_v18, %v2888_v51  ;;  %vm7479_vm0 = vcmp.eq.f32.partialorder %v3840_v4, 8.507059e+37  ;;  %v2415_v62 = vand.u32 2147483647, %v7442_v56  ;;  %vm2893_vm10 = vmor %vm2891_vm8, %vm2892_vm14 }
 0x282   :  { %v7477_v27 = vsel %vm4189_vm4, %v4372_v46, %v9602_v23  ;;  %v1578_v11 = vadd.f32 %v5611_v41, %v1403_v32  ;;  %v3833_v29 = vsub.f32 1.0, %v3832_v26  ;;  %v2417_v40 = vand.u32 2147483648, %v7442_v56  ;;  %v5043_v32 = vpop.eup %5042  ;;  %v1277_v23 = vpop.xlane.xlu1 %1276 }
 0x283   :  { %v2890_v2 = vadd.f32 %v5037_v18, %v2889_v36  ;;  %v7486_v50 = vadd.f32 1.0, %v5041_v19  ;;  %v1610_v4 = vadd.f32 %v5611_v41, %v1467_v44  ;;  %v9605_v57 = vmax.f32 %v7397_v0, 0.0 }
 0x284   :  { %v4709_v63 = vmul.f32 -1.442695, %v1578_v11  ;;  %v1235_v51 = vmul.f32 %v7283_v54, %v1103_v47  ;;  %v3834_v59 = vmul.f32 %v5039_v6, %v3833_v29  ;;  %vm3837_vm1 = vweird.f32 %v5039_v6  ;;  %v1469_v47 = vpop.xlane.xlu2 %1468  ;;  %v1341_v11 = vpop.xlane.xlu0 %1340 }
 0x285   :  { %v1172_v53 = vmul.f32 %v7283_v54, %v9605_v57  ;;  %v2894_v46 = vsel %vm2893_vm10, %v5037_v18, %v2890_v2  ;;  %5044 = vrcp.f32 %v7486_v50  ;;  %v3843_v8 = vor.u32 1.1754944e-38, %v3842_v35  ;;  %vm3838_vm6 = vmor %vm3836_vm12, %vm3837_vm1 }
 0x286   :  { %v2899_v36 = vsel %vm7447_vm13, %v2898_v20, %v2894_v46  ;;  %v2407_v26 = vmul.f32 %v5043_v32, %v7442_v56  ;;  %1488 = vadd.xlane.f32.xlu1 %v1235_v51  ;;  %v880_v0 = vadd.f32 %v7352_v25, %v879_v39  ;;  %v3835_v19 = vadd.f32 %v5039_v6, %v3834_v59 }
 0x287   :  { %1362 = vadd.xlane.f32.xlu2 %v1172_v53  ;;  %v4312_v44 = vperm.slane %v2899_v36, %v5731_v38  ;;  %vm2411_vm8 = vweird.f32 %v7442_v56  ;;  %5046 = vpow2.f32 %v4709_v63  ;;  %vm7504_vm7 = vcmp.eq.f32.partialorder %v2415_v62, 8.507059e+37  ;;  %v783_v63 = vpop.f32.mrf.mxu1 }
 0x288   :  { %v2408_v18 = vsub.f32 1.0, %v2407_v26  ;;  %v2418_v20 = vor.u32 1.1754944e-38, %v2417_v40  ;;  %v4741_v35 = vmul.f32 -1.442695, %v1610_v4  ;;  %v3839_v29 = vsel %vm3838_vm6, %v5039_v6, %v3835_v19 }
 0x289   :  { %v7509_v2 = vsel %vm4193_vm2, %v4312_v44, %v4311_v21  ;;  %vm2412_vm15 = vweird.f32 %v5043_v32  ;;  %v1140_v39 = vmul.f32 %v7283_v54, %v1008_v48  ;;  %v3844_v22 = vsel %vm7479_vm0, %v3843_v8, %v3839_v29 }
 0x28a   :  { %v2409_v57 = vmul.f32 %v5043_v32, %v2408_v18  ;;  %5048 = vpow2.f32 %v4741_v35  ;;  %v1073_v62 = vmax.f32 %v880_v0, 0.0  ;;  %v9608_v40 = vand.u32 2147483647, %v7014_v5  ;;  %vm2413_vm12 = vmor %vm2411_vm8, %vm2412_vm15 }
 0x28b   :  { %v7514_v53 = vpop.eup %5044  ;;  %v4434_v6 = vperm.slane %v3844_v22, %v5656_v45  ;;  %1298 = vadd.xlane.f32.xlu0 %v1140_v39  ;;  %v1611_v48 = vadd.f32 %v5611_v41, %v1469_v47  ;;  %v1515_v21 = vadd.f32 %v5611_v41, %v1277_v23  ;;  %v1547_v24 = vadd.f32 %v5611_v41, %v1341_v11  ;;  %v687_v23 = vpop.f32.mrf.mxu0 }
 0x28c   :  { %vm7518_vm5 = vcmp.eq.f32.partialorder %v9608_v40, 8.507059e+37  ;;  %v2410_v51 = vadd.f32 %v5043_v32, %v2409_v57  ;;  %v3382_v46 = vmul.f32 %v7514_v53, %v7486_v50  ;;  %vm3386_vm13 = vweird.f32 %v7486_v50  ;;  %v1279_v57 = vpop.xlane.xlu2 %1278 }
 0x28d   :  { %v784_v5 = vadd.f32 %v7352_v25, %v783_v63  ;;  %v5047_v59 = vpop.eup %5046  ;;  %v9611_v36 = vperm.slane %v7367_v60, %v5647_v34  ;;  %v4742_v8 = vmul.f32 -1.442695, %v1611_v48  ;;  %v4646_v26 = vmul.f32 -1.442695, %v1515_v21 }
 0x28e   :  { %v4678_v0 = vmul.f32 -1.442695, %v1547_v24  ;;  %v2414_v44 = vsel %vm2413_vm12, %v5043_v32, %v2410_v51  ;;  %v3383_v19 = vsub.f32 1.0, %v3382_v46  ;;  %v7539_v47 = vadd.f32 1.0, %v5047_v59  ;;  %v972_v59 = vpop.f32.mrf.mxu3 }
 0x28f   :  { %v7534_v45 = vsel %vm4189_vm4, %v4434_v6, %v9611_v36  ;;  %v1205_v18 = vmul.f32 %v7283_v54, %v1073_v62  ;;  %v2419_v35 = vsel %vm7504_vm7, %v2418_v20, %v2414_v44  ;;  %v3390_v34 = vand.u32 2147483647, %v7486_v50  ;;  %v1343_v44 = vpop.xlane.xlu1 %1342  ;;  %v1407_v6 = vpop.xlane.xlu0 %1406 }
 0x290   :  { %5050 = vpow2.f32 %v4742_v8  ;;  %v9612_v60 = vmax.f32 %v7400_v15, 0.0  ;;  %v5049_v11 = vpop.eup %5048  ;;  %v4250_v29 = vperm.slane %v2419_v35, %v5731_v38  ;;  %v3384_v32 = vmul.f32 %v7514_v53, %v3383_v19 }
 0x291   :  { %vm3387_vm4 = vweird.f32 %v7514_v53  ;;  %5052 = vrcp.f32 %v7539_v47  ;;  %1428 = vadd.xlane.f32.xlu2 %v1205_v18  ;;  %v3392_v61 = vand.u32 2147483648, %v7486_v50  ;;  %v7553_v20 = vadd.f32 1.0, %v5049_v11 }
 0x292   :  { %v1204_v56 = vmul.f32 %v7283_v54, %v9612_v60  ;;  %v1041_v39 = vmax.f32 %v784_v5, 0.0  ;;  %5054 = vpow2.f32 %v4646_v26  ;;  %v7557_v15 = vsel %vm4193_vm2, %v4250_v29, %v7456_v52  ;;  %vm7569_vm14 = vmor %vm3386_vm13, %vm3387_vm4 }
 0x293   :  { %v3385_v63 = vadd.f32 %v7514_v53, %v3384_v32  ;;  %5056 = vpow2.f32 %v4678_v0  ;;  %v7561_v22 = vadd.f32 %v7352_v25, %v687_v23  ;;  %v9613_v62 = vand.u32 2147483648, %v7160_v31 }
 0x294   :  { %1426 = vadd.xlane.f32.xlu1 %v1204_v56  ;;  %v3375_v52 = vand.u32 2147483647, %v7539_v47  ;;  %v3377_v48 = vand.u32 2147483648, %v7539_v47  ;;  %5058 = vrcp.f32 %v7553_v20  ;;  %v9616_v21 = vsel %vm7193_vm3, %v7058_v58, %v7174_v49 }
 0x295   :  { %v7565_v40 = vor.u32 1.1754944e-38, %v9613_v62  ;;  %v7584_v24 = vsel %vm7518_vm5, %v7178_v16, %v9616_v21  ;;  %5060 = vpow2.f32 %v7199_v43  ;;  %v7588_v50 = vmul.f32 -1.442695, %v7207_v33 }
 0x296   :  { %v3389_v51 = vsel %vm7569_vm14, %v7514_v53, %v3385_v63  ;;  %v5051_v46 = vpop.eup %5050  ;;  %v3773_v13 = vsub.f32 1.0, %v7374_v17  ;;  %v3393_v5 = vor.u32 1.1754944e-38, %v3392_v61  ;;  %v1173_v58 = vmul.f32 %v7283_v54, %v1041_v39 }
 0x297   :  { %v1516_v49 = vadd.f32 %v5611_v41, %v1279_v57  ;;  %v5053_v16 = vpop.eup %5052  ;;  %vm3391_vm3 = vcmp.eq.f32.partialorder %v3390_v34, 8.507059e+37  ;;  %vm3371_vm0 = vweird.f32 %v7539_v47  ;;  %v7597_v43 = vadd.f32 1.0, %v5051_v46  ;;  %v1281_v17 = vpop.xlane.xlu0 %1280 }
 0x298   :  { %v1009_v33 = vmax.f32 %v7561_v22, 0.0  ;;  %v5055_v4 = vpop.eup %5054  ;;  %v7600_v36 = vsel %vm3391_vm3, %v3393_v5, %v3389_v51  ;;  %v3367_v53 = vmul.f32 %v5053_v16, %v7539_v47  ;;  %vm7603_vm10 = vcmp.eq.f32.partialorder %v3375_v52, 8.507059e+37  ;;  %1364 = vadd.xlane.f32.xlu0 %v1173_v58 }
 0x299   :  { %v3378_v26 = vor.u32 1.1754944e-38, %v3377_v48  ;;  %v4647_v0 = vmul.f32 -1.442695, %v1516_v49  ;;  %v5057_v19 = vpop.eup %5056  ;;  %vm3851_vm1 = vweird.f32 %v7553_v20  ;;  %v3855_v18 = vand.u32 2147483647, %v7553_v20 }
 0x29a   :  { %v3857_v35 = vand.u32 2147483648, %v7553_v20  ;;  %5062 = vrcp.f32 %v7597_v43  ;;  %v7612_v34 = vadd.f32 %v7352_v25, %v972_v59  ;;  %v5059_v60 = vpop.eup %5058  ;;  %v3368_v56 = vsub.f32 1.0, %v3367_v53 }
 0x29b   :  { %v7614_v23 = vadd.f32 1.0, %v5055_v4  ;;  %v7616_v11 = vadd.f32 1.0, %v5057_v19  ;;  %5064 = vpow2.f32 %v4647_v0  ;;  %v7618_v29 = vpop.eup %5060  ;;  %v4376_v32 = vperm.slane %v7600_v36, %v5888_v55 }
 0x29c   :  { %v3847_v61 = vmul.f32 %v5059_v60, %v7553_v20  ;;  %v3872_v39 = vand.u32 2147483648, %v7597_v43  ;;  %v1548_v63 = vadd.f32 %v5611_v41, %v1343_v44  ;;  %v3369_v57 = vmul.f32 %v5053_v16, %v3368_v56 }
 0x29d   :  { %vm3372_vm8 = vweird.f32 %v5053_v16  ;;  %v3870_v62 = vand.u32 2147483647, %v7597_v43  ;;  %5066 = vrcp.f32 %v7614_v23  ;;  %vm7627_vm6 = vcmp.eq.f32.partialorder %v3855_v18, 8.507059e+37 }
 0x29e   :  { %v3848_v52 = vsub.f32 1.0, %v3847_v61  ;;  %v3858_v21 = vor.u32 1.1754944e-38, %v3857_v35  ;;  %5068 = vrcp.f32 %v7616_v11  ;;  %v3370_v51 = vadd.f32 %v5053_v16, %v3369_v57  ;;  %vm3373_vm5 = vmor %vm3371_vm0, %vm3372_vm8 }
 0x29f   :  { %vm3852_vm7 = vweird.f32 %v5059_v60  ;;  %vm3866_vm15 = vweird.f32 %v7597_v43  ;;  %v1104_v46 = vmax.f32 %v7612_v34, 0.0  ;;  %v3873_v58 = vor.u32 1.1754944e-38, %v3872_v39 }
 0x2a0   :  { %v5063_v5 = vpop.eup %5062  ;;  %v3849_v59 = vmul.f32 %v5059_v60, %v3848_v52  ;;  %v4679_v49 = vmul.f32 -1.442695, %v1548_v63  ;;  %v1580_v4 = vadd.f32 %v5611_v41, %v1407_v6  ;;  %v3374_v53 = vsel %vm3373_vm5, %v5053_v16, %v3370_v51  ;;  %vm3853_vm4 = vmor %vm3851_vm1, %vm3852_vm7 }
 0x2a1   :  { %v5065_v36 = vpop.eup %5064  ;;  %v3862_v0 = vmul.f32 %v5063_v5, %v7597_v43  ;;  %vm7638_vm13 = vcmp.eq.f32.partialorder %v3870_v62, 8.507059e+37  ;;  %v2430_v19 = vand.u32 2147483647, %v7614_v23  ;;  %v2432_v18 = vand.u32 2147483648, %v7614_v23 }
 0x2a2   :  { %v3379_v47 = vsel %vm7603_vm10, %v3378_v26, %v3374_v53  ;;  %v3850_v35 = vadd.f32 %v5059_v60, %v3849_v59  ;;  %vm2426_vm12 = vweird.f32 %v7614_v23  ;;  %v2910_v56 = vand.u32 2147483647, %v7616_v11 }
 0x2a3   :  { %v7648_v61 = vadd.f32 1.0, %v5065_v36  ;;  %v5067_v16 = vpop.eup %5066  ;;  %v4374_v39 = vperm.slane %v3379_v47, %v5731_v38  ;;  %v3863_v63 = vsub.f32 1.0, %v3862_v0  ;;  %vm3867_vm14 = vweird.f32 %v5063_v5 }
 0x2a4   :  { %vm2906_vm3 = vweird.f32 %v7616_v11  ;;  %5070 = vpow2.f32 %v4679_v49  ;;  %v5069_v8 = vpop.eup %5068  ;;  %v3854_v26 = vsel %vm3853_vm4, %v5059_v60, %v3850_v35  ;;  %v2422_v57 = vmul.f32 %v5067_v16, %v7614_v23  ;;  %vm3868_vm1 = vmor %vm3866_vm15, %vm3867_vm14 }
 0x2a5   :  { %5072 = vrcp.f32 %v7648_v61  ;;  %v4711_v62 = vmul.f32 -1.442695, %v1580_v4  ;;  %v4375_v6 = vsel %vm4193_vm2, %v4374_v39, %v7477_v27  ;;  %v3859_v52 = vsel %vm7627_vm6, %v3858_v21, %v3854_v26 }
 0x2a6   :  { %v3864_v20 = vmul.f32 %v5063_v5, %v3863_v63  ;;  %v2902_v51 = vmul.f32 %v5069_v8, %v7616_v11  ;;  %v4436_v59 = vperm.slane %v3859_v52, %v5731_v38  ;;  %v2423_v36 = vsub.f32 1.0, %v2422_v57  ;;  %v975_v52 = vpop.f32.mrf.mxu3 }
 0x2a7   :  { %vm7663_vm0 = vcmp.eq.f32.partialorder %v2430_v19, 8.507059e+37  ;;  %v2912_v60 = vand.u32 2147483648, %v7616_v11  ;;  %vm2427_vm10 = vweird.f32 %v5067_v16  ;;  %v2433_v4 = vor.u32 1.1754944e-38, %v2432_v18 }
 0x2a8   :  { %v3865_v53 = vadd.f32 %v5063_v5, %v3864_v20  ;;  %v2903_v0 = vsub.f32 1.0, %v2902_v51  ;;  %v4437_v27 = vsel %vm4193_vm2, %v4436_v59, %v7534_v45  ;;  %v2424_v48 = vmul.f32 %v5067_v16, %v2423_v36  ;;  %vm2428_vm2 = vmor %vm2426_vm12, %vm2427_vm10 }
 0x2a9   :  { %v7674_v38 = vsel %vm4197_vm11, %v4376_v32, %v4375_v6  ;;  %5074 = vpow2.f32 %v4711_v62  ;;  %vm2907_vm8 = vweird.f32 %v5069_v8  ;;  %vm7676_vm6 = vcmp.eq.f32.partialorder %v2910_v56, 8.507059e+37 }
 0x2aa   :  { %v5071_v21 = vpop.eup %5070  ;;  %v3869_v19 = vsel %vm3868_vm1, %v5063_v5, %v3865_v53  ;;  %v2904_v47 = vmul.f32 %v5069_v8, %v2903_v0  ;;  %v2425_v39 = vadd.f32 %v5067_v16, %v2424_v48  ;;  %v9627_v63 = vmax.f32 %v6864_v42, 0.0  ;;  %vm2908_vm7 = vmor %vm2906_vm3, %vm2907_vm8 }
 0x2ab   :  { %v5073_v18 = vpop.eup %5072  ;;  %v3874_v45 = vsel %vm7638_vm13, %v3873_v58, %v3869_v19  ;;  %v7682_v43 = vadd.f32 1.0, %v5071_v21  ;;  %v2913_v56 = vor.u32 1.1754944e-38, %v2912_v60  ;;  %vm2441_vm15 = vweird.f32 %v7648_v61 }
 0x2ac   :  { %v1221_v32 = vmul.f32 %v7283_v54, %v9627_v63  ;;  %v4438_v26 = vperm.slane %v3874_v45, %v5888_v55  ;;  %v2905_v5 = vadd.f32 %v5069_v8, %v2904_v47  ;;  %v2437_v57 = vmul.f32 %v5073_v18, %v7648_v61 }
 0x2ad   :  { %v2429_v62 = vsel %vm2428_vm2, %v5067_v16, %v2425_v39  ;;  %v2445_v42 = vand.u32 2147483647, %v7648_v61  ;;  %5076 = vrcp.f32 %v7682_v43  ;;  %v1345_v16 = vpop.xlane.xlu2 %1344  ;;  %vm2442_vm5 = vweird.f32 %v5073_v18 }
 0x2ae   :  { %1460 = vadd.xlane.f32.xlu2 %v1221_v32  ;;  %v7698_v58 = vsel %vm4197_vm11, %v4438_v26, %v4437_v27  ;;  %v2434_v23 = vsel %vm7663_vm0, %v2433_v4, %v2429_v62  ;;  %v2909_v44 = vsel %vm2908_vm7, %v5069_v8, %v2905_v5  ;;  %v2438_v6 = vsub.f32 1.0, %v2437_v57  ;;  %vm2443_vm13 = vmor %vm2441_vm15, %vm2442_vm5 }
 0x2af   :  { %v5075_v20 = vpop.eup %5074  ;;  %v4252_v11 = vperm.slane %v2434_v23, %v5888_v55  ;;  %v2914_v51 = vsel %vm7676_vm6, %v2913_v56, %v2909_v44  ;;  %v2447_v59 = vand.u32 2147483648, %v7648_v61  ;;  %v1141_v8 = vmul.f32 %v7283_v54, %v1009_v33 }
 0x2b0   :  { %v4314_v36 = vperm.slane %v2914_v51, %v5888_v55  ;;  %v2439_v60 = vmul.f32 %v5073_v18, %v2438_v6  ;;  %v7707_v53 = vadd.f32 1.0, %v5075_v20  ;;  %v976_v0 = vadd.f32 %v7352_v25, %v975_v52 }
 0x2b1   :  { %v4253_v4 = vsel %vm4197_vm11, %v4252_v11, %v7557_v15  ;;  %v1236_v27 = vmul.f32 %v7283_v54, %v1104_v46  ;;  %v7721_v55 = vadd.f32 1.0, %v7228_v28  ;;  %1300 = vadd.xlane.f32.xlu1 %v1141_v8  ;;  %v3774_v25 = vmul.f32 %v7219_v3, %v3773_v13  ;;  %v1471_v15 = vpop.xlane.xlu1 %1470 }
 0x2b2   :  { %v7725_v22 = vsel %vm4197_vm11, %v4314_v36, %v7509_v2  ;;  %v2440_v33 = vadd.f32 %v5073_v18, %v2439_v60  ;;  %5078 = vrcp.f32 %v7707_v53  ;;  %v2448_v28 = vor.u32 1.1754944e-38, %v2447_v59 }
 0x2b3   :  { %v5077_v48 = vpop.eup %5076  ;;  %5080 = vpow2.f32 %v7588_v50  ;;  %1490 = vadd.xlane.f32.xlu0 %v1236_v27  ;;  %v1549_v2 = vadd.f32 %v5611_v41, %v1345_v16  ;;  %vm2446_vm11 = vcmp.eq.f32.partialorder %v2445_v42, 8.507059e+37  ;;  %v1612_v21 = vadd.f32 %v5611_v41, %v1471_v15 }
 0x2b4   :  { %v2444_v34 = vsel %vm2443_vm13, %v5073_v18, %v2440_v33  ;;  %v2917_v46 = vmul.f32 %v5077_v48, %v7682_v43  ;;  %v7740_v13 = vmul.f32 %v7234_v9, %v7160_v31  ;;  %v1105_v19 = vmax.f32 %v976_v0, 0.0 }
 0x2b5   :  { %v2449_v50 = vsel %vm2446_vm11, %v2448_v28, %v2444_v34  ;;  %v4680_v61 = vmul.f32 -1.442695, %v1549_v2  ;;  %v4743_v45 = vmul.f32 -1.442695, %v1612_v21  ;;  %v1517_v39 = vadd.f32 %v5611_v41, %v1281_v17  ;;  %v1411_v57 = vpop.xlane.xlu2 %1410 }
 0x2b6   :  { %v4254_v47 = vperm.slane %v2449_v50, %v6055_v10  ;;  %v2918_v35 = vsub.f32 1.0, %v2917_v46  ;;  %vm3777_vm12 = vweird.f32 %v7219_v3  ;;  %vm2922_vm4 = vweird.f32 %v5077_v48 }
 0x2b7   :  { %v2925_v18 = vand.u32 2147483647, %v7682_v43  ;;  %v2927_v63 = vand.u32 2147483648, %v7682_v43  ;;  %5082 = vpow2.f32 %v4680_v61  ;;  %v4648_v56 = vmul.f32 -1.442695, %v1517_v39 }
 0x2b8   :  { %v5079_v32 = vpop.eup %5078  ;;  %v7748_v26 = vsel %vm4201_vm9, %v4254_v47, %v4253_v4  ;;  %v2919_v5 = vmul.f32 %v5077_v48, %v2918_v35  ;;  %5084 = vpow2.f32 %v4743_v45  ;;  %vm3776_vm14 = vweird.f32 %v7132_v37  ;;  %v1473_v35 = vpop.xlane.xlu0 %1472 }
 0x2b9   :  { %v7750_v62 = vpop.eup %5080  ;;  %5086 = vrcp.f32 %v7721_v55  ;;  %v3397_v42 = vmul.f32 %v5079_v32, %v7707_v53  ;;  %v1237_v23 = vmul.f32 %v7283_v54, %v1105_v19  ;;  %v1582_v44 = vadd.f32 %v5611_v41, %v1411_v57  ;;  %v1409_v51 = vpop.xlane.xlu1 %1408  ;;  %vm7790_vm7 = vmor %vm3776_vm14, %vm3777_vm12 }
 0x2ba   :  { %v2355_v6 = vand.u32 2147483647, %v7721_v55  ;;  %v2920_v52 = vadd.f32 %v5077_v48, %v2919_v5  ;;  %vm2921_vm3 = vweird.f32 %v7682_v43  ;;  %5088 = vpow2.f32 %v4648_v56 }
 0x2bb   :  { %vm2923_vm0 = vmor %vm2921_vm3, %vm2922_vm4  ;;  %vm2926_vm10 = vcmp.eq.f32.partialorder %v2925_v18, 8.507059e+37  ;;  %v2928_v16 = vor.u32 1.1754944e-38, %v2927_v63  ;;  %v3398_v20 = vsub.f32 1.0, %v3397_v42  ;;  %1492 = vadd.xlane.f32.xlu1 %v1237_v23  ;;  %v4713_v11 = vmul.f32 -1.442695, %v1582_v44 }
 0x2bc   :  { %v2924_v59 = vsel %vm2923_vm0, %v5077_v48, %v2920_v52  ;;  %v3405_v36 = vand.u32 2147483647, %v7707_v53  ;;  %v3407_v54 = vand.u32 2147483648, %v7707_v53  ;;  %v1581_v60 = vadd.f32 %v5611_v41, %v1409_v51 }
 0x2bd   :  { %v5083_v8 = vpop.eup %5082  ;;  %v2929_v4 = vsel %vm2926_vm10, %v2928_v16, %v2924_v59  ;;  %v3399_v0 = vmul.f32 %v5079_v32, %v3398_v20  ;;  %vm3402_vm1 = vweird.f32 %v5079_v32  ;;  %5090 = vpow2.f32 %v4713_v11  ;;  %v1475_v51 = vpop.xlane.xlu2 %1474 }
 0x2be   :  { %v5085_v43 = vpop.eup %5084  ;;  %v7764_v27 = vadd.f32 %v7219_v3, %v3774_v25  ;;  %v2357_v33 = vand.u32 2147483648, %v7721_v55  ;;  %v4316_v28 = vperm.slane %v2929_v4, %v6055_v10  ;;  %v7768_v48 = vadd.f32 1.0, %v5083_v8 }
 0x2bf   :  { %v7770_v2 = vpop.eup %5086  ;;  %v3400_v15 = vadd.f32 %v5079_v32, %v3399_v0  ;;  %vm3401_vm8 = vweird.f32 %v7707_v53  ;;  %v7773_v34 = vadd.f32 1.0, %v5085_v43  ;;  %v4712_v46 = vmul.f32 -1.442695, %v1581_v60 }
 0x2c0   :  { %v5089_v21 = vpop.eup %5088  ;;  %v7776_v17 = vadd.f32 1.0, %v7618_v29  ;;  %v7780_v25 = vsel %vm4201_vm9, %v4316_v28, %v7725_v22  ;;  %vm3403_vm6 = vmor %vm3401_vm8, %vm3402_vm1  ;;  %v3408_v50 = vor.u32 1.1754944e-38, %v3407_v54  ;;  %5092 = vrcp.f32 %v7768_v48 }
 0x2c1   :  { %v3788_v19 = vsub.f32 1.0, %v7740_v13  ;;  %v3404_v61 = vsel %vm3403_vm6, %v5079_v32, %v3400_v15  ;;  %vm3406_vm2 = vcmp.eq.f32.partialorder %v3405_v36, 8.507059e+37  ;;  %5094 = vrcp.f32 %v7773_v34 }
 0x2c2   :  { %v7794_v53 = vor.u32 1.1754944e-38, %v2357_v33  ;;  %v1543_v22 = vadd.f32 %v5611_v41, %v6994_v7  ;;  %v7800_v13 = vadd.f32 %v5611_v41, %v7020_v30  ;;  %v3409_v47 = vsel %vm3406_vm2, %v3408_v50, %v3404_v61 }
 0x2c3   :  { %v5091_v45 = vpop.eup %5090  ;;  %v4378_v18 = vperm.slane %v3409_v47, %v6055_v10  ;;  %v7807_v63 = vadd.f32 1.0, %v5089_v21  ;;  %5096 = vpow2.f32 %v4712_v46  ;;  %v2940_v7 = vand.u32 2147483647, %v7768_v48 }
 0x2c4   :  { %5098 = vrcp.f32 %v7776_v17  ;;  %v2942_v30 = vand.u32 2147483648, %v7768_v48  ;;  %v7812_v32 = vadd.f32 1.0, %v5091_v45  ;;  %v3885_v56 = vand.u32 2147483647, %v7773_v34 }
 0x2c5   :  { %v7816_v5 = vsel %vm4201_vm9, %v4378_v18, %v7674_v38  ;;  %5100 = vrcp.f32 %v7807_v63  ;;  %v1613_v57 = vadd.f32 %v5611_v41, %v1473_v35  ;;  %v7822_v23 = vmul.f32 %v7234_v9, %v3788_v19  ;;  %v1283_v35 = vpop.xlane.xlu1 %1282 }
 0x2c6   :  { %v5093_v42 = vpop.eup %5092  ;;  %v7824_v44 = vmul.f32 -1.442695, %v1543_v22  ;;  %v3887_v52 = vand.u32 2147483648, %v7773_v34  ;;  %5102 = vrcp.f32 %v7812_v32  ;;  %v7830_v38 = vmul.f32 %v7770_v2, %v7721_v55 }
 0x2c7   :  { %v5095_v16 = vpop.eup %5094  ;;  %v7833_v20 = vadd.f32 1.0, %v7750_v62  ;;  %v2932_v11 = vmul.f32 %v5093_v42, %v7768_v48  ;;  %vm2936_vm15 = vweird.f32 %v7768_v48  ;;  %vm7837_vm5 = vcmp.eq.f32.partialorder %v2940_v7, 8.507059e+37 }
 0x2c8   :  { %v2943_v36 = vor.u32 1.1754944e-38, %v2942_v30  ;;  %v3877_v54 = vmul.f32 %v5095_v16, %v7773_v34  ;;  %vm3881_vm13 = vweird.f32 %v7773_v34  ;;  %vm7843_vm11 = vcmp.eq.f32.partialorder %v3885_v56, 8.507059e+37 }
 0x2c9   :  { %v5097_v60 = vpop.eup %5096  ;;  %v2933_v8 = vsub.f32 1.0, %v2932_v11  ;;  %v4744_v62 = vmul.f32 -1.442695, %v1613_v57  ;;  %v1614_v0 = vadd.f32 %v5611_v41, %v1475_v51  ;;  %v3888_v28 = vor.u32 1.1754944e-38, %v3887_v52 }
 0x2ca   :  { %v7848_v43 = vpop.eup %5098  ;;  %v3878_v33 = vsub.f32 1.0, %v3877_v54  ;;  %v2460_v15 = vand.u32 2147483647, %v7807_v63  ;;  %v7851_v46 = vadd.f32 1.0, %v5097_v60  ;;  %vm2937_vm12 = vweird.f32 %v5093_v42 }
 0x2cb   :  { %v5101_v21 = vpop.eup %5100  ;;  %v2934_v50 = vmul.f32 %v5093_v42, %v2933_v8  ;;  %5104 = vpow2.f32 %v4744_v62  ;;  %v4745_v19 = vmul.f32 -1.442695, %v1614_v0  ;;  %vm3882_vm4 = vweird.f32 %v5095_v16  ;;  %vm2938_vm3 = vmor %vm2936_vm15, %vm2937_vm12 }
 0x2cc   :  { %v7853_v61 = vpop.eup %5102  ;;  %v3879_v22 = vmul.f32 %v5095_v16, %v3878_v33  ;;  %v2452_v47 = vmul.f32 %v5101_v21, %v7807_v63  ;;  %5106 = vrcp.f32 %v7851_v46  ;;  %vm2456_vm14 = vweird.f32 %v7807_v63  ;;  %vm3883_vm1 = vmor %vm3881_vm13, %vm3882_vm4 }
 0x2cd   :  { %v2935_v45 = vadd.f32 %v5093_v42, %v2934_v50  ;;  %v2462_v18 = vand.u32 2147483648, %v7807_v63  ;;  %v3427_v7 = vmul.f32 %v7853_v61, %v7812_v32  ;;  %vm7863_vm0 = vcmp.eq.f32.partialorder %v2460_v15, 8.507059e+37 }
 0x2ce   :  { %v3880_v30 = vadd.f32 %v5095_v16, %v3879_v22  ;;  %v2453_v56 = vsub.f32 1.0, %v2452_v47  ;;  %vm3431_vm10 = vweird.f32 %v7812_v32  ;;  %5108 = vpow2.f32 %v4745_v19 }
 0x2cf   :  { %v2939_v52 = vsel %vm2938_vm3, %v5093_v42, %v2935_v45  ;;  %v3428_v11 = vsub.f32 1.0, %v3427_v7  ;;  %v1518_v51 = vadd.f32 %v5611_v41, %v1283_v35  ;;  %vm2457_vm8 = vweird.f32 %v5101_v21  ;;  %v1347_v7 = vpop.xlane.xlu0 %1346 }
 0x2d0   :  { %v2944_v48 = vsel %vm7837_vm5, %v2943_v36, %v2939_v52  ;;  %v3884_v54 = vsel %vm3883_vm1, %v5095_v16, %v3880_v30  ;;  %v2454_v60 = vmul.f32 %v5101_v21, %v2453_v56  ;;  %v2463_v42 = vor.u32 1.1754944e-38, %v2462_v18  ;;  %vm2458_vm15 = vmor %vm2456_vm14, %vm2457_vm8 }
 0x2d1   :  { %v5105_v8 = vpop.eup %5104  ;;  %v4318_v62 = vperm.slane %v2944_v48, %v6117_v1  ;;  %v3889_v0 = vsel %vm7843_vm11, %v3888_v28, %v3884_v54  ;;  %v3429_v34 = vmul.f32 %v7853_v61, %v3428_v11  ;;  %vm3432_vm6 = vweird.f32 %v7853_v61 }
 0x2d2   :  { %v5107_v33 = vpop.eup %5106  ;;  %v4440_v15 = vperm.slane %v3889_v0, %v6055_v10  ;;  %v2455_v50 = vadd.f32 %v5101_v21, %v2454_v60  ;;  %v7879_v59 = vadd.f32 1.0, %v5105_v8  ;;  %vm9636_vm2 = vcmask 392512   ;;  %v1285_v0 = vpop.xlane.xlu2 %1284 }
 0x2d3   :  { %v7883_v16 = vsel %vm9636_vm2, %v4318_v62, %v7780_v25  ;;  %v3430_v36 = vadd.f32 %v7853_v61, %v3429_v34  ;;  %v3412_v4 = vmul.f32 %v5107_v33, %v7851_v46  ;;  %v4649_v28 = vmul.f32 -1.442695, %v1518_v51  ;;  %vm9639_vm13 = vmmov %vm9636_vm2 }
 0x2d4   :  { %v7891_v10 = vsel %vm4201_vm9, %v4440_v15, %v7698_v58  ;;  %v2459_v19 = vsel %vm2458_vm15, %v5101_v21, %v2455_v50  ;;  %v3437_v22 = vand.u32 2147483648, %v7812_v32  ;;  %5110 = vrcp.f32 %v7879_v59  ;;  %v5109_v47 = vpop.eup %5108  ;;  %vm7904_vm9 = vmor %vm3431_vm10, %vm3432_vm6 }
 0x2d5   :  { %5112 = vpow2.f32 %v7824_v44  ;;  %v2464_v25 = vsel %vm7863_vm0, %v2463_v42, %v2459_v19  ;;  %v3435_v63 = vand.u32 2147483647, %v7812_v32  ;;  %v3413_v35 = vsub.f32 1.0, %v3412_v4  ;;  %vm9642_vm10 = vmmov %vm9636_vm2 }
 0x2d6   :  { %v4256_v45 = vperm.slane %v2464_v25, %v6117_v1  ;;  %v3420_v21 = vand.u32 2147483647, %v7851_v46  ;;  %v3422_v44 = vand.u32 2147483648, %v7851_v46  ;;  %v7910_v18 = vadd.f32 1.0, %v5109_v47  ;;  %v1349_v25 = vpop.xlane.xlu1 %1348 }
 0x2d7   :  { %v3434_v30 = vsel %vm7904_vm9, %v7853_v61, %v3430_v36  ;;  %v3414_v56 = vmul.f32 %v5107_v33, %v3413_v35  ;;  %vm3417_vm5 = vweird.f32 %v5107_v33  ;;  %5114 = vpow2.f32 %v4649_v28 }
 0x2d8   :  { %v4706_v32 = vmul.f32 -1.442695, %v7800_v13  ;;  %v7918_v57 = vsel %vm9639_vm13, %v4256_v45, %v7748_v26  ;;  %v3438_v52 = vor.u32 1.1754944e-38, %v3437_v22  ;;  %5116 = vrcp.f32 %v7910_v18  ;;  %vm9649_vm13 = vmmov %vm9642_vm10 }
 0x2d9   :  { %vm3436_vm11 = vcmp.eq.f32.partialorder %v3435_v63, 8.507059e+37  ;;  %v3415_v11 = vadd.f32 %v5107_v33, %v3414_v56  ;;  %vm3416_vm12 = vweird.f32 %v7851_v46  ;;  %v1550_v51 = vadd.f32 %v5611_v41, %v1347_v7 }
 0x2da   :  { %v5111_v48 = vpop.eup %5110  ;;  %v2348_v61 = vsub.f32 1.0, %v7830_v38  ;;  %v3439_v54 = vsel %vm3436_vm11, %v3438_v52, %v3434_v30  ;;  %vm3418_vm4 = vmor %vm3416_vm12, %vm3417_vm5  ;;  %v3423_v60 = vor.u32 1.1754944e-38, %v3422_v44  ;;  %v3900_v13 = vand.u32 2147483647, %v7879_v59  ;;  %v1413_v52 = vpop.xlane.xlu0 %1412 }
 0x2db   :  { %v7925_v8 = vpop.eup %5112  ;;  %5118 = vrcp.f32 %v7833_v20  ;;  %v3419_v26 = vsel %vm3418_vm4, %v5107_v33, %v3415_v11  ;;  %vm3421_vm14 = vcmp.eq.f32.partialorder %v3420_v21, 8.507059e+37  ;;  %v3892_v62 = vmul.f32 %v5111_v48, %v7879_v59 }
 0x2dc   :  { %v3424_v46 = vsel %vm3421_vm14, %v3423_v60, %v3419_v26  ;;  %v3902_v42 = vand.u32 2147483648, %v7879_v59  ;;  %v4681_v34 = vmul.f32 -1.442695, %v1550_v51  ;;  %v1519_v15 = vadd.f32 %v5611_v41, %v1285_v0  ;;  %v1351_v26 = vpop.xlane.xlu2 %1350  ;;  %v9645_v0 = vld [vmem:[#allocation22_spill] sm:$0xff] }
 0x2dd   :  { %v5115_v50 = vpop.eup %5114  ;;  %v4382_v36 = vperm.slane %v3439_v54, %v6290_v12  ;;  %v4380_v4 = vperm.slane %v3424_v46, %v6117_v1  ;;  %v3893_v28 = vsub.f32 1.0, %v3892_v62  ;;  %vm3896_vm3 = vweird.f32 %v7879_v59  ;;  %v9644_v62 = vld [vmem:[#allocation14_spill] sm:$0xff]  ;;  %v9646_v46 = vld [vmem:[#allocation15_spill] sm:$0xff] }
 0x2de   :  { %v5117_v19 = vpop.eup %5116  ;;  %vm7934_vm0 = vcmp.eq.f32.partialorder %v3900_v13, 8.507059e+37  ;;  %v7938_v22 = vadd.f32 1.0, %v5115_v50  ;;  %5120 = vpow2.f32 %v4681_v34  ;;  %v4650_v47 = vmul.f32 -1.442695, %v1519_v15 }
 0x2df   :  { %v4381_v63 = vsel %vm9642_vm10, %v4380_v4, %v7816_v5  ;;  %v3894_v35 = vmul.f32 %v5111_v48, %v3893_v28  ;;  %vm3897_vm1 = vweird.f32 %v5111_v48  ;;  %v3907_v45 = vmul.f32 %v5117_v19, %v7910_v18 }
 0x2e0   :  { %v3903_v58 = vor.u32 1.1754944e-38, %v3902_v42  ;;  %vm3911_vm8 = vweird.f32 %v7910_v18  ;;  %v3915_v21 = vand.u32 2147483647, %v7910_v18  ;;  %5122 = vrcp.f32 %v7938_v22  ;;  %vm3898_vm6 = vmor %vm3896_vm3, %vm3897_vm1 }
 0x2e1   :  { %v7946_v44 = vpop.eup %5118  ;;  %v3895_v7 = vadd.f32 %v5111_v48, %v3894_v35  ;;  %v3908_v30 = vsub.f32 1.0, %v3907_v45  ;;  %5124 = vpow2.f32 %v4650_v47  ;;  %v1551_v56 = vadd.f32 %v5611_v41, %v1349_v25 }
 0x2e2   :  { %vm3912_vm2 = vweird.f32 %v5117_v19  ;;  %v3917_v5 = vand.u32 2147483648, %v7910_v18  ;;  %vm9643_vm15 = vcmask 458112   ;;  %v1583_v51 = vadd.f32 %v5611_v41, %v1413_v52 }
 0x2e3   :  { %v7953_v11 = vsel %vm9643_vm15, %v4382_v36, %v4381_v63  ;;  %v3899_v54 = vsel %vm3898_vm6, %v5111_v48, %v3895_v7  ;;  %v3909_v60 = vmul.f32 %v5117_v19, %v3908_v30  ;;  %v4682_v13 = vmul.f32 -1.442695, %v1551_v56  ;;  %vm3913_vm5 = vmor %vm3911_vm8, %vm3912_vm2 }
 0x2e4   :  { %v9647_v42 = vperm.slane %v9645_v0, %v9646_v46  ;;  %vm9648_vm9 = vcmask 654912   ;;  %v5121_v59 = vpop.eup %5120  ;;  %5126 = vpow2.f32 %v4706_v32  ;;  %v3904_v15 = vsel %vm7934_vm0, %v3903_v58, %v3899_v54  ;;  %vm9650_vm4 = vmmov %vm9643_vm15 }
 0x2e5   :  { %v4714_v50 = vmul.f32 -1.442695, %v1583_v51  ;;  %v1552_v36 = vadd.f32 %v5611_v41, %v1351_v26  ;;  %v4442_v48 = vperm.slane %v3904_v15, %v6117_v1  ;;  %v3910_v4 = vadd.f32 %v5117_v19, %v3909_v60 }
 0x2e6   :  { %v7961_v34 = vsel %vm9648_vm9, %v9647_v42, %v9644_v62  ;;  %v7967_v28 = vadd.f32 1.0, %v5121_v59  ;;  %5128 = vpow2.f32 %v4682_v13  ;;  %v5123_v47 = vpop.eup %5122  ;;  %v2835_v25 = vand.u32 2147483647, %v7776_v17  ;;  %vm9660_vm9 = vmmov %vm9650_vm4 }
 0x2e7   :  { %v3918_v32 = vor.u32 1.1754944e-38, %v3917_v5  ;;  %5130 = vpow2.f32 %v4714_v50  ;;  %v4683_v33 = vmul.f32 -1.442695, %v1552_v36  ;;  %v5125_v63 = vpop.eup %5124  ;;  %v4443_v35 = vsel %vm9649_vm13, %v4442_v48, %v7891_v10  ;;  %v9651_v50 = vld [vmem:[#allocation18_spill] sm:$0xff]  ;;  %v9652_v36 = vld [vmem:[#allocation23_spill] sm:$0xff]  ;;  %v9653_v48 = vld [vmem:[#allocation17_spill] sm:$0xff] }
 0x2e8   :  { %v3914_v45 = vsel %vm3913_vm5, %v5117_v19, %v3910_v4  ;;  %vm3916_vm11 = vcmp.eq.f32.partialorder %v3915_v21, 8.507059e+37  ;;  %v2467_v1 = vmul.f32 %v5123_v47, %v7938_v22  ;;  %v2837_v58 = vand.u32 2147483648, %v7776_v17  ;;  %v1477_v19 = vpop.xlane.xlu1 %1476 }
 0x2e9   :  { %v2372_v7 = vand.u32 2147483648, %v7833_v20  ;;  %v3919_v30 = vsel %vm3916_vm11, %v3918_v32, %v3914_v45  ;;  %5132 = vrcp.f32 %v7967_v28  ;;  %v7982_v18 = vmul.f32 %v7770_v2, %v2348_v61 }
 0x2ea   :  { %v4444_v56 = vperm.slane %v3919_v30, %v6290_v12  ;;  %v2468_v52 = vsub.f32 1.0, %v2467_v1  ;;  %v7985_v10 = vadd.f32 1.0, %v5125_v63  ;;  %v7987_v21 = vpop.eup %5126  ;;  %vm2472_vm12 = vweird.f32 %v5123_v47 }
 0x2eb   :  { %v2475_v5 = vand.u32 2147483647, %v7938_v22  ;;  %v2477_v51 = vand.u32 2147483648, %v7938_v22  ;;  %5134 = vpow2.f32 %v4683_v33  ;;  %v2955_v60 = vand.u32 2147483647, %v7967_v28 }
 0x2ec   :  { %v5129_v54 = vpop.eup %5128  ;;  %v7992_v38 = vsel %vm9650_vm4, %v4444_v56, %v4443_v35  ;;  %v2469_v61 = vmul.f32 %v5123_v47, %v2468_v52  ;;  %5136 = vrcp.f32 %v7985_v10  ;;  %v7997_v26 = vadd.f32 1.0, %v7925_v8 }
 0x2ed   :  { %v5131_v13 = vpop.eup %5130  ;;  %vm2471_vm14 = vweird.f32 %v7938_v22  ;;  %v8000_v62 = vadd.f32 1.0, %v5129_v54  ;;  %v1615_v0 = vadd.f32 %v5611_v41, %v1477_v19  ;;  %v2957_v59 = vand.u32 2147483648, %v7967_v28 }
 0x2ee   :  { %v2470_v42 = vadd.f32 %v5123_v47, %v2469_v61  ;;  %v8004_v15 = vadd.f32 1.0, %v5131_v13  ;;  %v9654_v4 = vperm.slane %v9652_v36, %v9653_v48  ;;  %vm9655_vm3 = vcmask 786112   ;;  %vm2473_vm0 = vmor %vm2471_vm14, %vm2472_vm12  ;;  %v1287_v13 = vpop.xlane.xlu0 %1286 }
 0x2ef   :  { %v5133_v8 = vpop.eup %5132  ;;  %vm2476_vm10 = vcmp.eq.f32.partialorder %v2475_v5, 8.507059e+37  ;;  %v2478_v22 = vor.u32 1.1754944e-38, %v2477_v51  ;;  %v2490_v33 = vand.u32 2147483647, %v7985_v10  ;;  %5138 = vrcp.f32 %v8000_v62 }
 0x2f0   :  { %v8011_v32 = vsel %vm9655_vm3, %v9654_v4, %v9651_v50  ;;  %v2474_v63 = vsel %vm2473_vm0, %v5123_v47, %v2470_v42  ;;  %v2947_v35 = vmul.f32 %v5133_v8, %v7967_v28  ;;  %vm2951_vm1 = vweird.f32 %v7967_v28  ;;  %v1415_v61 = vpop.xlane.xlu1 %1414 }
 0x2f1   :  { %vm8018_vm8 = vcmp.eq.f32.partialorder %v2955_v60, 8.507059e+37  ;;  %v5135_v1 = vpop.eup %5134  ;;  %v2479_v30 = vsel %vm2476_vm10, %v2478_v22, %v2474_v63  ;;  %v2492_v56 = vand.u32 2147483648, %v7985_v10  ;;  %5140 = vrcp.f32 %v8004_v15 }
 0x2f2   :  { %v4746_v52 = vmul.f32 -1.442695, %v1615_v0  ;;  %v5137_v19 = vpop.eup %5136  ;;  %v4258_v5 = vperm.slane %v2479_v30, %v6290_v12  ;;  %v2948_v51 = vsub.f32 1.0, %v2947_v35  ;;  %v2958_v47 = vor.u32 1.1754944e-38, %v2957_v59 }
 0x2f3   :  { %vm2486_vm6 = vweird.f32 %v7985_v10  ;;  %vm2952_vm2 = vweird.f32 %v5133_v8  ;;  %v2482_v54 = vmul.f32 %v5137_v19, %v7985_v10  ;;  %vm8027_vm15 = vcmp.eq.f32.partialorder %v2490_v33, 8.507059e+37 }
 0x2f4   :  { %v2970_v60 = vand.u32 2147483647, %v8000_v62  ;;  %v4259_v0 = vsel %vm9660_vm9, %v4258_v5, %v7918_v57  ;;  %v2949_v42 = vmul.f32 %v5133_v8, %v2948_v51  ;;  %v2972_v50 = vand.u32 2147483648, %v8000_v62  ;;  %vm2953_vm11 = vmor %vm2951_vm1, %vm2952_vm2 }
 0x2f5   :  { %v8035_v36 = vadd.f32 1.0, %v5135_v1  ;;  %v5139_v59 = vpop.eup %5138  ;;  %v2483_v4 = vsub.f32 1.0, %v2482_v54  ;;  %v2493_v22 = vor.u32 1.1754944e-38, %v2492_v56  ;;  %vm2966_vm5 = vweird.f32 %v8000_v62 }
 0x2f6   :  { %5142 = vpow2.f32 %v4746_v52  ;;  %v2950_v33 = vadd.f32 %v5133_v8, %v2949_v42  ;;  %v2962_v63 = vmul.f32 %v5139_v59, %v8000_v62  ;;  %vm3446_vm13 = vweird.f32 %v8004_v15 }
 0x2f7   :  { %5144 = vrcp.f32 %v8035_v36  ;;  %v1520_v57 = vadd.f32 %v5611_v41, %v1287_v13  ;;  %v5141_v35 = vpop.eup %5140  ;;  %v2484_v1 = vmul.f32 %v5137_v19, %v2483_v4  ;;  %vm2487_vm12 = vweird.f32 %v5137_v19 }
 0x2f8   :  { %vm8045_vm4 = vcmp.eq.f32.partialorder %v2970_v60, 8.507059e+37  ;;  %v3450_v56 = vand.u32 2147483647, %v8004_v15  ;;  %v2954_v52 = vsel %vm2953_vm11, %v5133_v8, %v2950_v33  ;;  %v2963_v5 = vsub.f32 1.0, %v2962_v63  ;;  %vm2488_vm3 = vmor %vm2486_vm6, %vm2487_vm12  ;;  %v9664_v63 = vld [vmem:[#allocation19_spill] sm:$0xff] }
 0x2f9   :  { %v2973_v51 = vor.u32 1.1754944e-38, %v2972_v50  ;;  %v3442_v54 = vmul.f32 %v5141_v35, %v8004_v15  ;;  %v2959_v13 = vsel %vm8018_vm8, %v2958_v47, %v2954_v52  ;;  %v2485_v42 = vadd.f32 %v5137_v19, %v2484_v1  ;;  %v9663_v50 = vld [vmem:[#allocation27_spill] sm:$0xff]  ;;  %v9667_v1 = vld [vmem:[#allocation24_spill] sm:$0xff]  ;;  %vm9671_vm8 = vmmov %vm9660_vm9 }
 0x2fa   :  { %vm2967_vm14 = vweird.f32 %v5139_v59  ;;  %v3452_v28 = vand.u32 2147483648, %v8004_v15  ;;  %v4320_v4 = vperm.slane %v2959_v13, %v6290_v12  ;;  %v2964_v60 = vmul.f32 %v5139_v59, %v2963_v5  ;;  %v9668_v52 = vld [vmem:[#allocation16_spill] sm:$0xff] }
 0x2fb   :  { %v3443_v39 = vsub.f32 1.0, %v3442_v54  ;;  %v4651_v49 = vmul.f32 -1.442695, %v1520_v57  ;;  %v2489_v33 = vsel %vm2488_vm3, %v5137_v19, %v2485_v42  ;;  %vm3447_vm0 = vweird.f32 %v5141_v35  ;;  %v9672_v42 = vld [vmem:[#allocation12_spill] sm:$0xff]  ;;  %vm2968_vm6 = vmor %vm2966_vm5, %vm2967_vm14 }
 0x2fc   :  { %v5143_v8 = vpop.eup %5142  ;;  %v9665_v45 = vperm.slane %v9663_v50, %v9664_v63  ;;  %vm9666_vm10 = vcmask 851712   ;;  %v9669_v12 = vperm.slane %v9667_v1, %v9668_v52  ;;  %vm9670_vm1 = vcmask 720512  }
 0x2fd   :  { %v5145_v13 = vpop.eup %5144  ;;  %v4321_v57 = vsel %vm9671_vm8, %v4320_v4, %v7883_v16  ;;  %v2494_v19 = vsel %vm8027_vm15, %v2493_v22, %v2489_v33  ;;  %v2965_v5 = vadd.f32 %v5139_v59, %v2964_v60  ;;  %v3444_v54 = vmul.f32 %v5141_v35, %v3443_v39  ;;  %vm3448_vm15 = vmor %vm3446_vm13, %vm3447_vm0 }
 0x2fe   :  { %v8062_v47 = vsel %vm9666_vm10, %v9665_v45, %v8011_v32  ;;  %v4422_v10 = vsel %vm9670_vm1, %v9669_v12, %v7961_v34  ;;  %v4260_v50 = vperm.slane %v2494_v19, %v9672_v42  ;;  %v3453_v32 = vor.u32 1.1754944e-38, %v3452_v28  ;;  %v9675_v19 = vld [vmem:[#allocation20_spill] sm:$0xff] }
 0x2ff   :  { %v2977_v45 = vmul.f32 %v5145_v13, %v8035_v36  ;;  %v8078_v1 = vadd.f32 1.0, %v5143_v8  ;;  %v2969_v34 = vsel %vm2968_vm6, %v5139_v59, %v2965_v5  ;;  %v3445_v12 = vadd.f32 %v5141_v35, %v3444_v54  ;;  %v9676_v5 = vld [vmem:[#allocation28_spill] sm:$0xff] }
 0x300   :  { %v2987_v16 = vand.u32 2147483648, %v8035_v36  ;;  %5146 = vpow2.f32 %v4651_v49  ;;  %vm9673_vm2 = vcmask 523712   ;;  %v2974_v39 = vsel %vm8045_vm4, %v2973_v51, %v2969_v34  ;;  %v1417_v49 = vpop.xlane.xlu2 %1416 }
 0x301   :  { %v8082_v22 = vsel %vm9673_vm2, %v4260_v50, %v4259_v0  ;;  %v2978_v62 = vsub.f32 1.0, %v2977_v45  ;;  %5148 = vrcp.f32 %v8078_v1  ;;  %v4322_v59 = vperm.slane %v2974_v39, %v9672_v42  ;;  %vm9674_vm13 = vmmov %vm9673_vm2 }
 0x302   :  { %v3449_v28 = vsel %vm3448_vm15, %v5141_v35, %v3445_v12  ;;  %vm3451_vm9 = vcmp.eq.f32.partialorder %v3450_v56, 8.507059e+37  ;;  %vm2981_vm5 = vweird.f32 %v8035_v36  ;;  %vm2351_vm11 = vweird.f32 %v7721_v55  ;;  %v1479_v56 = vpop.xlane.xlu0 %1478  ;;  %vm9679_vm14 = vmmov %vm9673_vm2  ;;  %v9680_v12 = vld [vmem:[#allocation25_spill] sm:$0xff] }
 0x303   :  { %v3454_v0 = vsel %vm3451_vm9, %v3453_v32, %v3449_v28  ;;  %v2979_v4 = vmul.f32 %v5145_v13, %v2978_v62  ;;  %vm2982_vm12 = vweird.f32 %v5145_v13  ;;  %v2985_v30 = vand.u32 2147483647, %v8035_v36  ;;  %v9683_v28 = vld [vmem:[#allocation29_spill] sm:$0xff] }
 0x304   :  { %v2827_v15 = vmul.f32 %v7848_v43, %v7776_v17  ;;  %v4323_v51 = vsel %vm9674_vm13, %v4322_v59, %v4321_v57  ;;  %v4384_v60 = vperm.slane %v3454_v0, %v9672_v42  ;;  %v1584_v35 = vadd.f32 %v5611_v41, %v1415_v61  ;;  %vm2983_vm3 = vmor %vm2981_vm5, %vm2982_vm12 }
 0x305   :  { %5150 = vrcp.f32 %v7997_v26  ;;  %v2980_v8 = vadd.f32 %v5145_v13, %v2979_v4  ;;  %v2988_v33 = vor.u32 1.1754944e-38, %v2987_v16  ;;  %v9677_v54 = vperm.slane %v9676_v5, %v6892_v14  ;;  %v9686_v4 = vld [vmem:[#allocation13_spill] sm:$0xff] }
 0x306   :  { %vm9678_vm4 = vcmask 917312   ;;  %v5147_v32 = vpop.eup %5146  ;;  %v8109_v57 = vsel %vm9679_vm14, %v4384_v60, %v7953_v11  ;;  %v1585_v45 = vadd.f32 %v5611_v41, %v1417_v49  ;;  %v4715_v34 = vmul.f32 -1.442695, %v1584_v35 }
 0x307   :  { %v8105_v50 = vsel %vm9678_vm4, %v9677_v54, %v9675_v19  ;;  %v9681_v16 = vperm.slane %v9680_v12, %v9653_v48  ;;  %vm9682_vm0 = vcmask 786112   ;;  %v5149_v39 = vpop.eup %5148  ;;  %v2984_v62 = vsel %vm2983_vm3, %v5145_v13, %v2980_v8  ;;  %v1289_v19 = vpop.xlane.xlu1 %1288 }
 0x308   :  { %vm2986_vm10 = vcmp.eq.f32.partialorder %v2985_v30, 8.507059e+37  ;;  %v8118_v59 = vadd.f32 1.0, %v5147_v32  ;;  %v9684_v11 = vperm.slane %v9683_v28, %v9664_v63  ;;  %vm9685_vm1 = vcmask 851712  }
 0x309   :  { %v4424_v61 = vsel %vm9682_vm0, %v9681_v16, %v4422_v10  ;;  %vm2352_vm8 = vweird.f32 %v7770_v2  ;;  %v2989_v36 = vsel %vm2986_vm10, %v2988_v33, %v2984_v62  ;;  %v3922_v49 = vmul.f32 %v5149_v39, %v8078_v1 }
 0x30a   :  { %v8124_v0 = vsel %vm9685_vm1, %v9684_v11, %v4424_v61  ;;  %5152 = vpow2.f32 %v4715_v34  ;;  %v8130_v10 = vadd.f32 %v7770_v2, %v7982_v18  ;;  %v8133_v13 = vadd.f32 1.0, %v7987_v21  ;;  %vm8156_vm2 = vmor %vm2351_vm11, %vm2352_vm8  ;;  %v1481_v34 = vpop.xlane.xlu2 %1480 }
 0x30b   :  { %v4324_v30 = vperm.slane %v2989_v36, %v9686_v4  ;;  %5154 = vrcp.f32 %v8118_v59  ;;  %v8139_v60 = vor.u32 1.1754944e-38, %v2837_v58  ;;  %v2370_v35 = vand.u32 2147483647, %v7833_v20  ;;  %v8142_v5 = vpop.eup %5150 }
 0x30c   :  { %v3923_v8 = vsub.f32 1.0, %v3922_v49  ;;  %v4716_v33 = vmul.f32 -1.442695, %v1585_v45  ;;  %v2828_v18 = vsub.f32 1.0, %v2827_v15  ;;  %v8146_v21 = vor.u32 1.1754944e-38, %v2372_v7 }
 0x30d   :  { %vm9687_vm6 = vcmask 589312   ;;  %v3932_v32 = vand.u32 2147483648, %v8078_v1  ;;  %vm8162_vm15 = vcmp.eq.f32.partialorder %v2355_v6, 8.507059e+37  ;;  %vm3927_vm9 = vweird.f32 %v5149_v39  ;;  %v1353_v6 = vpop.xlane.xlu0 %1352 }
 0x30e   :  { %v8149_v54 = vsel %vm9687_vm6, %v4324_v30, %v4323_v51  ;;  %v3924_v7 = vmul.f32 %v5149_v39, %v3923_v8  ;;  %v3930_v51 = vand.u32 2147483647, %v8078_v1  ;;  %v1616_v45 = vadd.f32 %v5611_v41, %v1479_v56 }
 0x30f   :  { %v2354_v12 = vsel %vm8156_vm2, %v7770_v2, %v8130_v10  ;;  %v2362_v16 = vmul.f32 %v7946_v44, %v7833_v20  ;;  %5156 = vrcp.f32 %v8133_v13  ;;  %v1521_v55 = vadd.f32 %v5611_v41, %v1289_v19 }
 0x310   :  { %v5153_v61 = vpop.eup %5152  ;;  %v3925_v62 = vadd.f32 %v5149_v39, %v3924_v7  ;;  %vm3926_vm5 = vweird.f32 %v8078_v1  ;;  %5158 = vpow2.f32 %v4716_v33  ;;  %v1553_v56 = vadd.f32 %v5611_v41, %v1353_v6 }
 0x311   :  { %v5155_v28 = vpop.eup %5154  ;;  %v2829_v11 = vmul.f32 %v7848_v43, %v2828_v18  ;;  %vm3928_vm11 = vmor %vm3926_vm5, %vm3927_vm9  ;;  %v3933_v2 = vor.u32 1.1754944e-38, %v3932_v32  ;;  %v8180_v36 = vadd.f32 1.0, %v5153_v61  ;;  %v1617_v49 = vadd.f32 %v5611_v41, %v1481_v34 }
 0x312   :  { %vm2831_vm12 = vweird.f32 %v7776_v17  ;;  %v3929_v10 = vsel %vm3928_vm11, %v5149_v39, %v3925_v62  ;;  %vm3931_vm13 = vcmp.eq.f32.partialorder %v3930_v51, 8.507059e+37  ;;  %v2497_v30 = vmul.f32 %v5155_v28, %v8118_v59 }
 0x313   :  { %v4747_v1 = vmul.f32 -1.442695, %v1616_v45  ;;  %v2363_v8 = vsub.f32 1.0, %v2362_v16  ;;  %v3934_v33 = vsel %vm3931_vm13, %v3933_v2, %v3929_v10  ;;  %5160 = vrcp.f32 %v8180_v36 }
 0x314   :  { %v4652_v19 = vmul.f32 -1.442695, %v1521_v55  ;;  %v2842_v18 = vmul.f32 %v8142_v5, %v7997_v26  ;;  %v4446_v32 = vperm.slane %v3934_v33, %v9672_v42  ;;  %v2498_v58 = vsub.f32 1.0, %v2497_v30 }
 0x315   :  { %v4684_v7 = vmul.f32 -1.442695, %v1553_v56  ;;  %v8189_v34 = vpop.eup %5156  ;;  %vm2832_vm4 = vweird.f32 %v7848_v43  ;;  %v2505_v39 = vand.u32 2147483647, %v8118_v59  ;;  %v2507_v51 = vand.u32 2147483648, %v8118_v59 }
 0x316   :  { %v4748_v45 = vmul.f32 -1.442695, %v1617_v49  ;;  %v5159_v16 = vpop.eup %5158  ;;  %vm8196_vm14 = vcmp.eq.f32.partialorder %v2835_v25, 8.507059e+37  ;;  %vm2366_vm3 = vweird.f32 %v7833_v20  ;;  %vm9694_vm0 = vcmask 523712  }
 0x317   :  { %v8203_v42 = vsel %vm9694_vm0, %v4446_v32, %v7992_v38  ;;  %v2499_v6 = vmul.f32 %v5155_v28, %v2498_v58  ;;  %vm2502_vm10 = vweird.f32 %v5155_v28  ;;  %5162 = vpow2.f32 %v4747_v1 }
 0x318   :  { %v8208_v61 = vsel %vm8162_vm15, %v7794_v53, %v2354_v12  ;;  %v2830_v62 = vadd.f32 %v7848_v43, %v2829_v11  ;;  %v2364_v25 = vmul.f32 %v7946_v44, %v2363_v8  ;;  %5164 = vpow2.f32 %v4652_v19  ;;  %v9695_v12 = vld [vmem:[#allocation26_spill] sm:$0xff]  ;;  %vm8225_vm15 = vmor %vm2831_vm12, %vm2832_vm4 }
 0x319   :  { %v2843_v56 = vsub.f32 1.0, %v2842_v18  ;;  %v2500_v2 = vadd.f32 %v5155_v28, %v2499_v6  ;;  %vm2501_vm1 = vweird.f32 %v8118_v59  ;;  %5166 = vpow2.f32 %v4684_v7  ;;  %v5161_v38 = vpop.eup %5160 }
 0x31a   :  { %v3322_v49 = vmul.f32 %v8189_v34, %v8133_v13  ;;  %vm2503_vm8 = vmor %vm2501_vm1, %vm2502_vm10  ;;  %v2508_v10 = vor.u32 1.1754944e-38, %v2507_v51  ;;  %v8215_v30 = vadd.f32 1.0, %v5159_v16  ;;  %5168 = vpow2.f32 %v4748_v45 }
 0x31b   :  { %vm2367_vm6 = vweird.f32 %v7946_v44  ;;  %v2504_v53 = vsel %vm2503_vm8, %v5155_v28, %v2500_v2  ;;  %vm2506_vm2 = vcmp.eq.f32.partialorder %v2505_v39, 8.507059e+37  ;;  %v3457_v15 = vmul.f32 %v5161_v38, %v8180_v36 }
 0x31c   :  { %v4240_v11 = vperm.slane %v8208_v61, %v9695_v12  ;;  %vm8231_vm9 = vcmp.eq.f32.partialorder %v2370_v35, 8.507059e+37  ;;  %v2850_v28 = vand.u32 2147483647, %v7997_v26  ;;  %v2852_v8 = vand.u32 2147483648, %v7997_v26  ;;  %vm8258_vm13 = vmor %vm2366_vm3, %vm2367_vm6 }
 0x31d   :  { %v2509_v33 = vsel %vm2506_vm2, %v2508_v10, %v2504_v53  ;;  %v5163_v19 = vpop.eup %5162  ;;  %v2834_v17 = vsel %vm8225_vm15, %v7848_v43, %v2830_v62  ;;  %v2365_v18 = vadd.f32 %v7946_v44, %v2364_v25  ;;  %vm2846_vm5 = vweird.f32 %v7997_v26 }
 0x31e   :  { %v4262_v32 = vperm.slane %v2509_v33, %v9686_v4  ;;  %v3458_v35 = vsub.f32 1.0, %v3457_v15  ;;  %v5165_v58 = vpop.eup %5164  ;;  %v2844_v7 = vmul.f32 %v8142_v5, %v2843_v56  ;;  %v3323_v39 = vsub.f32 1.0, %v3322_v49  ;;  %v1291_v49 = vpop.xlane.xlu2 %1290  ;;  %v9714_v56 = vld [vmem:[#allocation21_spill] sm:$0xff] }
 0x31f   :  { %5170 = vrcp.f32 %v8215_v30  ;;  %v3467_v51 = vand.u32 2147483648, %v8180_v36  ;;  %v5167_v45 = vpop.eup %5166  ;;  %vm9700_vm11 = vcmask 589312   ;;  %vm3462_vm12 = vweird.f32 %v5161_v38 }
 0x320   :  { %v8248_v16 = vsel %vm9700_vm11, %v4262_v32, %v8082_v22  ;;  %v3459_v43 = vmul.f32 %v5161_v38, %v3458_v35  ;;  %v3465_v6 = vand.u32 2147483647, %v8180_v36  ;;  %v5169_v62 = vpop.eup %5168  ;;  %v2839_v25 = vsel %vm8196_vm14, %v8139_v60, %v2834_v17 }
 0x321   :  { %v2853_v2 = vor.u32 1.1754944e-38, %v2852_v8  ;;  %vm3326_vm4 = vweird.f32 %v8133_v13  ;;  %v8263_v22 = vadd.f32 1.0, %v5163_v19  ;;  %v2369_v10 = vsel %vm8258_vm13, %v7946_v44, %v2365_v18 }
 0x322   :  { %vm8268_vm0 = vcmp.eq.f32.partialorder %v2850_v28, 8.507059e+37  ;;  %v3460_v55 = vadd.f32 %v5161_v38, %v3459_v43  ;;  %vm3461_vm14 = vweird.f32 %v8180_v36  ;;  %v8273_v20 = vadd.f32 1.0, %v5165_v58  ;;  %v1355_v36 = vpop.xlane.xlu1 %1354 }
 0x323   :  { %vm2847_vm3 = vweird.f32 %v8142_v5  ;;  %v3324_v53 = vmul.f32 %v8189_v34, %v3323_v39  ;;  %vm3463_vm10 = vmor %vm3461_vm14, %vm3462_vm12  ;;  %v3468_v15 = vor.u32 1.1754944e-38, %v3467_v51  ;;  %v8278_v59 = vadd.f32 1.0, %v5167_v45  ;;  %v9711_v45 = vld [vmem:[#allocation32_spill] sm:$0xff] }
 0x324   :  { %vm3792_vm1 = vweird.f32 %v7234_v9  ;;  %v2845_v44 = vadd.f32 %v8142_v5, %v2844_v7  ;;  %v3464_v28 = vsel %vm3463_vm10, %v5161_v38, %v3460_v55  ;;  %vm3466_vm8 = vcmp.eq.f32.partialorder %v3465_v6, 8.507059e+37  ;;  %vm8306_vm15 = vmor %vm2846_vm5, %vm2847_vm3 }
 0x325   :  { %v8282_v8 = vadd.f32 1.0, %v5169_v62  ;;  %v8284_v33 = vpop.eup %5170  ;;  %v9705_v19 = vand.u32 2147483647, %v7132_v37  ;;  %v3330_v18 = vand.u32 2147483647, %v8133_v13  ;;  %v3469_v32 = vsel %vm3466_vm8, %v3468_v15, %v3464_v28 }
 0x326   :  { %5172 = vrcp.f32 %v8263_v22  ;;  %v1522_v35 = vadd.f32 %v5611_v41, %v1291_v49  ;;  %vm3791_vm2 = vweird.f32 %v7160_v31  ;;  %v4305_v38 = vperm.slane %v2839_v25, %v9695_v12 }
 0x327   :  { %vm8288_vm6 = vcmp.eq.f32.partialorder %v9705_v19, 8.507059e+37  ;;  %v2374_v58 = vsel %vm8231_vm9, %v8146_v21, %v2369_v10  ;;  %v4386_v37 = vperm.slane %v3469_v32, %v9686_v4  ;;  %5174 = vrcp.f32 %v8273_v20  ;;  %v9720_v32 = vld [vmem:[#allocation31_spill] sm:$0xff] }
 0x328   :  { %v3325_v39 = vadd.f32 %v8189_v34, %v3324_v53  ;;  %vm3327_vm11 = vweird.f32 %v8189_v34  ;;  %v3332_v51 = vand.u32 2147483648, %v8133_v13  ;;  %5176 = vrcp.f32 %v8278_v59 }
 0x329   :  { %v2849_v21 = vsel %vm8306_vm15, %v8142_v5, %v2845_v44  ;;  %v3472_v1 = vmul.f32 %v8284_v33, %v8215_v30  ;;  %vm9710_vm9 = vcmask 589312   ;;  %5178 = vrcp.f32 %v8282_v8  ;;  %vm8328_vm12 = vmor %vm3326_vm4, %vm3327_vm11  ;;  %v1419_v5 = vpop.xlane.xlu0 %1418 }
 0x32a   :  { %v8321_v26 = vsel %vm9710_vm9, %v4386_v37, %v8109_v57  ;;  %v4244_v43 = vperm.slane %v2374_v58, %v9711_v45  ;;  %v4653_v6 = vmul.f32 -1.442695, %v1522_v35  ;;  %v1554_v62 = vadd.f32 %v5611_v41, %v1355_v36  ;;  %v1483_v29 = vpop.xlane.xlu1 %1482 }
 0x32b   :  { %vm4241_vm5 = vcmask 982912   ;;  %vm4245_vm13 = vcmask 1048512   ;;  %v9715_v10 = vperm.slane %v7584_v24, %v6892_v14  ;;  %vm9716_vm14 = vcmask 917312   ;;  %v1357_v24 = vpop.xlane.xlu2 %1356 }
 0x32c   :  { %v4242_v57 = vsel %vm4241_vm5, %v4240_v11, %v9714_v56  ;;  %v4306_v49 = vsel %vm4241_vm5, %v4305_v38, %v8105_v50  ;;  %v8344_v55 = vpop.eup %5172  ;;  %v8348_v53 = vadd.f32 %v7234_v9, %v7822_v23  ;;  %v2854_v61 = vsel %vm8268_vm0, %v2853_v2, %v2849_v21  ;;  %vm9728_vm8 = vmmov %vm9716_vm14 }
 0x32d   :  { %v4366_v13 = vsel %vm9716_vm14, %v9715_v10, %v8062_v47  ;;  %v3329_v11 = vsel %vm8328_vm12, %v8189_v34, %v3325_v39  ;;  %vm8355_vm4 = vcmp.eq.f32.partialorder %v3330_v18, 8.507059e+37  ;;  %v8359_v15 = vpop.eup %5174  ;;  %v3333_v47 = vor.u32 1.1754944e-38, %v3332_v51 }
 0x32e   :  { %v3473_v44 = vsub.f32 1.0, %v3472_v1  ;;  %v3482_v28 = vand.u32 2147483648, %v8215_v30  ;;  %v1555_v23 = vadd.f32 %v5611_v41, %v1357_v24  ;;  %v8363_v36 = vpop.eup %5176  ;;  %5180 = vpow2.f32 %v4653_v6 }
 0x32f   :  { %v4685_v2 = vmul.f32 -1.442695, %v1554_v62  ;;  %v1586_v60 = vadd.f32 %v5611_v41, %v1419_v5  ;;  %v8367_v34 = vsel %vm4245_vm13, %v4244_v43, %v4242_v57  ;;  %v8369_v19 = vpop.eup %5178  ;;  %v9719_v18 = vsel %vm7790_vm7, %v7219_v3, %v7764_v27  ;;  %vm8393_vm7 = vmor %vm3791_vm2, %vm3792_vm1 }
 0x330   :  { %v3784_v35 = vsel %vm8288_vm6, %v9720_v32, %v9719_v18  ;;  %v9721_v38 = vand.u32 2147483647, %v7160_v31  ;;  %v4307_v37 = vperm.slane %v2854_v61, %v9711_v45  ;;  %v3334_v7 = vsel %vm8355_vm4, %v3333_v47, %v3329_v11 }
 0x331   :  { %vm3476_vm3 = vweird.f32 %v8215_v30  ;;  %v3480_v27 = vand.u32 2147483647, %v8215_v30  ;;  %v2512_v17 = vmul.f32 %v8359_v15, %v8273_v20  ;;  %v4686_v39 = vmul.f32 -1.442695, %v1555_v23  ;;  %v1293_v56 = vpop.xlane.xlu0 %1292 }
 0x332   :  { %vm8381_vm0 = vcmp.eq.f32.partialorder %v9721_v38, 8.507059e+37  ;;  %v1618_v51 = vadd.f32 %v5611_v41, %v1483_v29  ;;  %v8401_v21 = vor.u32 1.1754944e-38, %v3482_v28  ;;  %v3937_v1 = vmul.f32 %v8344_v55, %v8263_v22 }
 0x333   :  { %v2992_v31 = vmul.f32 %v8363_v36, %v8278_v59  ;;  %v3794_v43 = vsel %vm8393_vm7, %v7234_v9, %v8348_v53  ;;  %v3474_v6 = vmul.f32 %v8284_v33, %v3473_v44  ;;  %v3952_v62 = vmul.f32 %v8369_v19, %v8282_v8  ;;  %v9726_v53 = vld [vmem:[#allocation30_spill] sm:$0xff] }
 0x334   :  { %5182 = vpow2.f32 %v4685_v2  ;;  %v4717_v25 = vmul.f32 -1.442695, %v1586_v60  ;;  %vm3477_vm10 = vweird.f32 %v8284_v33  ;;  %v4749_v5 = vmul.f32 -1.442695, %v1618_v51  ;;  %v5181_v10 = vpop.eup %5180 }
 0x335   :  { %5184 = vpow2.f32 %v4686_v39  ;;  %v8416_v57 = vsel %vm4245_vm13, %v4307_v37, %v4306_v49  ;;  %v3947_v61 = vand.u32 2147483648, %v8263_v22  ;;  %v2513_v11 = vsub.f32 1.0, %v2512_v17  ;;  %vm8452_vm6 = vmor %vm3476_vm3, %vm3477_vm10 }
 0x336   :  { %v1523_v9 = vadd.f32 %v5611_v41, %v1293_v56  ;;  %v9727_v50 = vperm.slane %v9726_v53, %v9695_v12  ;;  %v3938_v47 = vsub.f32 1.0, %v3937_v1  ;;  %vm3941_vm1 = vweird.f32 %v8263_v22 }
 0x337   :  { %v2993_v44 = vsub.f32 1.0, %v2992_v31  ;;  %v4369_v28 = vperm.slane %v3334_v7, %v9711_v45  ;;  %v4427_v49 = vperm.slane %v3784_v35, %v6892_v14  ;;  %v8428_v23 = vadd.f32 %v8284_v33, %v3474_v6  ;;  %v1423_v31 = vpop.xlane.xlu2 %1422 }
 0x338   :  { %v4368_v24 = vsel %vm4241_vm5, %v9727_v50, %v4366_v13  ;;  %v3953_v2 = vsub.f32 1.0, %v3952_v62  ;;  %5186 = vpow2.f32 %v4717_v25  ;;  %v4654_v60 = vmul.f32 -1.442695, %v1523_v9 }
 0x339   :  { %v8430_v18 = vadd.f32 1.0, %v5181_v10  ;;  %5188 = vpow2.f32 %v4749_v5  ;;  %v8433_v32 = vsel %vm4245_vm13, %v4369_v28, %v4368_v24  ;;  %v8437_v13 = vsel %vm9728_vm8, %v4427_v49, %v8124_v0  ;;  %v1485_v6 = vpop.xlane.xlu0 %1484 }
 0x33a   :  { %v5183_v38 = vpop.eup %5182  ;;  %v3945_v37 = vand.u32 2147483647, %v8263_v22  ;;  %v8440_v35 = vor.u32 1.1754944e-38, %v3947_v61  ;;  %v2514_v7 = vmul.f32 %v8359_v15, %v2513_v11  ;;  %v8446_v29 = vsel %vm8381_vm0, %v7565_v40, %v3794_v43 }
 0x33b   :  { %v5185_v3 = vpop.eup %5184  ;;  %v3939_v17 = vmul.f32 %v8344_v55, %v3938_v47  ;;  %vm3956_vm2 = vweird.f32 %v8282_v8  ;;  %v3960_v39 = vand.u32 2147483647, %v8282_v8  ;;  %v2994_v51 = vmul.f32 %v8363_v36, %v2993_v44 }
 0x33c   :  { %v3479_v40 = vsel %vm8452_vm6, %v8284_v33, %v8428_v23  ;;  %v3954_v58 = vmul.f32 %v8369_v19, %v3953_v2  ;;  %v3962_v30 = vand.u32 2147483648, %v8282_v8  ;;  %5190 = vpow2.f32 %v4654_v60 }
 0x33d   :  { %vm3942_vm15 = vweird.f32 %v8344_v55  ;;  %vm2516_vm11 = vweird.f32 %v8273_v20  ;;  %5192 = vrcp.f32 %v8430_v18  ;;  %v8469_v1 = vadd.f32 1.0, %v5183_v38 }
 0x33e   :  { %v5187_v43 = vpop.eup %5186  ;;  %vm8471_vm9 = vcmp.eq.f32.partialorder %v3480_v27, 8.507059e+37  ;;  %vm8475_vm12 = vcmp.eq.f32.partialorder %v3945_v37, 8.507059e+37  ;;  %v2515_v62 = vadd.f32 %v8359_v15, %v2514_v7  ;;  %vm2517_vm14 = vweird.f32 %v8359_v15  ;;  %vm8492_vm0 = vmor %vm3941_vm1, %vm3942_vm15 }
 0x33f   :  { %v2520_v25 = vand.u32 2147483647, %v8273_v20  ;;  %v8482_v5 = vadd.f32 1.0, %v5185_v3  ;;  %v5189_v56 = vpop.eup %5188  ;;  %v3940_v10 = vadd.f32 %v8344_v55, %v3939_v17  ;;  %v2522_v27 = vand.u32 2147483648, %v8273_v20  ;;  %vm8502_vm7 = vmor %vm2516_vm11, %vm2517_vm14  ;;  %v1421_v17 = vpop.xlane.xlu1 %1420 }
 0x340   :  { %v2995_v61 = vadd.f32 %v8363_v36, %v2994_v51  ;;  %vm2997_vm4 = vweird.f32 %v8363_v36  ;;  %v3955_v9 = vadd.f32 %v8369_v19, %v3954_v58  ;;  %vm3957_vm3 = vweird.f32 %v8369_v19  ;;  %v1487_v20 = vpop.xlane.xlu2 %1486 }
 0x341   :  { %v3002_v53 = vand.u32 2147483648, %v8278_v59  ;;  %v1588_v50 = vadd.f32 %v5611_v41, %v1423_v31  ;;  %vm2996_vm10 = vweird.f32 %v8278_v59  ;;  %v3000_v22 = vand.u32 2147483647, %v8278_v59  ;;  %vm8530_vm6 = vmor %vm3956_vm2, %vm3957_vm3 }
 0x342   :  { %5194 = vrcp.f32 %v8469_v1  ;;  %v8509_v47 = vadd.f32 1.0, %v5187_v43  ;;  %v5191_v44 = vpop.eup %5190  ;;  %v2519_v28 = vsel %vm8502_vm7, %v8359_v15, %v2515_v62  ;;  %vm2521_vm1 = vcmp.eq.f32.partialorder %v2520_v25, 8.507059e+37  ;;  %vm8514_vm8 = vmor %vm2996_vm10, %vm2997_vm4 }
 0x343   :  { %5196 = vrcp.f32 %v8482_v5  ;;  %v8519_v49 = vadd.f32 1.0, %v5189_v56  ;;  %v8521_v23 = vpop.eup %5192  ;;  %v3944_v59 = vsel %vm8492_vm0, %v8344_v55, %v3940_v10  ;;  %v2523_v2 = vor.u32 1.1754944e-38, %v2522_v27 }
 0x344   :  { %v2999_v60 = vsel %vm8514_vm8, %v8363_v36, %v2995_v61  ;;  %v8537_v38 = vadd.f32 1.0, %v5191_v44  ;;  %v3959_v37 = vsel %vm8530_vm6, %v8369_v19, %v3955_v9  ;;  %v3003_v55 = vor.u32 1.1754944e-38, %v3002_v53 }
 0x345   :  { %v4719_v7 = vmul.f32 -1.442695, %v1588_v50  ;;  %v4429_v8 = vperm.slane %v8446_v29, %v9695_v12  ;;  %v3963_v3 = vor.u32 1.1754944e-38, %v3962_v30  ;;  %v2524_v0 = vsel %vm2521_vm1, %v2523_v2, %v2519_v28 }
 0x346   :  { %vm3001_vm2 = vcmp.eq.f32.partialorder %v3000_v22, 8.507059e+37  ;;  %5198 = vrcp.f32 %v8509_v47  ;;  %vm3961_vm15 = vcmp.eq.f32.partialorder %v3960_v39, 8.507059e+37  ;;  %v2527_v36 = vmul.f32 %v8521_v23, %v8430_v18 }
 0x347   :  { %v3004_v51 = vsel %vm3001_vm2, %v3003_v55, %v2999_v60  ;;  %5200 = vrcp.f32 %v8519_v49  ;;  %v8553_v19 = vsel %vm8471_vm9, %v8401_v21, %v3479_v40  ;;  %v8558_v29 = vsel %vm8475_vm12, %v8440_v35, %v3944_v59 }
 0x348   :  { %v8548_v58 = vpop.eup %5194  ;;  %v8560_v30 = vsel %vm3961_vm15, %v3963_v3, %v3959_v37  ;;  %5202 = vrcp.f32 %v8537_v38  ;;  %v4264_v31 = vperm.slane %v2524_v0, %v9646_v46  ;;  %v1587_v43 = vadd.f32 %v5611_v41, %v1421_v17 }
 0x349   :  { %v8563_v39 = vpop.eup %5196  ;;  %5204 = vpow2.f32 %v4719_v7  ;;  %v8569_v21 = vsel %vm4241_vm5, %v4429_v8, %v8437_v13  ;;  %v4326_v40 = vperm.slane %v3004_v51, %v9646_v46  ;;  %v2537_v35 = vand.u32 2147483648, %v8430_v18  ;;  %v1295_v7 = vpop.xlane.xlu1 %1294 }
 0x34a   :  { %v4388_v33 = vperm.slane %v8553_v19, %v9646_v46  ;;  %v2528_v62 = vsub.f32 1.0, %v2527_v36  ;;  %v3007_v25 = vmul.f32 %v8548_v58, %v8469_v1  ;;  %v3022_v27 = vmul.f32 %v8563_v39, %v8482_v5  ;;  %v1297_v8 = vpop.xlane.xlu2 %1296 }
 0x34b   :  { %v4718_v61 = vmul.f32 -1.442695, %v1587_v43  ;;  %vm9743_vm11 = vcmask 654912   ;;  %vm2531_vm9 = vweird.f32 %v8430_v18  ;;  %v2535_v53 = vand.u32 2147483647, %v8430_v18 }
 0x34c   :  { %v8577_v56 = vpop.eup %5198  ;;  %v8589_v9 = vsel %vm9743_vm11, %v4264_v31, %v8248_v16  ;;  %v1619_v50 = vadd.f32 %v5611_v41, %v1485_v6  ;;  %vm9744_vm12 = vmmov %vm9743_vm11  ;;  %vm2532_vm14 = vweird.f32 %v8521_v23  ;;  %v2538_v44 = vor.u32 1.1754944e-38, %v2537_v35 }
 0x34d   :  { %v8585_v11 = vpop.eup %5200  ;;  %v8598_v22 = vsel %vm9744_vm12, %v4326_v40, %v8149_v54  ;;  %v3017_v28 = vand.u32 2147483648, %v8469_v1  ;;  %v2529_v59 = vmul.f32 %v8521_v23, %v2528_v62  ;;  %v3008_v15 = vsub.f32 1.0, %v3007_v25  ;;  %vm8635_vm10 = vmor %vm2531_vm9, %vm2532_vm14 }
 0x34e   :  { %v8594_v24 = vpop.eup %5202  ;;  %v3015_v2 = vand.u32 2147483647, %v8469_v1  ;;  %v3487_v60 = vmul.f32 %v8577_v56, %v8509_v47  ;;  %v3023_v37 = vsub.f32 1.0, %v3022_v27  ;;  %v3967_v54 = vmul.f32 %v8585_v11, %v8519_v49 }
 0x34f   :  { %v5205_v16 = vpop.eup %5204  ;;  %5206 = vpow2.f32 %v4718_v61  ;;  %vm8610_vm4 = vcmp.eq.f32.partialorder %v2535_v53, 8.507059e+37  ;;  %vm3011_vm0 = vweird.f32 %v8469_v1  ;;  %v2542_v3 = vmul.f32 %v8594_v24, %v8537_v38 }
 0x350   :  { %v8608_v55 = vadd.f32 1.0, %v5205_v16  ;;  %v4750_v0 = vmul.f32 -1.442695, %v1619_v50  ;;  %v1620_v17 = vadd.f32 %v5611_v41, %v1487_v20  ;;  %v1524_v51 = vadd.f32 %v5611_v41, %v1295_v7  ;;  %v1359_v20 = vpop.xlane.xlu0 %1358 }
 0x351   :  { %v8619_v36 = vor.u32 1.1754944e-38, %v3017_v28  ;;  %v3495_v31 = vand.u32 2147483647, %v8509_v47  ;;  %v3497_v43 = vand.u32 2147483648, %v8509_v47  ;;  %v2530_v40 = vadd.f32 %v8521_v23, %v2529_v59 }
 0x352   :  { %5208 = vrcp.f32 %v8608_v55  ;;  %v3009_v35 = vmul.f32 %v8548_v58, %v3008_v15  ;;  %v3488_v6 = vsub.f32 1.0, %v3487_v60  ;;  %vm3026_vm3 = vweird.f32 %v8482_v5 }
 0x353   :  { %v3024_v62 = vmul.f32 %v8563_v39, %v3023_v37  ;;  %5210 = vpow2.f32 %v4750_v0  ;;  %v4751_v25 = vmul.f32 -1.442695, %v1620_v17  ;;  %v4655_v27 = vmul.f32 -1.442695, %v1524_v51 }
 0x354   :  { %vm3491_vm7 = vweird.f32 %v8509_v47  ;;  %v3030_v61 = vand.u32 2147483647, %v8482_v5  ;;  %v3032_v53 = vand.u32 2147483648, %v8482_v5  ;;  %v3968_v50 = vsub.f32 1.0, %v3967_v54 }
 0x355   :  { %v2543_v28 = vsub.f32 1.0, %v2542_v3  ;;  %v5207_v16 = vpop.eup %5206  ;;  %vm3012_vm1 = vweird.f32 %v8548_v58  ;;  %v8640_v15 = vor.u32 1.1754944e-38, %v3497_v43  ;;  %5212 = vpow2.f32 %v4751_v25 }
 0x356   :  { %v1556_v60 = vadd.f32 %v5611_v41, %v1359_v20  ;;  %v2534_v37 = vsel %vm8635_vm10, %v8521_v23, %v2530_v40  ;;  %v3010_v54 = vadd.f32 %v8548_v58, %v3009_v35  ;;  %vm8647_vm8 = vcmp.eq.f32.partialorder %v3015_v2, 8.507059e+37  ;;  %vm8669_vm15 = vmor %vm3011_vm0, %vm3012_vm1 }
 0x357   :  { %v8651_v18 = vadd.f32 1.0, %v5207_v16  ;;  %5214 = vpow2.f32 %v4655_v27  ;;  %v3489_v0 = vmul.f32 %v8577_v56, %v3488_v6  ;;  %v3025_v17 = vadd.f32 %v8563_v39, %v3024_v62  ;;  %v1361_v27 = vpop.xlane.xlu1 %1360 }
 0x358   :  { %v8653_v3 = vpop.eup %5208  ;;  %vm3027_vm6 = vweird.f32 %v8563_v39  ;;  %v4687_v51 = vmul.f32 -1.442695, %v1556_v60  ;;  %v3033_v43 = vor.u32 1.1754944e-38, %v3032_v53  ;;  %v3969_v23 = vmul.f32 %v8585_v11, %v3968_v50 }
 0x359   :  { %vm3971_vm2 = vweird.f32 %v8519_v49  ;;  %v2544_v2 = vmul.f32 %v8594_v24, %v2543_v28  ;;  %v5211_v40 = vpop.eup %5210  ;;  %v8663_v35 = vsel %vm8610_vm4, %v2538_v44, %v2534_v37  ;;  %vm3492_vm11 = vweird.f32 %v8577_v56  ;;  %vm8688_vm12 = vmor %vm3026_vm3, %vm3027_vm6 }
 0x35a   :  { %vm8674_vm9 = vcmp.eq.f32.partialorder %v3495_v31, 8.507059e+37  ;;  %v3977_v25 = vand.u32 2147483648, %v8519_v49  ;;  %v3517_v44 = vmul.f32 %v8653_v3, %v8608_v55  ;;  %v3014_v1 = vsel %vm8669_vm15, %v8548_v58, %v3010_v54  ;;  %vm8709_vm0 = vmor %vm3491_vm7, %vm3492_vm11 }
 0x35b   :  { %vm3972_vm14 = vweird.f32 %v8585_v11  ;;  %5216 = vrcp.f32 %v8651_v18  ;;  %v8694_v31 = vadd.f32 1.0, %v5211_v40  ;;  %v5213_v53 = vpop.eup %5212  ;;  %v3490_v50 = vadd.f32 %v8577_v56, %v3489_v0 }
 0x35c   :  { %v3029_v58 = vsel %vm8688_vm12, %v8563_v39, %v3025_v17  ;;  %vm2547_vm4 = vweird.f32 %v8594_v24  ;;  %5218 = vpow2.f32 %v4687_v51  ;;  %v3970_v28 = vadd.f32 %v8585_v11, %v3969_v23  ;;  %vm8722_vm10 = vmor %vm3971_vm2, %vm3972_vm14 }
 0x35d   :  { %v5215_v5 = vpop.eup %5214  ;;  %v2545_v20 = vadd.f32 %v8594_v24, %v2544_v2  ;;  %5220 = vrcp.f32 %v8694_v31  ;;  %v1525_v16 = vadd.f32 %v5611_v41, %v1297_v8  ;;  %v2552_v39 = vand.u32 2147483648, %v8537_v38 }
 0x35e   :  { %v3518_v60 = vsub.f32 1.0, %v3517_v44  ;;  %v8714_v37 = vadd.f32 1.0, %v5213_v53  ;;  %v8716_v54 = vadd.f32 1.0, %v5215_v5  ;;  %vm3031_vm3 = vcmp.eq.f32.partialorder %v3030_v61, 8.507059e+37 }
 0x35f   :  { %v3975_v47 = vand.u32 2147483647, %v8519_v49  ;;  %vm2546_vm7 = vweird.f32 %v8537_v38  ;;  %v2550_v17 = vand.u32 2147483647, %v8537_v38  ;;  %v4266_v51 = vperm.slane %v8663_v35, %v9668_v52 }
 0x360   :  { %v3019_v61 = vsel %vm8647_vm8, %v8619_v36, %v3014_v1  ;;  %v3494_v23 = vsel %vm8709_vm0, %v8577_v56, %v3490_v50  ;;  %v3034_v2 = vsel %vm3031_vm3, %v3033_v43, %v3029_v58  ;;  %vm8739_vm1 = vmor %vm2546_vm7, %vm2547_vm4  ;;  %v3974_v38 = vsel %vm8722_vm10, %v8585_v11, %v3970_v28 }
 0x361   :  { %v8743_v40 = vpop.eup %5216  ;;  %v2549_v36 = vsel %vm8739_vm1, %v8594_v24, %v2545_v20  ;;  %5222 = vrcp.f32 %v8714_v37  ;;  %v4656_v56 = vmul.f32 -1.442695, %v1525_v16  ;;  %v3978_v43 = vor.u32 1.1754944e-38, %v3977_v25 }
 0x362   :  { %v5219_v7 = vpop.eup %5218  ;;  %v2553_v35 = vor.u32 1.1754944e-38, %v2552_v39  ;;  %v3519_v6 = vmul.f32 %v8653_v3, %v3518_v60  ;;  %5224 = vrcp.f32 %v8716_v54  ;;  %v4328_v8 = vperm.slane %v3019_v61, %v9668_v52  ;;  %v1425_v39 = vpop.xlane.xlu0 %1424 }
 0x363   :  { %v8754_v44 = vpop.eup %5220  ;;  %v8760_v11 = vsel %vm8674_vm9, %v8640_v15, %v3494_v23  ;;  %vm3976_vm8 = vcmp.eq.f32.partialorder %v3975_v47, 8.507059e+37  ;;  %vm2551_vm6 = vcmp.eq.f32.partialorder %v2550_v17, 8.507059e+37  ;;  %v4330_v24 = vperm.slane %v3034_v2, %v9653_v48 }
 0x364   :  { %v8763_v1 = vsel %vm3976_vm8, %v3978_v43, %v3974_v38  ;;  %v2554_v25 = vsel %vm2551_vm6, %v2553_v35, %v2549_v36  ;;  %vm3521_vm2 = vweird.f32 %v8608_v55  ;;  %v3525_v53 = vand.u32 2147483647, %v8608_v55 }
 0x365   :  { %v3527_v50 = vand.u32 2147483648, %v8608_v55  ;;  %v8768_v58 = vadd.f32 1.0, %v5219_v7  ;;  %5226 = vpow2.f32 %v4656_v56  ;;  %v3520_v15 = vadd.f32 %v8653_v3, %v3519_v6 }
 0x366   :  { %vm3522_vm15 = vweird.f32 %v8653_v3  ;;  %v3502_v62 = vmul.f32 %v8743_v40, %v8651_v18  ;;  %v3982_v5 = vmul.f32 %v8754_v44, %v8694_v31  ;;  %vm9763_vm11 = vcmask 720512  }
 0x367   :  { %v8776_v28 = vpop.eup %5222  ;;  %v4329_v20 = vsel %vm9763_vm11, %v4328_v8, %v8598_v22  ;;  %v4268_v16 = vperm.slane %v2554_v25, %v9653_v48  ;;  %5228 = vrcp.f32 %v8768_v58  ;;  %v1557_v59 = vadd.f32 %v5611_v41, %v1361_v27  ;;  %vm9764_vm9 = vmmov %vm9763_vm11 }
 0x368   :  { %v8783_v60 = vpop.eup %5224  ;;  %v4267_v0 = vsel %vm9764_vm9, %v4266_v51, %v8589_v9  ;;  %vm9765_vm12 = vcmask 786112   ;;  %v3512_v22 = vand.u32 2147483648, %v8651_v18  ;;  %vm8799_vm14 = vmor %vm3521_vm2, %vm3522_vm15  ;;  %vm8803_vm4 = vcmp.eq.f32.partialorder %v3525_v53, 8.507059e+37 }
 0x369   :  { %v8790_v17 = vsel %vm9765_vm12, %v4330_v24, %v4329_v20  ;;  %v3528_v51 = vor.u32 1.1754944e-38, %v3527_v50  ;;  %v3510_v2 = vand.u32 2147483647, %v8651_v18  ;;  %v3524_v49 = vsel %vm8799_vm14, %v8653_v3, %v3520_v15  ;;  %vm9770_vm0 = vmmov %vm9765_vm12  ;;  %v1363_v50 = vpop.xlane.xlu2 %1362 }
 0x36a   :  { %v3503_v38 = vsub.f32 1.0, %v3502_v62  ;;  %v3983_v36 = vsub.f32 1.0, %v3982_v5  ;;  %v3992_v56 = vand.u32 2147483648, %v8694_v31  ;;  %v8813_v7 = vsel %vm9770_vm0, %v4268_v16, %v4267_v0 }
 0x36b   :  { %v5227_v55 = vpop.eup %5226  ;;  %vm3506_vm3 = vweird.f32 %v8651_v18  ;;  %v3997_v43 = vmul.f32 %v8776_v28, %v8714_v37  ;;  %v2557_v35 = vmul.f32 %v8783_v60, %v8716_v54  ;;  %v4688_v6 = vmul.f32 -1.442695, %v1557_v59 }
 0x36c   :  { %v8820_v8 = vor.u32 1.1754944e-38, %v3512_v22  ;;  %vm3986_vm10 = vweird.f32 %v8694_v31  ;;  %v8823_v3 = vadd.f32 1.0, %v5227_v55  ;;  %v1589_v24 = vadd.f32 %v5611_v41, %v1425_v39  ;;  %v1489_v39 = vpop.xlane.xlu1 %1488 }
 0x36d   :  { %v8826_v25 = vpop.eup %5228  ;;  %v8830_v27 = vsel %vm8803_vm4, %v3528_v51, %v3524_v49  ;;  %vm3507_vm7 = vweird.f32 %v8743_v40  ;;  %v3990_v53 = vand.u32 2147483647, %v8694_v31  ;;  %5230 = vpow2.f32 %v4688_v6 }
 0x36e   :  { %v3504_v15 = vmul.f32 %v8743_v40, %v3503_v38  ;;  %v3984_v62 = vmul.f32 %v8754_v44, %v3983_v36  ;;  %v8836_v5 = vor.u32 1.1754944e-38, %v3992_v56  ;;  %5232 = vrcp.f32 %v8823_v3  ;;  %vm8870_vm11 = vmor %vm3506_vm3, %vm3507_vm7 }
 0x36f   :  { %v3998_v20 = vsub.f32 1.0, %v3997_v43  ;;  %vm4001_vm1 = vweird.f32 %v8714_v37  ;;  %v4005_v16 = vand.u32 2147483647, %v8714_v37  ;;  %v2558_v59 = vsub.f32 1.0, %v2557_v35  ;;  %v1299_v43 = vpop.xlane.xlu0 %1298 }
 0x370   :  { %v4007_v22 = vand.u32 2147483648, %v8714_v37  ;;  %v3037_v23 = vmul.f32 %v8826_v25, %v8768_v58  ;;  %v4720_v9 = vmul.f32 -1.442695, %v1589_v24  ;;  %vm8846_vm8 = vcmp.eq.f32.partialorder %v3510_v2, 8.507059e+37 }
 0x371   :  { %vm8850_vm6 = vcmp.eq.f32.partialorder %v3990_v53, 8.507059e+37  ;;  %vm2561_vm2 = vweird.f32 %v8716_v54  ;;  %v2565_v38 = vand.u32 2147483647, %v8716_v54  ;;  %v2567_v36 = vand.u32 2147483648, %v8716_v54 }
 0x372   :  { %v1558_v56 = vadd.f32 %v5611_v41, %v1363_v50  ;;  %v1621_v55 = vadd.f32 %v5611_v41, %v1489_v39  ;;  %v3505_v2 = vadd.f32 %v8743_v40, %v3504_v15  ;;  %v3985_v35 = vadd.f32 %v8754_v44, %v3984_v62 }
 0x373   :  { %vm3987_vm15 = vweird.f32 %v8754_v44  ;;  %5234 = vpow2.f32 %v4720_v9  ;;  %v5231_v6 = vpop.eup %5230  ;;  %v3999_v24 = vmul.f32 %v8776_v28, %v3998_v20  ;;  %v2559_v53 = vmul.f32 %v8783_v60, %v2558_v59 }
 0x374   :  { %v4689_v61 = vmul.f32 -1.442695, %v1558_v56  ;;  %v4752_v13 = vmul.f32 -1.442695, %v1621_v55  ;;  %v8864_v0 = vpop.eup %5232  ;;  %v8874_v15 = vor.u32 1.1754944e-38, %v4007_v22  ;;  %v3038_v62 = vsub.f32 1.0, %v3037_v23  ;;  %vm8881_vm9 = vmor %vm3986_vm10, %vm3987_vm15  ;;  %v1427_v55 = vpop.xlane.xlu1 %1426 }
 0x375   :  { %v8876_v39 = vadd.f32 1.0, %v5231_v6  ;;  %v1526_v20 = vadd.f32 %v5611_v41, %v1299_v43  ;;  %vm4002_vm12 = vweird.f32 %v8776_v28  ;;  %vm8886_vm14 = vcmp.eq.f32.partialorder %v2565_v38, 8.507059e+37 }
 0x376   :  { %v2568_v9 = vor.u32 1.1754944e-38, %v2567_v36  ;;  %v2572_v22 = vmul.f32 %v8864_v0, %v8823_v3  ;;  %5236 = vpow2.f32 %v4689_v61  ;;  %v3509_v23 = vsel %vm8870_vm11, %v8743_v40, %v3505_v2  ;;  %v1429_v40 = vpop.xlane.xlu2 %1428  ;;  %vm8914_vm10 = vmor %vm4001_vm1, %vm4002_vm12 }
 0x377   :  { %v3989_v31 = vsel %vm8881_vm9, %v8754_v44, %v3985_v35  ;;  %vm2562_vm4 = vweird.f32 %v8783_v60  ;;  %vm3041_vm0 = vweird.f32 %v8768_v58  ;;  %5238 = vrcp.f32 %v8876_v39 }
 0x378   :  { %v4000_v38 = vadd.f32 %v8776_v28, %v3999_v24  ;;  %vm8902_vm3 = vcmp.eq.f32.partialorder %v4005_v16, 8.507059e+37  ;;  %v2560_v61 = vadd.f32 %v8783_v60, %v2559_v53  ;;  %v2573_v56 = vsub.f32 1.0, %v2572_v22  ;;  %vm8937_vm7 = vmor %vm2561_vm2, %vm2562_vm4 }
 0x379   :  { %5240 = vpow2.f32 %v4752_v13  ;;  %v5235_v43 = vpop.eup %5234  ;;  %v3039_v44 = vmul.f32 %v8826_v25, %v3038_v62  ;;  %v3045_v2 = vand.u32 2147483647, %v8768_v58  ;;  %v4657_v35 = vmul.f32 -1.442695, %v1526_v20 }
 0x37a   :  { %v1591_v6 = vadd.f32 %v5611_v41, %v1429_v40  ;;  %v3047_v13 = vand.u32 2147483648, %v8768_v58  ;;  %v2574_v24 = vmul.f32 %v8864_v0, %v2573_v56  ;;  %v8920_v53 = vadd.f32 1.0, %v5235_v43 }
 0x37b   :  { %v1590_v50 = vadd.f32 %v5611_v41, %v1427_v55  ;;  %v8926_v62 = vsel %vm8846_vm8, %v8820_v8, %v3509_v23  ;;  %v8931_v37 = vsel %vm8850_vm6, %v8836_v5, %v3989_v31  ;;  %5242 = vpow2.f32 %v4657_v35 }
 0x37c   :  { %v4722_v59 = vmul.f32 -1.442695, %v1591_v6  ;;  %v5237_v22 = vpop.eup %5236  ;;  %v4004_v8 = vsel %vm8914_vm10, %v8776_v28, %v4000_v38  ;;  %v2564_v5 = vsel %vm8937_vm7, %v8783_v60, %v2560_v61  ;;  %vm3042_vm1 = vweird.f32 %v8826_v25 }
 0x37d   :  { %5244 = vrcp.f32 %v8920_v53  ;;  %v8949_v54 = vpop.eup %5238  ;;  %v3040_v51 = vadd.f32 %v8826_v25, %v3039_v44  ;;  %vm2576_vm8 = vweird.f32 %v8823_v3  ;;  %v8953_v49 = vadd.f32 1.0, %v5237_v22  ;;  %vm8970_vm2 = vmor %vm3041_vm0, %vm3042_vm1 }
 0x37e   :  { %5246 = vpow2.f32 %v4722_v59  ;;  %v2575_v28 = vadd.f32 %v8864_v0, %v2574_v24  ;;  %vm2577_vm6 = vweird.f32 %v8864_v0  ;;  %v3052_v60 = vmul.f32 %v8949_v54, %v8876_v39 }
 0x37f   :  { %v5241_v23 = vpop.eup %5240  ;;  %v4721_v31 = vmul.f32 -1.442695, %v1590_v50  ;;  %v2569_v38 = vsel %vm8886_vm14, %v2568_v9, %v2564_v5  ;;  %v2580_v61 = vand.u32 2147483647, %v8823_v3  ;;  %v2582_v56 = vand.u32 2147483648, %v8823_v3  ;;  %vm8992_vm11 = vmor %vm2576_vm8, %vm2577_vm6 }
 0x380   :  { %5248 = vrcp.f32 %v8953_v49  ;;  %vm8974_vm15 = vcmp.eq.f32.partialorder %v3045_v2, 8.507059e+37  ;;  %v3048_v9 = vor.u32 1.1754944e-38, %v3047_v13  ;;  %v3053_v43 = vsub.f32 1.0, %v3052_v60  ;;  %v1365_v13 = vpop.xlane.xlu0 %1364 }
 0x381   :  { %v5243_v44 = vpop.eup %5242  ;;  %v8983_v6 = vsel %vm8902_vm3, %v8874_v15, %v4004_v8  ;;  %v3044_v58 = vsel %vm8970_vm2, %v8826_v25, %v3040_v51  ;;  %v8996_v16 = vadd.f32 1.0, %v5241_v23  ;;  %v4270_v15 = vperm.slane %v2569_v38, %v9664_v63 }
 0x382   :  { %v2579_v36 = vsel %vm8992_vm11, %v8864_v0, %v2575_v28  ;;  %v3054_v25 = vmul.f32 %v8949_v54, %v3053_v43  ;;  %5250 = vpow2.f32 %v4721_v31  ;;  %vm2581_vm9 = vcmp.eq.f32.partialorder %v2580_v61, 8.507059e+37 }
 0x383   :  { %v8998_v24 = vpop.eup %5244  ;;  %v2583_v3 = vor.u32 1.1754944e-38, %v2582_v56  ;;  %5252 = vrcp.f32 %v8996_v16  ;;  %v9010_v59 = vsel %vm8974_vm15, %v3048_v9, %v3044_v58  ;;  %vm3057_vm12 = vweird.f32 %v8949_v54 }
 0x384   :  { %v5247_v50 = vpop.eup %5246  ;;  %v3532_v20 = vmul.f32 %v8998_v24, %v8920_v53  ;;  %v9013_v22 = vadd.f32 1.0, %v5243_v44  ;;  %v1559_v0 = vadd.f32 %v5611_v41, %v1365_v13  ;;  %v3055_v51 = vadd.f32 %v8949_v54, %v3054_v25 }
 0x385   :  { %v2584_v5 = vsel %vm2581_vm9, %v2583_v3, %v2579_v36  ;;  %v9019_v28 = vadd.f32 1.0, %v5247_v50  ;;  %vm9793_vm14 = vcmask 851712   ;;  %v3060_v31 = vand.u32 2147483647, %v8876_v39 }
 0x386   :  { %v9016_v8 = vpop.eup %5248  ;;  %v3533_v23 = vsub.f32 1.0, %v3532_v20  ;;  %v4271_v60 = vsel %vm9793_vm14, %v4270_v15, %v8813_v7  ;;  %v3062_v38 = vand.u32 2147483648, %v8876_v39  ;;  %vm3056_vm4 = vweird.f32 %v8876_v39 }
 0x387   :  { %v3067_v61 = vmul.f32 %v9016_v8, %v8953_v49  ;;  %v3542_v55 = vand.u32 2147483648, %v8920_v53  ;;  %5254 = vrcp.f32 %v9013_v22  ;;  %v4272_v9 = vperm.slane %v2584_v5, %v6892_v14  ;;  %vm9035_vm0 = vmor %vm3056_vm4, %vm3057_vm12 }
 0x388   :  { %v5251_v18 = vpop.eup %5250  ;;  %v3540_v43 = vand.u32 2147483647, %v8920_v53  ;;  %v3077_v44 = vand.u32 2147483648, %v8953_v49  ;;  %v4690_v58 = vmul.f32 -1.442695, %v1559_v0  ;;  %v3059_v39 = vsel %vm9035_vm0, %v8949_v54, %v3055_v51  ;;  %v1301_v54 = vpop.xlane.xlu1 %1300 }
 0x389   :  { %v9041_v2 = vpop.eup %5252  ;;  %v3534_v13 = vmul.f32 %v8998_v24, %v3533_v23  ;;  %v3068_v15 = vsub.f32 1.0, %v3067_v61  ;;  %5256 = vrcp.f32 %v9019_v28  ;;  %vm3061_vm3 = vcmp.eq.f32.partialorder %v3060_v31, 8.507059e+37 }
 0x38a   :  { %v3063_v36 = vor.u32 1.1754944e-38, %v3062_v38  ;;  %vm3536_vm10 = vweird.f32 %v8920_v53  ;;  %v4022_v25 = vand.u32 2147483648, %v8996_v16  ;;  %v3543_v50 = vor.u32 1.1754944e-38, %v3542_v55 }
 0x38b   :  { %vm3071_vm7 = vweird.f32 %v8953_v49  ;;  %v3075_v3 = vand.u32 2147483647, %v8953_v49  ;;  %v4012_v20 = vmul.f32 %v9041_v2, %v8996_v16  ;;  %vm9796_vm1 = vcmask 917312  }
 0x38c   :  { %v9055_v0 = vsel %vm9796_vm1, %v4272_v9, %v4271_v60  ;;  %v9057_v5 = vsel %vm3061_vm3, %v3063_v36, %v3059_v39  ;;  %vm9059_vm8 = vcmp.eq.f32.partialorder %v3540_v43, 8.507059e+37  ;;  %v9063_v23 = vor.u32 1.1754944e-38, %v3077_v44 }
 0x38d   :  { %v9065_v31 = vadd.f32 1.0, %v5251_v18  ;;  %v9067_v38 = vpop.eup %5254  ;;  %v3535_v61 = vadd.f32 %v8998_v24, %v3534_v13  ;;  %vm3537_vm6 = vweird.f32 %v8998_v24  ;;  %v3069_v55 = vmul.f32 %v9016_v8, %v3068_v15  ;;  %v1461_v18 = vpop.xlane.xlu2 %1460 }
 0x38e   :  { %5258 = vpow2.f32 %v4690_v58  ;;  %vm3072_vm2 = vweird.f32 %v9016_v8  ;;  %v4020_v60 = vand.u32 2147483647, %v8996_v16  ;;  %v9074_v9 = vor.u32 1.1754944e-38, %v4022_v25  ;;  %vm9086_vm11 = vmor %vm3536_vm10, %vm3537_vm6 }
 0x38f   :  { %v2587_v7 = vmul.f32 %v9067_v38, %v9013_v22  ;;  %v9078_v43 = vpop.eup %5256  ;;  %v4013_v39 = vsub.f32 1.0, %v4012_v20  ;;  %vm2591_vm15 = vweird.f32 %v9013_v22  ;;  %5260 = vrcp.f32 %v9065_v31  ;;  %vm9132_vm10 = vmor %vm3071_vm7, %vm3072_vm2 }
 0x390   :  { %vm9090_vm9 = vcmp.eq.f32.partialorder %v3075_v3, 8.507059e+37  ;;  %v2595_v36 = vand.u32 2147483647, %v9013_v22  ;;  %v2597_v25 = vand.u32 2147483648, %v9013_v22  ;;  %v3562_v20 = vmul.f32 %v9078_v43, %v9019_v28 }
 0x391   :  { %v2588_v15 = vsub.f32 1.0, %v2587_v7  ;;  %v3539_v53 = vsel %vm9086_vm11, %v8998_v24, %v3535_v61  ;;  %v3070_v35 = vadd.f32 %v9016_v8, %v3069_v55  ;;  %vm4016_vm12 = vweird.f32 %v8996_v16 }
 0x392   :  { %vm4017_vm14 = vweird.f32 %v9041_v2  ;;  %v1607_v3 = vadd.f32 %v5611_v41, %v1461_v18  ;;  %v3563_v44 = vsub.f32 1.0, %v3562_v20  ;;  %vm3566_vm4 = vweird.f32 %v9019_v28  ;;  %v1493_v20 = vpop.xlane.xlu1 %1492 }
 0x393   :  { %v2589_v7 = vmul.f32 %v9067_v38, %v2588_v15  ;;  %v1527_v40 = vadd.f32 %v5611_v41, %v1301_v54  ;;  %vm9803_vm0 = vcmask 654912   ;;  %v4014_v55 = vmul.f32 %v9041_v2, %v4013_v39  ;;  %v1491_v15 = vpop.xlane.xlu0 %1490  ;;  %vm9180_vm2 = vmor %vm4016_vm12, %vm4017_vm14 }
 0x394   :  { %v9113_v24 = vsel %vm9803_vm0, %v4388_v33, %v8321_v26  ;;  %v5259_v61 = vpop.eup %5258  ;;  %vm2592_vm3 = vweird.f32 %v9067_v38  ;;  %v3570_v18 = vand.u32 2147483647, %v9019_v28  ;;  %v4738_v58 = vmul.f32 -1.442695, %v1607_v3 }
 0x395   :  { %v2590_v47 = vadd.f32 %v9067_v38, %v2589_v7  ;;  %v3572_v54 = vand.u32 2147483648, %v9019_v28  ;;  %v9120_v56 = vadd.f32 1.0, %v5259_v61  ;;  %v4658_v19 = vmul.f32 -1.442695, %v1527_v40  ;;  %v9122_v10 = vpop.eup %5260  ;;  %vm9149_vm7 = vmor %vm2591_vm15, %vm2592_vm3 }
 0x396   :  { %v9126_v26 = vsel %vm9059_vm8, %v3543_v50, %v3539_v53  ;;  %5262 = vpow2.f32 %v4738_v58  ;;  %v1622_v39 = vadd.f32 %v5611_v41, %v1491_v15  ;;  %v1623_v3 = vadd.f32 %v5611_v41, %v1493_v20 }
 0x397   :  { %v3074_v40 = vsel %vm9132_vm10, %v9016_v8, %v3070_v35  ;;  %vm9141_vm1 = vcmp.eq.f32.partialorder %v4020_v60, 8.507059e+37  ;;  %vm9153_vm8 = vcmp.eq.f32.partialorder %v2595_v36, 8.507059e+37  ;;  %v3564_v41 = vmul.f32 %v9078_v43, %v3563_v44 }
 0x398   :  { %v3547_v35 = vmul.f32 %v9122_v10, %v9065_v31  ;;  %v4015_v8 = vadd.f32 %v9041_v2, %v4014_v55  ;;  %v2594_v60 = vsel %vm9149_vm7, %v9067_v38, %v2590_v47  ;;  %v2598_v22 = vor.u32 1.1754944e-38, %v2597_v25 }
 0x399   :  { %5264 = vrcp.f32 %v9120_v56  ;;  %v4396_v36 = vperm.slane %v9126_v26, %v6892_v14  ;;  %vm9167_vm6 = vcmp.eq.f32.partialorder %v3570_v18, 8.507059e+37  ;;  %v9174_v7 = vsel %vm9090_vm9, %v9063_v23, %v3074_v40 }
 0x39a   :  { %v3548_v44 = vsub.f32 1.0, %v3547_v35  ;;  %5266 = vpow2.f32 %v4658_v19  ;;  %v3573_v61 = vor.u32 1.1754944e-38, %v3572_v54  ;;  %v4753_v55 = vmul.f32 -1.442695, %v1622_v39 }
 0x39b   :  { %v4754_v47 = vmul.f32 -1.442695, %v1623_v3  ;;  %v2599_v25 = vsel %vm9153_vm8, %v2598_v22, %v2594_v60  ;;  %v3565_v18 = vadd.f32 %v9078_v43, %v3564_v41  ;;  %vm3567_vm15 = vweird.f32 %v9078_v43 }
 0x39c   :  { %v3549_v23 = vmul.f32 %v9122_v10, %v3548_v44  ;;  %v5263_v13 = vpop.eup %5262  ;;  %v3555_v58 = vand.u32 2147483647, %v9065_v31  ;;  %v3557_v15 = vand.u32 2147483648, %v9065_v31  ;;  %5268 = vpow2.f32 %v4753_v55  ;;  %vm9203_vm9 = vmor %vm3566_vm4, %vm3567_vm15 }
 0x39d   :  { %v4019_v16 = vsel %vm9180_vm2, %v9041_v2, %v4015_v8  ;;  %vm3552_vm11 = vweird.f32 %v9122_v10  ;;  %v9196_v54 = vadd.f32 1.0, %v5263_v13  ;;  %5270 = vpow2.f32 %v4754_v47 }
 0x39e   :  { %v3550_v20 = vadd.f32 %v9122_v10, %v3549_v23  ;;  %v4274_v33 = vperm.slane %v2599_v25, %v9695_v12  ;;  %v3090_v3 = vand.u32 2147483647, %v9120_v56  ;;  %v3092_v2 = vand.u32 2147483648, %v9120_v56 }
 0x39f   :  { %v9198_v19 = vpop.eup %5264  ;;  %v9818_v40 = vperm.slane %v8558_v29, %v9686_v4  ;;  %vm9819_vm12 = vcmask 589312   ;;  %vm3551_vm14 = vweird.f32 %v9065_v31  ;;  %5272 = vrcp.f32 %v9196_v54 }
 0x3a0   :  { %v5267_v51 = vpop.eup %5266  ;;  %v3082_v28 = vmul.f32 %v9198_v19, %v9120_v56  ;;  %v3569_v41 = vsel %vm9203_vm9, %v9078_v43, %v3565_v18  ;;  %v4336_v35 = vperm.slane %v9174_v7, %v9695_v12  ;;  %vm9225_vm4 = vmor %vm3551_vm14, %vm3552_vm11  ;;  %vm9229_vm0 = vcmp.eq.f32.partialorder %v3555_v58, 8.507059e+37 }
 0x3a1   :  { %v4449_v49 = vsel %vm9819_vm12, %v9818_v40, %v8203_v42  ;;  %v3558_v29 = vor.u32 1.1754944e-38, %v3557_v15  ;;  %v9236_v31 = vsel %vm9141_vm1, %v9074_v9, %v4019_v16  ;;  %v3554_v43 = vsel %vm9225_vm4, %v9122_v10, %v3550_v20 }
 0x3a2   :  { %v3083_v8 = vsub.f32 1.0, %v3082_v28  ;;  %vm3086_vm3 = vweird.f32 %v9120_v56  ;;  %v9242_v60 = vadd.f32 1.0, %v5267_v51  ;;  %v5269_v22 = vpop.eup %5268  ;;  %vm9244_vm10 = vcmp.eq.f32.partialorder %v3090_v3, 8.507059e+37 }
 0x3a3   :  { %v3093_v7 = vor.u32 1.1754944e-38, %v3092_v2  ;;  %v9250_v50 = vsel %vm9167_vm6, %v3573_v61, %v3569_v41  ;;  %v9254_v9 = vsel %vm4241_vm5, %v4274_v33, %v9055_v0  ;;  %v5271_v10 = vpop.eup %5270  ;;  %v9826_v47 = vperm.slane %v9010_v59, %v9664_v63 }
 0x3a4   :  { %v3084_v55 = vmul.f32 %v9198_v19, %v3083_v8  ;;  %5274 = vrcp.f32 %v9242_v60  ;;  %vm9827_vm1 = vcmask 851712   ;;  %v9828_v53 = vperm.slane %v8760_v11, %v9668_v52 }
 0x3a5   :  { %v4333_v38 = vsel %vm9827_vm1, %v9826_v47, %v8790_v17  ;;  %vm9829_vm7 = vcmask 720512   ;;  %v3559_v0 = vsel %vm9229_vm0, %v3558_v29, %v3554_v43  ;;  %vm3087_vm8 = vweird.f32 %v9198_v19  ;;  %v9275_v23 = vpop.eup %5272  ;;  %vm9837_vm9 = vmmov %vm9827_vm1 }
 0x3a6   :  { %v4391_v61 = vsel %vm9829_vm7, %v9828_v53, %v9113_v24  ;;  %v9271_v25 = vadd.f32 1.0, %v5269_v22  ;;  %v9273_v18 = vadd.f32 1.0, %v5271_v10  ;;  %v3085_v59 = vadd.f32 %v9198_v19, %v3084_v55  ;;  %vm9295_vm15 = vmor %vm3086_vm3, %vm3087_vm8 }
 0x3a7   :  { %v3810_v17 = vand.u32 2147483647, %v9196_v54  ;;  %v3812_v13 = vand.u32 2147483648, %v9196_v54  ;;  %v9830_v11 = vperm.slane %v8926_v62, %v9653_v48  ;;  %vm9831_vm6 = vcmask 786112  }
 0x3a8   :  { %v3802_v58 = vmul.f32 %v9275_v23, %v9196_v54  ;;  %5276 = vrcp.f32 %v9271_v25  ;;  %v9832_v15 = vperm.slane %v9057_v5, %v6892_v14  ;;  %vm9833_vm2 = vcmask 917312  }
 0x3a9   :  { %v4393_v24 = vsel %vm9831_vm6, %v9830_v11, %v4391_v61  ;;  %v4400_v20 = vperm.slane %v9250_v50, %v9711_v45  ;;  %vm3806_vm11 = vweird.f32 %v9196_v54  ;;  %v4398_v39 = vperm.slane %v3559_v0, %v9695_v12  ;;  %vm9840_vm14 = vmmov %vm9833_vm2 }
 0x3aa   :  { %v4335_v16 = vsel %vm9833_vm2, %v9832_v15, %v4333_v38  ;;  %v4456_v5 = vperm.slane %v8983_v6, %v9664_v63  ;;  %v3089_v3 = vsel %vm9295_vm15, %v9198_v19, %v3085_v59  ;;  %v3803_v2 = vsub.f32 1.0, %v3802_v58  ;;  %v5275_v51 = vpop.eup %5274 }
 0x3ab   :  { %v4337_v62 = vsel %vm4241_vm5, %v4336_v35, %v4335_v16  ;;  %5278 = vrcp.f32 %v9273_v18  ;;  %v9836_v56 = vperm.slane %v8830_v27, %v9664_v63  ;;  %vm9312_vm12 = vcmp.eq.f32.partialorder %v3810_v17, 8.507059e+37 }
 0x3ac   :  { %v3813_v41 = vor.u32 1.1754944e-38, %v3812_v13  ;;  %v2610_v35 = vand.u32 2147483647, %v9242_v60  ;;  %v2612_v4 = vand.u32 2147483648, %v9242_v60  ;;  %v3804_v19 = vmul.f32 %v9275_v23, %v3803_v2 }
 0x3ad   :  { %v4395_v40 = vsel %vm9837_vm9, %v9836_v56, %v4393_v24  ;;  %v2602_v42 = vmul.f32 %v5275_v51, %v9242_v60  ;;  %v9841_v29 = vperm.slane %v8560_v30, %v9646_v46  ;;  %vm9842_vm4 = vcmask 654912  }
 0x3ae   :  { %v4397_v27 = vsel %vm9840_vm14, %v4396_v36, %v4395_v40  ;;  %v3094_v8 = vsel %vm9244_vm10, %v3093_v7, %v3089_v3  ;;  %vm3807_vm0 = vweird.f32 %v9275_v23  ;;  %vm2606_vm3 = vweird.f32 %v9242_v60  ;;  %v5277_v10 = vpop.eup %5276  ;;  %vm9846_vm10 = vmmov %vm9829_vm7 }
 0x3af   :  { %v4451_v43 = vsel %vm9842_vm4, %v9841_v29, %v4449_v49  ;;  %v9333_v22 = vsel %vm4241_vm5, %v4398_v39, %v4397_v27  ;;  %v3805_v26 = vadd.f32 %v9275_v23, %v3804_v19  ;;  %v2603_v55 = vsub.f32 1.0, %v2602_v42  ;;  %vm9350_vm7 = vmor %vm3806_vm11, %vm3807_vm0 }
 0x3b0   :  { %v4035_v36 = vand.u32 2147483647, %v9271_v25  ;;  %v4037_v46 = vand.u32 2147483648, %v9271_v25  ;;  %vm9338_vm1 = vcmp.eq.f32.partialorder %v2610_v35, 8.507059e+37  ;;  %v2613_v49 = vor.u32 1.1754944e-38, %v2612_v4 }
 0x3b1   :  { %v4027_v44 = vmul.f32 %v5277_v10, %v9271_v25  ;;  %v9845_v7 = vperm.slane %v8763_v1, %v9668_v52  ;;  %v5279_v38 = vpop.eup %5278  ;;  %v4338_v53 = vperm.slane %v3094_v8, %v9711_v45  ;;  %v2604_v0 = vmul.f32 %v5275_v51, %v2603_v55 }
 0x3b2   :  { %vm2607_vm8 = vweird.f32 %v5275_v51  ;;  %v4052_v59 = vand.u32 2147483648, %v9273_v18  ;;  %vm4031_vm6 = vweird.f32 %v9271_v25  ;;  %v4042_v52 = vmul.f32 %v5279_v38, %v9273_v18 }
 0x3b3   :  { %v4453_v47 = vsel %vm9846_vm10, %v9845_v7, %v4451_v43  ;;  %v4028_v17 = vsub.f32 1.0, %v4027_v44  ;;  %v3809_v1 = vsel %vm9350_vm7, %v9275_v23, %v3805_v26  ;;  %v2605_v13 = vadd.f32 %v5275_v51, %v2604_v0  ;;  %vm2608_vm11 = vmor %vm2606_vm3, %vm2607_vm8 }
 0x3b4   :  { %vm9360_vm2 = vcmp.eq.f32.partialorder %v4035_v36, 8.507059e+37  ;;  %v4038_v11 = vor.u32 1.1754944e-38, %v4037_v46  ;;  %vm4046_vm15 = vweird.f32 %v9273_v18  ;;  %vm4032_vm9 = vweird.f32 %v5277_v10 }
 0x3b5   :  { %v4029_v24 = vmul.f32 %v5277_v10, %v4028_v17  ;;  %v4043_v58 = vsub.f32 1.0, %v4042_v52  ;;  %v4050_v15 = vand.u32 2147483647, %v9273_v18  ;;  %v2609_v16 = vsel %vm2608_vm11, %v5275_v51, %v2605_v13  ;;  %vm4033_vm4 = vmor %vm4031_vm6, %vm4032_vm9 }
 0x3b6   :  { %v4053_v33 = vor.u32 1.1754944e-38, %v4052_v59  ;;  %v3814_v23 = vsel %vm9312_vm12, %v3813_v41, %v3809_v1  ;;  %v4339_v39 = vsel %vm4245_vm13, %v4338_v53, %v4337_v62  ;;  %v2614_v3 = vsel %vm9338_vm1, %v2613_v49, %v2609_v16 }
 0x3b7   :  { %v4030_v2 = vadd.f32 %v5277_v10, %v4029_v24  ;;  %v4044_v56 = vmul.f32 %v5279_v38, %v4043_v58  ;;  %vm4047_vm14 = vweird.f32 %v5279_v38  ;;  %v4276_v60 = vperm.slane %v2614_v3, %v9711_v45 }
 0x3b8   :  { %v9851_v40 = vperm.slane %v8931_v37, %v9653_v48  ;;  %vm9852_vm0 = vcmask 786112   ;;  %v4458_v28 = vperm.slane %v9236_v31, %v6892_v14  ;;  %vm4464_vm12 = vcmask 1041409   ;;  %vm4048_vm10 = vmor %vm4046_vm15, %vm4047_vm14 }
 0x3b9   :  { %v4034_v62 = vsel %vm4033_vm4, %v5277_v10, %v4030_v2  ;;  %v4045_v41 = vadd.f32 %v5279_v38, %v4044_v56  ;;  %vm4051_vm3 = vcmp.eq.f32.partialorder %v4050_v15, 8.507059e+37  ;;  %vm4466_vm1 = vcmask 1042434  }
 0x3ba   :  { %v4455_v51 = vsel %vm9852_vm0, %v9851_v40, %v4453_v47  ;;  %v4039_v35 = vsel %vm9360_vm2, %v4038_v11, %v4034_v62  ;;  %v4277_v25 = vsel %vm4245_vm13, %v4276_v60, %v9254_v9  ;;  %v4431_v48 = vperm.slane %v3814_v23, %v9711_v45 }
 0x3bb   :  { %vm4468_vm7 = vcmask 1043459   ;;  %v4049_v37 = vsel %vm4048_vm10, %v5279_v38, %v4045_v41  ;;  %v4460_v14 = vperm.slane %v4039_v35, %v9695_v12  ;;  %v4465_v31 = vsel %vm4464_vm12, %v4277_v25, %v8367_v34 }
 0x3bc   :  { %vm4470_vm8 = vcmask 1044484   ;;  %v4054_v4 = vsel %vm4051_vm3, %v4053_v33, %v4049_v37  ;;  %vm9853_vm6 = vcmask 851712   ;;  %v4467_v18 = vsel %vm4466_vm1, %v8416_v57, %v4465_v31 }
 0x3bd   :  { %v4457_v19 = vsel %vm9853_vm6, %v4456_v5, %v4455_v51  ;;  %vm4472_vm2 = vcmask 1045509   ;;  %vm9854_vm15 = vcmask 917312   ;;  %v4462_v42 = vperm.slane %v4054_v4, %v9711_v45 }
 0x3be   :  { %v4459_v9 = vsel %vm9854_vm15, %v4458_v28, %v4457_v19  ;;  %v4469_v27 = vsel %vm4468_vm7, %v4339_v39, %v4467_v18  ;;  %vm4474_vm11 = vcmask 1046534   ;;  %v4401_v63 = vsel %vm4245_vm13, %v4400_v20, %v9333_v22 }
 0x3bf   :  { %v4461_v12 = vsel %vm4241_vm5, %v4460_v14, %v4459_v9  ;;  %v4471_v34 = vsel %vm4470_vm8, %v8433_v32, %v4469_v27  ;;  %vm4476_vm9 = vcmask 1047559   ;;  %v4432_v57 = vsel %vm4245_vm13, %v4431_v48, %v8569_v21 }
 0x3c0   :  { %v4463_v6 = vsel %vm4245_vm13, %v4462_v42, %v4461_v12  ;;  %v4473_v5 = vsel %vm4472_vm2, %v4401_v63, %v4471_v34 }
 0x3c1   :  { %v4475_v29 = vsel %vm4474_vm11, %v4432_v57, %v4473_v5 }
 0x3c2   :  { %v4477_v43 = vsel %vm4476_vm9, %v4463_v6, %v4475_v29 }
 0x3c3   :  { %4479 = vst [vmem:[#allocation8] sm:$0xff] %v4477_v43 }
 0x3c4   :  { %4490 = dma.vmem_to_hbm [thread:$0]  %s4486_s23, 128, %s4488_s26, [#allocation5]  }
 0x3c5   :  { %5364 = dma.done.wait [#allocation5], 128  }
 0x3c6   :  { %5365 = vsyncadd [#allocation5], 4294967168 }
 0x3c7   :  { %4495 = vsyncpa [#allocation4], 1 }
 0x3c8   :  { %4496 = vsyncpa [#allocation7], 1 }
 0x3c9   :  { %4497 = vsyncpa [#allocation5], 1 }

</bundles_post_ra>
